<compile_context>
chip_gen: v5e
topology: v5e:2x2
jax: 0.10.0
libtpu: 0.0.40
codegen_flags: <defaults>
</compile_context>

<pallas_src>
import functools

import jax
import jax.numpy as jnp
from jax import lax
from jax.experimental import pallas as pl
from jax.experimental.pallas import tpu as pltpu


def _conv_rows(x_ref, g_ref, H, W):
    """Bias-free transposed-conv matmul for one tile.

    x_ref : (nb, H+2, W+2, Cin) bf16 padded NHWC block
    g_ref : (9, Cin, 4*Cout) f32 per-tap sub-pixel weights, columns (ry, rx, co)
    returns (nb*H*W, 4*Cout) f32, rows ordered (image, py, px).
    """
    xb = x_ref[...].astype(jnp.float32)          # tiny; f32 keeps layout ops simple
    nb, _, _, cin = xb.shape
    c4 = g_ref.shape[-1]
    rows = nb * H * W
    acc = jnp.zeros((rows, c4), jnp.float32)
    for t in range(9):                            # static unroll: 9 taps of the 3x3 window
        wy, wx = t // 3, t % 3
        tap = xb[:, wy:wy + H, wx:wx + W, :].reshape(rows, cin)
        acc = acc + jnp.dot(tap, g_ref[t], preferred_element_type=jnp.float32)
    return acc


def _stats_kernel(x_ref, g_ref, sum_ref, m2_ref, *, H, W):
    """Per-tile, per-column sum and centred sum-of-squares (Chan-combinable)."""
    y = _conv_rows(x_ref, g_ref, H, W)            # (R, 4*Cout) f32
    rows = y.shape[0]
    s = jnp.sum(y, axis=0, keepdims=True)         # (1, 4*Cout)
    m = s * (1.0 / rows)
    d = y - m
    q = jnp.sum(d * d, axis=0, keepdims=True)
    # Replicate over 8 sublanes so each tile writes its own (8, C4) block and
    # the grid axis stays fully "parallel" (partials reduced in f32 glue).
    sum_ref[...] = jnp.broadcast_to(s, sum_ref.shape)
    m2_ref[...] = jnp.broadcast_to(q, m2_ref.shape)


def _apply_kernel(x_ref, g_ref, scale_ref, shift_ref, o_ref, *, H, W):
    """Recompute the conv matmul, apply fused BN scale/shift + ELU, store bf16."""
    y = _conv_rows(x_ref, g_ref, H, W)
    z = y * scale_ref[...] + shift_ref[...]
    # ELU(alpha=1).  exp runs on the EUP; plain exp kept for guaranteed lowering
    # (expm1 would be slightly nicer near 0- but is not worth any lowering risk).
    e = jnp.where(z > 0, z, jnp.exp(z) - 1.0)
    o_ref[...] = e.astype(o_ref.dtype)


def upconv_forward(x_nchw, weight, bias, gamma, beta,
                   *, stride=2, padding=1, eps=1e-5):
    N, Cin, H, W = x_nchw.shape
    Cin_w, Cout, KH, KW = weight.shape
    assert Cin == Cin_w and KH == 4 and KW == 4 and stride == 2 and padding == 1
    # TODO(synk): W % 8 != 0 needs a (slower) non-trivial in-kernel relayout path.
    assert W % 8 == 0, "in-kernel tap reshape is layout-trivial only for W % 8 == 0"
    OH, OW = 2 * H, 2 * W
    C4 = 4 * Cout
    hw = H * W

    # ---------- glue: pad + cast input (bf16 NHWC); replaces the 9x im2col ----------
    x = jnp.transpose(x_nchw, (0, 2, 3, 1))
    xpad = jnp.pad(x, ((0, 0), (1, 1), (1, 1), (0, 0))).astype(jnp.bfloat16)

    # ---------- glue: per-tap sub-pixel weights G[(wy,wx)] -> (Cin, 4*Cout) ----------
    # Output pixel (2*py+ry, 2*px+rx) uses, at window offset (wy, wx), the
    # flipped-weight tap (2*wy - ry, 2*wx - rx) whenever it lies in [0, 4).
    wflip = jnp.transpose(weight[:, :, ::-1, ::-1], (2, 3, 0, 1)).astype(jnp.float32)
    wbig = jnp.zeros((3, 3, Cin, 2, 2, Cout), jnp.float32)
    for wy in range(3):
        for ry in range(2):
            kh = 2 * wy - ry
            if not 0 <= kh < KH:
                continue
            for wx in range(3):
                for rx in range(2):
                    kw = 2 * wx - rx
                    if not 0 <= kw < KW:
                        continue
                    wbig = wbig.at[wy, wx, :, ry, rx, :].set(wflip[kh, kw])
    g_taps = wbig.reshape(9, Cin, C4)             # f32, resident across grid steps

    # ---------- tile selection: images per grid step (lane-padding-aware) ----------
    # Real VMEM per step (lane-padded): f32 accumulator (R, C4->128 lanes) ~ R*512 B,
    # bf16 input block ~ (H+2)*(W+2)*256 B, each double-buffered by Pallas; R<=4096
    # keeps this ~2-3 MiB, far under the 32 MiB scoped limit, while making per-step
    # DMA comfortably larger than the ~0.35 us fixed grid-step overhead.  Keep >= 2
    # grid steps whenever N >= 2 so v7x's two TensorCores both get work.
    target_rows = 4096
    divisors = [d for d in range(1, N + 1) if N % d == 0]
    fitting = [d for d in divisors if d * hw <= target_rows]
    nb = max(fitting) if fitting else 1
    if N >= 2:
        while N // nb < 2:
            nb = max(d for d in divisors if d < nb)
    nt = N // nb
    R = nb * hw

    cparams = pltpu.CompilerParams(dimension_semantics=("parallel",),
                                   vmem_limit_bytes=32 * 1024 * 1024)

    x_spec = pl.BlockSpec((nb, H + 2, W + 2, Cin), lambda i: (i, 0, 0, 0))
    g_spec = pl.BlockSpec((9, Cin, C4), lambda i: (0, 0, 0))

    # ---------- pass 1: per-tile BN batch statistics ----------
    sums, m2s = pl.pallas_call(
        functools.partial(_stats_kernel, H=H, W=W),
        out_shape=(jax.ShapeDtypeStruct((8 * nt, C4), jnp.float32),
                   jax.ShapeDtypeStruct((8 * nt, C4), jnp.float32)),
        grid_spec=pltpu.PrefetchScalarGridSpec(
            num_scalar_prefetch=0,
            grid=(nt,),
            in_specs=[x_spec, g_spec],
            out_specs=(pl.BlockSpec((8, C4), lambda i: (i, 0)),
                       pl.BlockSpec((8, C4), lambda i: (i, 0)))),
        compiler_params=cparams,
    )(xpad, g_taps)

    # ---------- glue: exact parallel (Chan) combine of the per-tile stats ----------
    s_t = sums[::8]                                # (nt, C4); tiles wrote 8 equal rows
    q_t = m2s[::8]
    cnt = jnp.float32(R)                           # rows per tile (no padded rows)
    mean_t = s_t / cnt
    mean_c4 = jnp.sum(s_t, axis=0) / (nt * cnt)                         # (C4,)
    m2_c4 = jnp.sum(q_t, axis=0) + cnt * jnp.sum((mean_t - mean_c4) ** 2, axis=0)
    # Combine the 4 output-parity columns per channel (equal counts N*H*W each).
    mean_p = mean_c4.reshape(4, Cout)
    m2_p = m2_c4.reshape(4, Cout)
    cnt_p = jnp.float32(nt) * cnt
    mean_conv = jnp.mean(mean_p, axis=0)                                # (Cout,)
    m2_conv = jnp.sum(m2_p, axis=0) + cnt_p * jnp.sum((mean_p - mean_conv) ** 2, axis=0)
    var = m2_conv / (4.0 * cnt_p)                  # biased variance (train-mode BN)

    invstd = lax.rsqrt(var + eps)
    gamma32, beta32 = gamma.astype(jnp.float32), beta.astype(jnp.float32)
    scale_c = gamma32 * invstd
    # The ConvTranspose bias cancels exactly inside train-mode BN:
    # (conv + b - (mean_conv + b)) == (conv - mean_conv), so `bias` drops out.
    shift_c = beta32 - mean_conv * scale_c
    del bias
    scale_row = jnp.tile(scale_c, 4).reshape(1, C4)
    shift_row = jnp.tile(shift_c, 4).reshape(1, C4)

    # ---------- pass 2: recompute conv matmul, fused BN + ELU, bf16 store ----------
    out_flat = pl.pallas_call(
        functools.partial(_apply_kernel, H=H, W=W),
        out_shape=jax.ShapeDtypeStruct((N * hw, C4), jnp.bfloat16),
        grid_spec=pltpu.PrefetchScalarGridSpec(
            num_scalar_prefetch=0,
            grid=(nt,),
            in_specs=[x_spec, g_spec,
                      pl.BlockSpec((1, C4), lambda i: (0, 0)),
                      pl.BlockSpec((1, C4), lambda i: (0, 0))],
            out_specs=pl.BlockSpec((R, C4), lambda i: (i, 0))),
        compiler_params=cparams,
    )(xpad, g_taps, scale_row, shift_row)

    # ---------- glue: parity interleave (pixel shuffle) + NCHW, on bf16 ----------
    # TODO(synk): fully fusing this into pass 2's store needs a lane<->sublane
    # relayout of the (R, 4*Cout) tile in-kernel; kept as one bf16 XLA pass for
    # guaranteed lowering (half the bytes of the previous f32 epilogue).
    out = out_flat.reshape(N, H, W, 2, 2, Cout)
    out = jnp.transpose(out, (0, 5, 1, 3, 2, 4)).reshape(N, Cout, OH, OW)
    return out.astype(jnp.float32)


def _reference(x, weight, bias, gamma, beta, *, stride=2, padding=1, eps=1e-5):
    """Pure-JAX reference of the PyTorch Upconv forward (train-mode BN)."""
    Cin, Cout, KH, KW = weight.shape
    rhs = jnp.transpose(weight[:, :, ::-1, ::-1], (1, 0, 2, 3))   # (Cout,Cin,KH,KW)
    y = lax.conv_general_dilated(
        x, rhs, window_strides=(1, 1),
        padding=((KH - 1 - padding, KH - 1 - padding),
                 (KW - 1 - padding, KW - 1 - padding)),
        lhs_dilation=(stride, stride), rhs_dilation=(1, 1),
        dimension_numbers=("NCHW", "OIHW", "NCHW"),
        precision=lax.Precision.HIGHEST)
    y = y + bias[None, :, None, None]
    mean = jnp.mean(y, axis=(0, 2, 3), keepdims=True)
    var = jnp.mean((y - mean) ** 2, axis=(0, 2, 3), keepdims=True)
    z = ((y - mean) * lax.rsqrt(var + eps) * gamma[None, :, None, None]
         + beta[None, :, None, None])
    return jnp.where(z > 0, z, jnp.exp(z) - 1.0)


if __name__ == "__main__":
    key = jax.random.PRNGKey(0)
    k1, k2, k3 = jax.random.split(key, 3)

    N, Cin, H, W = 2, 4, 16, 16
    Cout = 8

    x = jax.random.normal(k1, (N, Cin, H, W), jnp.float32)
    # ConvTranspose2d params: weight (Cin, Cout, 4, 4), bias (Cout,)
    weight = jax.random.normal(k2, (Cin, Cout, 4, 4), jnp.float32) * 0.1
    bias = jax.random.normal(k3, (Cout,), jnp.float32) * 0.1
    # BatchNorm2d affine params at their PyTorch init values
    gamma = jnp.ones((Cout,), jnp.float32)
    beta = jnp.zeros((Cout,), jnp.float32)

    upconv = jax.jit(upconv_forward)
    out = jax.block_until_ready(upconv(x, weight, bias, gamma, beta))
    assert out.shape == (N, Cout, 2 * H, 2 * W), out.shape

    # Structural check: reference fed the same bf16-rounded input the kernel
    # consumes (remaining differences: accumulation order + bf16 output store).
    x_bf = x.astype(jnp.bfloat16).astype(jnp.float32)
    ref_bf = _reference(x_bf, weight, bias, gamma, beta)
    assert jnp.allclose(out, ref_bf, atol=2e-2, rtol=2e-2), \
        float(jnp.max(jnp.abs(out - ref_bf)))

    # Loose end-to-end check vs full-f32 reference (bounds bf16 in/out error).
    ref = _reference(x, weight, bias, gamma, beta)
    assert jnp.allclose(out, ref, atol=5e-2, rtol=5e-2), \
        float(jnp.max(jnp.abs(out - ref)))

    print("KERNEL_OK")
</pallas_src>

<mosaic_0001>
module attributes {stable_mosaic.version = 11 : i64} {
  func.func @_stats_kernel(%arg0: i32, %arg1: memref<1x18x18x4xbf16, #tpu.memory_space<vmem>>, %arg2: memref<9x4x32xf32, #tpu.memory_space<vmem>>, %arg3: memref<8x32xf32, #tpu.memory_space<vmem>>, %arg4: memref<8x32xf32, #tpu.memory_space<vmem>>) attributes {dimension_semantics = [#tpu.dimension_semantics<parallel>], iteration_bounds = array<i64: 2>, scalar_prefetch = 0 : i64, scratch_operands = 0 : i64, tpu.core_type = #tpu.core_type<tc>, window_params = [{transform_indices = @transform_0, window_bounds = array<i64: 1, 18, 18, 4>}, {pipeline_mode = #tpu.pipeline_mode<synchronous>, transform_indices = @transform_1, window_bounds = array<i64: 9, 4, 32>}, {transform_indices = @transform_2, window_bounds = array<i64: 8, 32>}, {transform_indices = @transform_3, window_bounds = array<i64: 8, 32>}]} {
    %c0 = arith.constant 0 : index
    %c0_0 = arith.constant 0 : index
    %c0_1 = arith.constant 0 : index
    %c0_2 = arith.constant 0 : index
    %0 = vector.load %arg1[%c0, %c0_0, %c0_1, %c0_2] : memref<1x18x18x4xbf16, #tpu.memory_space<vmem>>, vector<1x18x18x4xbf16>
    %1 = arith.extf %0 : vector<1x18x18x4xbf16> to vector<1x18x18x4xf32>
    %cst = arith.constant 0.000000e+00 : f32
    %2 = vector.broadcast %cst : f32 to vector<256x32xf32>
    %3 = vector.extract_strided_slice %1 {offsets = [0, 0, 0, 0], sizes = [1, 16, 16, 4], strides = [1, 1, 1, 1]} : vector<1x18x18x4xf32> to vector<1x16x16x4xf32>
    %4 = vector.shape_cast %3 : vector<1x16x16x4xf32> to vector<256x4xf32>
    %c0_3 = arith.constant 0 : index
    %c0_4 = arith.constant 0 : index
    %c0_5 = arith.constant 0 : index
    %5 = vector.load %arg2[%c0_3, %c0_4, %c0_5] : memref<9x4x32xf32, #tpu.memory_space<vmem>>, vector<1x4x32xf32>
    %6 = vector.shape_cast %5 : vector<1x4x32xf32> to vector<4x32xf32>
    %cst_6 = arith.constant dense<0.000000e+00> : vector<256x32xf32>
    %7 = tpu.matmul %4, %6, %cst_6 {dimension_numbers = #tpu.dot_dimension_numbers<[1], [0], [0], [1], [0, 0, 1, 1], [], []>} : vector<256x4xf32>, vector<4x32xf32>, vector<256x32xf32> -> vector<256x32xf32>
    %8 = arith.addf %2, %7 : vector<256x32xf32>
    %9 = vector.extract_strided_slice %1 {offsets = [0, 0, 1, 0], sizes = [1, 16, 16, 4], strides = [1, 1, 1, 1]} : vector<1x18x18x4xf32> to vector<1x16x16x4xf32>
    %10 = vector.shape_cast %9 : vector<1x16x16x4xf32> to vector<256x4xf32>
    %c1 = arith.constant 1 : index
    %c0_7 = arith.constant 0 : index
    %c0_8 = arith.constant 0 : index
    %11 = vector.load %arg2[%c1, %c0_7, %c0_8] : memref<9x4x32xf32, #tpu.memory_space<vmem>>, vector<1x4x32xf32>
    %12 = vector.shape_cast %11 : vector<1x4x32xf32> to vector<4x32xf32>
    %cst_9 = arith.constant dense<0.000000e+00> : vector<256x32xf32>
    %13 = tpu.matmul %10, %12, %cst_9 {dimension_numbers = #tpu.dot_dimension_numbers<[1], [0], [0], [1], [0, 0, 1, 1], [], []>} : vector<256x4xf32>, vector<4x32xf32>, vector<256x32xf32> -> vector<256x32xf32>
    %14 = arith.addf %8, %13 : vector<256x32xf32>
    %15 = vector.extract_strided_slice %1 {offsets = [0, 0, 2, 0], sizes = [1, 16, 16, 4], strides = [1, 1, 1, 1]} : vector<1x18x18x4xf32> to vector<1x16x16x4xf32>
    %16 = vector.shape_cast %15 : vector<1x16x16x4xf32> to vector<256x4xf32>
    %c2 = arith.constant 2 : index
    %c0_10 = arith.constant 0 : index
    %c0_11 = arith.constant 0 : index
    %17 = vector.load %arg2[%c2, %c0_10, %c0_11] : memref<9x4x32xf32, #tpu.memory_space<vmem>>, vector<1x4x32xf32>
    %18 = vector.shape_cast %17 : vector<1x4x32xf32> to vector<4x32xf32>
    %cst_12 = arith.constant dense<0.000000e+00> : vector<256x32xf32>
    %19 = tpu.matmul %16, %18, %cst_12 {dimension_numbers = #tpu.dot_dimension_numbers<[1], [0], [0], [1], [0, 0, 1, 1], [], []>} : vector<256x4xf32>, vector<4x32xf32>, vector<256x32xf32> -> vector<256x32xf32>
    %20 = arith.addf %14, %19 : vector<256x32xf32>
    %21 = vector.extract_strided_slice %1 {offsets = [0, 1, 0, 0], sizes = [1, 16, 16, 4], strides = [1, 1, 1, 1]} : vector<1x18x18x4xf32> to vector<1x16x16x4xf32>
    %22 = vector.shape_cast %21 : vector<1x16x16x4xf32> to vector<256x4xf32>
    %c3 = arith.constant 3 : index
    %c0_13 = arith.constant 0 : index
    %c0_14 = arith.constant 0 : index
    %23 = vector.load %arg2[%c3, %c0_13, %c0_14] : memref<9x4x32xf32, #tpu.memory_space<vmem>>, vector<1x4x32xf32>
    %24 = vector.shape_cast %23 : vector<1x4x32xf32> to vector<4x32xf32>
    %cst_15 = arith.constant dense<0.000000e+00> : vector<256x32xf32>
    %25 = tpu.matmul %22, %24, %cst_15 {dimension_numbers = #tpu.dot_dimension_numbers<[1], [0], [0], [1], [0, 0, 1, 1], [], []>} : vector<256x4xf32>, vector<4x32xf32>, vector<256x32xf32> -> vector<256x32xf32>
    %26 = arith.addf %20, %25 : vector<256x32xf32>
    %27 = vector.extract_strided_slice %1 {offsets = [0, 1, 1, 0], sizes = [1, 16, 16, 4], strides = [1, 1, 1, 1]} : vector<1x18x18x4xf32> to vector<1x16x16x4xf32>
    %28 = vector.shape_cast %27 : vector<1x16x16x4xf32> to vector<256x4xf32>
    %c4 = arith.constant 4 : index
    %c0_16 = arith.constant 0 : index
    %c0_17 = arith.constant 0 : index
    %29 = vector.load %arg2[%c4, %c0_16, %c0_17] : memref<9x4x32xf32, #tpu.memory_space<vmem>>, vector<1x4x32xf32>
    %30 = vector.shape_cast %29 : vector<1x4x32xf32> to vector<4x32xf32>
    %cst_18 = arith.constant dense<0.000000e+00> : vector<256x32xf32>
    %31 = tpu.matmul %28, %30, %cst_18 {dimension_numbers = #tpu.dot_dimension_numbers<[1], [0], [0], [1], [0, 0, 1, 1], [], []>} : vector<256x4xf32>, vector<4x32xf32>, vector<256x32xf32> -> vector<256x32xf32>
    %32 = arith.addf %26, %31 : vector<256x32xf32>
    %33 = vector.extract_strided_slice %1 {offsets = [0, 1, 2, 0], sizes = [1, 16, 16, 4], strides = [1, 1, 1, 1]} : vector<1x18x18x4xf32> to vector<1x16x16x4xf32>
    %34 = vector.shape_cast %33 : vector<1x16x16x4xf32> to vector<256x4xf32>
    %c5 = arith.constant 5 : index
    %c0_19 = arith.constant 0 : index
    %c0_20 = arith.constant 0 : index
    %35 = vector.load %arg2[%c5, %c0_19, %c0_20] : memref<9x4x32xf32, #tpu.memory_space<vmem>>, vector<1x4x32xf32>
    %36 = vector.shape_cast %35 : vector<1x4x32xf32> to vector<4x32xf32>
    %cst_21 = arith.constant dense<0.000000e+00> : vector<256x32xf32>
    %37 = tpu.matmul %34, %36, %cst_21 {dimension_numbers = #tpu.dot_dimension_numbers<[1], [0], [0], [1], [0, 0, 1, 1], [], []>} : vector<256x4xf32>, vector<4x32xf32>, vector<256x32xf32> -> vector<256x32xf32>
    %38 = arith.addf %32, %37 : vector<256x32xf32>
    %39 = vector.extract_strided_slice %1 {offsets = [0, 2, 0, 0], sizes = [1, 16, 16, 4], strides = [1, 1, 1, 1]} : vector<1x18x18x4xf32> to vector<1x16x16x4xf32>
    %40 = vector.shape_cast %39 : vector<1x16x16x4xf32> to vector<256x4xf32>
    %c6 = arith.constant 6 : index
    %c0_22 = arith.constant 0 : index
    %c0_23 = arith.constant 0 : index
    %41 = vector.load %arg2[%c6, %c0_22, %c0_23] : memref<9x4x32xf32, #tpu.memory_space<vmem>>, vector<1x4x32xf32>
    %42 = vector.shape_cast %41 : vector<1x4x32xf32> to vector<4x32xf32>
    %cst_24 = arith.constant dense<0.000000e+00> : vector<256x32xf32>
    %43 = tpu.matmul %40, %42, %cst_24 {dimension_numbers = #tpu.dot_dimension_numbers<[1], [0], [0], [1], [0, 0, 1, 1], [], []>} : vector<256x4xf32>, vector<4x32xf32>, vector<256x32xf32> -> vector<256x32xf32>
    %44 = arith.addf %38, %43 : vector<256x32xf32>
    %45 = vector.extract_strided_slice %1 {offsets = [0, 2, 1, 0], sizes = [1, 16, 16, 4], strides = [1, 1, 1, 1]} : vector<1x18x18x4xf32> to vector<1x16x16x4xf32>
    %46 = vector.shape_cast %45 : vector<1x16x16x4xf32> to vector<256x4xf32>
    %c7 = arith.constant 7 : index
    %c0_25 = arith.constant 0 : index
    %c0_26 = arith.constant 0 : index
    %47 = vector.load %arg2[%c7, %c0_25, %c0_26] : memref<9x4x32xf32, #tpu.memory_space<vmem>>, vector<1x4x32xf32>
    %48 = vector.shape_cast %47 : vector<1x4x32xf32> to vector<4x32xf32>
    %cst_27 = arith.constant dense<0.000000e+00> : vector<256x32xf32>
    %49 = tpu.matmul %46, %48, %cst_27 {dimension_numbers = #tpu.dot_dimension_numbers<[1], [0], [0], [1], [0, 0, 1, 1], [], []>} : vector<256x4xf32>, vector<4x32xf32>, vector<256x32xf32> -> vector<256x32xf32>
    %50 = arith.addf %44, %49 : vector<256x32xf32>
    %51 = vector.extract_strided_slice %1 {offsets = [0, 2, 2, 0], sizes = [1, 16, 16, 4], strides = [1, 1, 1, 1]} : vector<1x18x18x4xf32> to vector<1x16x16x4xf32>
    %52 = vector.shape_cast %51 : vector<1x16x16x4xf32> to vector<256x4xf32>
    %c8 = arith.constant 8 : index
    %c0_28 = arith.constant 0 : index
    %c0_29 = arith.constant 0 : index
    %53 = vector.load %arg2[%c8, %c0_28, %c0_29] : memref<9x4x32xf32, #tpu.memory_space<vmem>>, vector<1x4x32xf32>
    %54 = vector.shape_cast %53 : vector<1x4x32xf32> to vector<4x32xf32>
    %cst_30 = arith.constant dense<0.000000e+00> : vector<256x32xf32>
    %55 = tpu.matmul %52, %54, %cst_30 {dimension_numbers = #tpu.dot_dimension_numbers<[1], [0], [0], [1], [0, 0, 1, 1], [], []>} : vector<256x4xf32>, vector<4x32xf32>, vector<256x32xf32> -> vector<256x32xf32>
    %56 = arith.addf %50, %55 : vector<256x32xf32>
    %cst_31 = arith.constant dense<0.000000e+00> : vector<32xf32>
    %57 = vector.multi_reduction <add>, %56, %cst_31 [0] : vector<256x32xf32> to vector<32xf32>
    %58 = vector.shape_cast %57 : vector<32xf32> to vector<1x32xf32>
    %cst_32 = arith.constant 3.906250e-03 : f32
    %59 = vector.broadcast %cst_32 : f32 to vector<1x32xf32>
    %60 = arith.mulf %58, %59 : vector<1x32xf32>
    %61 = vector.broadcast %60 : vector<1x32xf32> to vector<256x32xf32>
    %62 = arith.subf %56, %61 : vector<256x32xf32>
    %63 = arith.mulf %62, %62 : vector<256x32xf32>
    %cst_33 = arith.constant dense<0.000000e+00> : vector<32xf32>
    %64 = vector.multi_reduction <add>, %63, %cst_33 [0] : vector<256x32xf32> to vector<32xf32>
    %65 = vector.shape_cast %64 : vector<32xf32> to vector<1x32xf32>
    %66 = vector.shape_cast %58 : vector<1x32xf32> to vector<1x32xf32>
    %67 = vector.broadcast %66 : vector<1x32xf32> to vector<8x32xf32>
    %c0_34 = arith.constant 0 : index
    %c0_35 = arith.constant 0 : index
    %68 = vector.load %arg3[%c0_34, %c0_35] : memref<8x32xf32, #tpu.memory_space<vmem>>, vector<8x32xf32>
    tpu.vector_store %arg3[%c0_34, %c0_35], %67 {strides = array<i32>} : memref<8x32xf32, #tpu.memory_space<vmem>>, vector<8x32xf32>,
    %69 = vector.shape_cast %65 : vector<1x32xf32> to vector<1x32xf32>
    %70 = vector.broadcast %69 : vector<1x32xf32> to vector<8x32xf32>
    %c0_36 = arith.constant 0 : index
    %c0_37 = arith.constant 0 : index
    %71 = vector.load %arg4[%c0_36, %c0_37] : memref<8x32xf32, #tpu.memory_space<vmem>>, vector<8x32xf32>
    tpu.vector_store %arg4[%c0_36, %c0_37], %70 {strides = array<i32>} : memref<8x32xf32, #tpu.memory_space<vmem>>, vector<8x32xf32>,
    return
  }
  func.func @transform_0(%arg0: i32) -> (i32, i32, i32, i32) {
    %c0_i32 = arith.constant 0 : i32
    %c0_i32_0 = arith.constant 0 : i32
    %c0_i32_1 = arith.constant 0 : i32
    %c0_i32_2 = arith.constant 0 : i32
    return %arg0, %c0_i32, %c0_i32_0, %c0_i32_1 : i32, i32, i32, i32
  }
  func.func @transform_1(%arg0: i32) -> (i32, i32, i32) {
    %c0_i32 = arith.constant 0 : i32
    %c0_i32_0 = arith.constant 0 : i32
    %c0_i32_1 = arith.constant 0 : i32
    %c0_i32_2 = arith.constant 0 : i32
    return %c0_i32, %c0_i32_0, %c0_i32_1 : i32, i32, i32
  }
  func.func @transform_2(%arg0: i32) -> (i32, i32) {
    %c0_i32 = arith.constant 0 : i32
    %c0_i32_0 = arith.constant 0 : i32
    return %arg0, %c0_i32 : i32, i32
  }
  func.func @transform_3(%arg0: i32) -> (i32, i32) {
    %c0_i32 = arith.constant 0 : i32
    %c0_i32_0 = arith.constant 0 : i32
    return %arg0, %c0_i32 : i32, i32
  }
}

module attributes {stable_mosaic.version = 11 : i64} {
  func.func @_apply_kernel(%arg0: i32, %arg1: memref<1x18x18x4xbf16, #tpu.memory_space<vmem>>, %arg2: memref<9x4x32xf32, #tpu.memory_space<vmem>>, %arg3: memref<1x32xf32, #tpu.memory_space<vmem>>, %arg4: memref<1x32xf32, #tpu.memory_space<vmem>>, %arg5: memref<256x32xbf16, #tpu.memory_space<vmem>>) attributes {dimension_semantics = [#tpu.dimension_semantics<parallel>], iteration_bounds = array<i64: 2>, scalar_prefetch = 0 : i64, scratch_operands = 0 : i64, tpu.core_type = #tpu.core_type<tc>, window_params = [{transform_indices = @transform_0, window_bounds = array<i64: 1, 18, 18, 4>}, {pipeline_mode = #tpu.pipeline_mode<synchronous>, transform_indices = @transform_1, window_bounds = array<i64: 9, 4, 32>}, {pipeline_mode = #tpu.pipeline_mode<synchronous>, transform_indices = @transform_2, window_bounds = array<i64: 1, 32>}, {pipeline_mode = #tpu.pipeline_mode<synchronous>, transform_indices = @transform_3, window_bounds = array<i64: 1, 32>}, {transform_indices = @transform_4, window_bounds = array<i64: 256, 32>}]} {
    %c0 = arith.constant 0 : index
    %c0_0 = arith.constant 0 : index
    %c0_1 = arith.constant 0 : index
    %c0_2 = arith.constant 0 : index
    %0 = vector.load %arg1[%c0, %c0_0, %c0_1, %c0_2] : memref<1x18x18x4xbf16, #tpu.memory_space<vmem>>, vector<1x18x18x4xbf16>
    %1 = arith.extf %0 : vector<1x18x18x4xbf16> to vector<1x18x18x4xf32>
    %cst = arith.constant 0.000000e+00 : f32
    %2 = vector.broadcast %cst : f32 to vector<256x32xf32>
    %3 = vector.extract_strided_slice %1 {offsets = [0, 0, 0, 0], sizes = [1, 16, 16, 4], strides = [1, 1, 1, 1]} : vector<1x18x18x4xf32> to vector<1x16x16x4xf32>
    %4 = vector.shape_cast %3 : vector<1x16x16x4xf32> to vector<256x4xf32>
    %c0_3 = arith.constant 0 : index
    %c0_4 = arith.constant 0 : index
    %c0_5 = arith.constant 0 : index
    %5 = vector.load %arg2[%c0_3, %c0_4, %c0_5] : memref<9x4x32xf32, #tpu.memory_space<vmem>>, vector<1x4x32xf32>
    %6 = vector.shape_cast %5 : vector<1x4x32xf32> to vector<4x32xf32>
    %cst_6 = arith.constant dense<0.000000e+00> : vector<256x32xf32>
    %7 = tpu.matmul %4, %6, %cst_6 {dimension_numbers = #tpu.dot_dimension_numbers<[1], [0], [0], [1], [0, 0, 1, 1], [], []>} : vector<256x4xf32>, vector<4x32xf32>, vector<256x32xf32> -> vector<256x32xf32>
    %8 = arith.addf %2, %7 : vector<256x32xf32>
    %9 = vector.extract_strided_slice %1 {offsets = [0, 0, 1, 0], sizes = [1, 16, 16, 4], strides = [1, 1, 1, 1]} : vector<1x18x18x4xf32> to vector<1x16x16x4xf32>
    %10 = vector.shape_cast %9 : vector<1x16x16x4xf32> to vector<256x4xf32>
    %c1 = arith.constant 1 : index
    %c0_7 = arith.constant 0 : index
    %c0_8 = arith.constant 0 : index
    %11 = vector.load %arg2[%c1, %c0_7, %c0_8] : memref<9x4x32xf32, #tpu.memory_space<vmem>>, vector<1x4x32xf32>
    %12 = vector.shape_cast %11 : vector<1x4x32xf32> to vector<4x32xf32>
    %cst_9 = arith.constant dense<0.000000e+00> : vector<256x32xf32>
    %13 = tpu.matmul %10, %12, %cst_9 {dimension_numbers = #tpu.dot_dimension_numbers<[1], [0], [0], [1], [0, 0, 1, 1], [], []>} : vector<256x4xf32>, vector<4x32xf32>, vector<256x32xf32> -> vector<256x32xf32>
    %14 = arith.addf %8, %13 : vector<256x32xf32>
    %15 = vector.extract_strided_slice %1 {offsets = [0, 0, 2, 0], sizes = [1, 16, 16, 4], strides = [1, 1, 1, 1]} : vector<1x18x18x4xf32> to vector<1x16x16x4xf32>
    %16 = vector.shape_cast %15 : vector<1x16x16x4xf32> to vector<256x4xf32>
    %c2 = arith.constant 2 : index
    %c0_10 = arith.constant 0 : index
    %c0_11 = arith.constant 0 : index
    %17 = vector.load %arg2[%c2, %c0_10, %c0_11] : memref<9x4x32xf32, #tpu.memory_space<vmem>>, vector<1x4x32xf32>
    %18 = vector.shape_cast %17 : vector<1x4x32xf32> to vector<4x32xf32>
    %cst_12 = arith.constant dense<0.000000e+00> : vector<256x32xf32>
    %19 = tpu.matmul %16, %18, %cst_12 {dimension_numbers = #tpu.dot_dimension_numbers<[1], [0], [0], [1], [0, 0, 1, 1], [], []>} : vector<256x4xf32>, vector<4x32xf32>, vector<256x32xf32> -> vector<256x32xf32>
    %20 = arith.addf %14, %19 : vector<256x32xf32>
    %21 = vector.extract_strided_slice %1 {offsets = [0, 1, 0, 0], sizes = [1, 16, 16, 4], strides = [1, 1, 1, 1]} : vector<1x18x18x4xf32> to vector<1x16x16x4xf32>
    %22 = vector.shape_cast %21 : vector<1x16x16x4xf32> to vector<256x4xf32>
    %c3 = arith.constant 3 : index
    %c0_13 = arith.constant 0 : index
    %c0_14 = arith.constant 0 : index
    %23 = vector.load %arg2[%c3, %c0_13, %c0_14] : memref<9x4x32xf32, #tpu.memory_space<vmem>>, vector<1x4x32xf32>
    %24 = vector.shape_cast %23 : vector<1x4x32xf32> to vector<4x32xf32>
    %cst_15 = arith.constant dense<0.000000e+00> : vector<256x32xf32>
    %25 = tpu.matmul %22, %24, %cst_15 {dimension_numbers = #tpu.dot_dimension_numbers<[1], [0], [0], [1], [0, 0, 1, 1], [], []>} : vector<256x4xf32>, vector<4x32xf32>, vector<256x32xf32> -> vector<256x32xf32>
    %26 = arith.addf %20, %25 : vector<256x32xf32>
    %27 = vector.extract_strided_slice %1 {offsets = [0, 1, 1, 0], sizes = [1, 16, 16, 4], strides = [1, 1, 1, 1]} : vector<1x18x18x4xf32> to vector<1x16x16x4xf32>
    %28 = vector.shape_cast %27 : vector<1x16x16x4xf32> to vector<256x4xf32>
    %c4 = arith.constant 4 : index
    %c0_16 = arith.constant 0 : index
    %c0_17 = arith.constant 0 : index
    %29 = vector.load %arg2[%c4, %c0_16, %c0_17] : memref<9x4x32xf32, #tpu.memory_space<vmem>>, vector<1x4x32xf32>
    %30 = vector.shape_cast %29 : vector<1x4x32xf32> to vector<4x32xf32>
    %cst_18 = arith.constant dense<0.000000e+00> : vector<256x32xf32>
    %31 = tpu.matmul %28, %30, %cst_18 {dimension_numbers = #tpu.dot_dimension_numbers<[1], [0], [0], [1], [0, 0, 1, 1], [], []>} : vector<256x4xf32>, vector<4x32xf32>, vector<256x32xf32> -> vector<256x32xf32>
    %32 = arith.addf %26, %31 : vector<256x32xf32>
    %33 = vector.extract_strided_slice %1 {offsets = [0, 1, 2, 0], sizes = [1, 16, 16, 4], strides = [1, 1, 1, 1]} : vector<1x18x18x4xf32> to vector<1x16x16x4xf32>
    %34 = vector.shape_cast %33 : vector<1x16x16x4xf32> to vector<256x4xf32>
    %c5 = arith.constant 5 : index
    %c0_19 = arith.constant 0 : index
    %c0_20 = arith.constant 0 : index
    %35 = vector.load %arg2[%c5, %c0_19, %c0_20] : memref<9x4x32xf32, #tpu.memory_space<vmem>>, vector<1x4x32xf32>
    %36 = vector.shape_cast %35 : vector<1x4x32xf32> to vector<4x32xf32>
    %cst_21 = arith.constant dense<0.000000e+00> : vector<256x32xf32>
    %37 = tpu.matmul %34, %36, %cst_21 {dimension_numbers = #tpu.dot_dimension_numbers<[1], [0], [0], [1], [0, 0, 1, 1], [], []>} : vector<256x4xf32>, vector<4x32xf32>, vector<256x32xf32> -> vector<256x32xf32>
    %38 = arith.addf %32, %37 : vector<256x32xf32>
    %39 = vector.extract_strided_slice %1 {offsets = [0, 2, 0, 0], sizes = [1, 16, 16, 4], strides = [1, 1, 1, 1]} : vector<1x18x18x4xf32> to vector<1x16x16x4xf32>
    %40 = vector.shape_cast %39 : vector<1x16x16x4xf32> to vector<256x4xf32>
    %c6 = arith.constant 6 : index
    %c0_22 = arith.constant 0 : index
    %c0_23 = arith.constant 0 : index
    %41 = vector.load %arg2[%c6, %c0_22, %c0_23] : memref<9x4x32xf32, #tpu.memory_space<vmem>>, vector<1x4x32xf32>
    %42 = vector.shape_cast %41 : vector<1x4x32xf32> to vector<4x32xf32>
    %cst_24 = arith.constant dense<0.000000e+00> : vector<256x32xf32>
    %43 = tpu.matmul %40, %42, %cst_24 {dimension_numbers = #tpu.dot_dimension_numbers<[1], [0], [0], [1], [0, 0, 1, 1], [], []>} : vector<256x4xf32>, vector<4x32xf32>, vector<256x32xf32> -> vector<256x32xf32>
    %44 = arith.addf %38, %43 : vector<256x32xf32>
    %45 = vector.extract_strided_slice %1 {offsets = [0, 2, 1, 0], sizes = [1, 16, 16, 4], strides = [1, 1, 1, 1]} : vector<1x18x18x4xf32> to vector<1x16x16x4xf32>
    %46 = vector.shape_cast %45 : vector<1x16x16x4xf32> to vector<256x4xf32>
    %c7 = arith.constant 7 : index
    %c0_25 = arith.constant 0 : index
    %c0_26 = arith.constant 0 : index
    %47 = vector.load %arg2[%c7, %c0_25, %c0_26] : memref<9x4x32xf32, #tpu.memory_space<vmem>>, vector<1x4x32xf32>
    %48 = vector.shape_cast %47 : vector<1x4x32xf32> to vector<4x32xf32>
    %cst_27 = arith.constant dense<0.000000e+00> : vector<256x32xf32>
    %49 = tpu.matmul %46, %48, %cst_27 {dimension_numbers = #tpu.dot_dimension_numbers<[1], [0], [0], [1], [0, 0, 1, 1], [], []>} : vector<256x4xf32>, vector<4x32xf32>, vector<256x32xf32> -> vector<256x32xf32>
    %50 = arith.addf %44, %49 : vector<256x32xf32>
    %51 = vector.extract_strided_slice %1 {offsets = [0, 2, 2, 0], sizes = [1, 16, 16, 4], strides = [1, 1, 1, 1]} : vector<1x18x18x4xf32> to vector<1x16x16x4xf32>
    %52 = vector.shape_cast %51 : vector<1x16x16x4xf32> to vector<256x4xf32>
    %c8 = arith.constant 8 : index
    %c0_28 = arith.constant 0 : index
    %c0_29 = arith.constant 0 : index
    %53 = vector.load %arg2[%c8, %c0_28, %c0_29] : memref<9x4x32xf32, #tpu.memory_space<vmem>>, vector<1x4x32xf32>
    %54 = vector.shape_cast %53 : vector<1x4x32xf32> to vector<4x32xf32>
    %cst_30 = arith.constant dense<0.000000e+00> : vector<256x32xf32>
    %55 = tpu.matmul %52, %54, %cst_30 {dimension_numbers = #tpu.dot_dimension_numbers<[1], [0], [0], [1], [0, 0, 1, 1], [], []>} : vector<256x4xf32>, vector<4x32xf32>, vector<256x32xf32> -> vector<256x32xf32>
    %56 = arith.addf %50, %55 : vector<256x32xf32>
    %c0_31 = arith.constant 0 : index
    %c0_32 = arith.constant 0 : index
    %57 = vector.load %arg3[%c0_31, %c0_32] : memref<1x32xf32, #tpu.memory_space<vmem>>, vector<1x32xf32>
    %58 = vector.broadcast %57 : vector<1x32xf32> to vector<256x32xf32>
    %59 = arith.mulf %56, %58 : vector<256x32xf32>
    %c0_33 = arith.constant 0 : index
    %c0_34 = arith.constant 0 : index
    %60 = vector.load %arg4[%c0_33, %c0_34] : memref<1x32xf32, #tpu.memory_space<vmem>>, vector<1x32xf32>
    %61 = vector.broadcast %60 : vector<1x32xf32> to vector<256x32xf32>
    %62 = arith.addf %59, %61 : vector<256x32xf32>
    %cst_35 = arith.constant 0.000000e+00 : f32
    %63 = vector.broadcast %cst_35 : f32 to vector<256x32xf32>
    %64 = arith.cmpf ogt, %62, %63 : vector<256x32xf32>
    %65 = math.exp %62 : vector<256x32xf32>
    %cst_36 = arith.constant 1.000000e+00 : f32
    %66 = vector.broadcast %cst_36 : f32 to vector<256x32xf32>
    %67 = arith.subf %65, %66 : vector<256x32xf32>
    %68 = arith.select %64, %62, %67 : vector<256x32xi1>, vector<256x32xf32>
    %69 = arith.truncf %68 : vector<256x32xf32> to vector<256x32xbf16>
    %c0_37 = arith.constant 0 : index
    %c0_38 = arith.constant 0 : index
    %70 = vector.load %arg5[%c0_37, %c0_38] : memref<256x32xbf16, #tpu.memory_space<vmem>>, vector<256x32xbf16>
    tpu.vector_store %arg5[%c0_37, %c0_38], %69 {strides = array<i32>} : memref<256x32xbf16, #tpu.memory_space<vmem>>, vector<256x32xbf16>,
    return
  }
  func.func @transform_0(%arg0: i32) -> (i32, i32, i32, i32) {
    %c0_i32 = arith.constant 0 : i32
    %c0_i32_0 = arith.constant 0 : i32
    %c0_i32_1 = arith.constant 0 : i32
    %c0_i32_2 = arith.constant 0 : i32
    return %arg0, %c0_i32, %c0_i32_0, %c0_i32_1 : i32, i32, i32, i32
  }
  func.func @transform_1(%arg0: i32) -> (i32, i32, i32) {
    %c0_i32 = arith.constant 0 : i32
    %c0_i32_0 = arith.constant 0 : i32
    %c0_i32_1 = arith.constant 0 : i32
    %c0_i32_2 = arith.constant 0 : i32
    return %c0_i32, %c0_i32_0, %c0_i32_1 : i32, i32, i32
  }
  func.func @transform_2(%arg0: i32) -> (i32, i32) {
    %c0_i32 = arith.constant 0 : i32
    %c0_i32_0 = arith.constant 0 : i32
    %c0_i32_1 = arith.constant 0 : i32
    return %c0_i32, %c0_i32_0 : i32, i32
  }
  func.func @transform_3(%arg0: i32) -> (i32, i32) {
    %c0_i32 = arith.constant 0 : i32
    %c0_i32_0 = arith.constant 0 : i32
    %c0_i32_1 = arith.constant 0 : i32
    return %c0_i32, %c0_i32_0 : i32, i32
  }
  func.func @transform_4(%arg0: i32) -> (i32, i32) {
    %c0_i32 = arith.constant 0 : i32
    %c0_i32_0 = arith.constant 0 : i32
    return %arg0, %c0_i32 : i32, i32
  }
}

</mosaic_0001>

<bundles_post_ra>
// kernel: tile.18
= control target key start
LH: loop header
LB: loop body
LE: loop exit
PB: predicated region body
PF: predicated region fallthrough
CT: control target
= control target key end

     0   :  { %s22_s0 = inlined_call_operand.vmem [shape: f32[8], index: 0, kind: input, shape index: {}]   ;;  %s23_s1 = inlined_call_operand.vmem [shape: f32[4,8], index: 1, kind: output, shape index: {}]  }
   0x1   :  { %v4_v0 = vld [vmem:[%s22_s0] ss:$0 sm:$0xff] }
   0x2   :  { %5 = vst [vmem:[%s23_s1] sm:$0xf] %v4_v0 }

// kernel: tile.19
= control target key start
LH: loop header
LB: loop body
LE: loop exit
PB: predicated region body
PF: predicated region fallthrough
CT: control target
= control target key end

     0   :  { %s37_s8 = smov 8   ;;  %s38_s9 = smov 16   ;;  %vm7_vm0 = vcmask 64512   ;;  %vm13_vm1 = vcmask 261312   ;;  %vm19_vm2 = vcmask 195712   ;;  %vm25_vm3 = vcmask 130112   ;;  %s55_s0 = inlined_call_operand.vmem [shape: f32[4,8], index: 0, kind: input, shape index: {}]   ;;  %s56_s1 = inlined_call_operand.vmem [shape: f32[1,32], index: 1, kind: output, shape index: {}]  }
   0x1   :  { %v4_v0 = vld [vmem:[%s55_s0] sm:$0xf]  ;;  %s36_s0 = smov 24  }
   0x2   :  { %5 = vst [vmem:[#allocation1] sm:$0xf] %v4_v0 }
   0x9   :  { %v10_v1 = vld [vmem:[#allocation1 + $0x3] sm:$0x1]   ;;  %v22_v2 = vld [vmem:[#allocation1 + $0x1] sm:$0x1]   ;;  %v16_v3 = vld [vmem:[#allocation1 + $0x2] sm:$0x1]  }
   0xa   :  { %11 = vrot.lane.b32.xlu0 %v10_v1, %s36_s0  ;;  %23 = vrot.lane.b32.xlu1 %v22_v2, %s37_s8  ;;  %v6_v4 = vld [vmem:[#allocation1] sm:$0x1]  }
   0xb   :  { %8 = vst.msk [vmem:[#allocation0] sm:$0x1] %vm7_vm0, %v6_v4  }
  0x12   :  { %17 = vrot.lane.b32.xlu0 %v16_v3, %s38_s9 }
  0x7c   :  { %v12_v5 = vpop.permute.xlu0 %11   ;;  %v24_v6 = vpop.permute.xlu1 %23  }
  0x7d   :  { %14 = vst.msk [vmem:[#allocation0] sm:$0x1] %vm13_vm1, %v12_v5  }
  0x84   :  { %v18_v7 = vpop.permute.xlu0 %17  }
  0x85   :  { %20 = vst.msk [vmem:[#allocation0] sm:$0x1] %vm19_vm2, %v18_v7  }
  0x86   :  { %26 = vst.msk [vmem:[#allocation0] sm:$0x1] %vm25_vm3, %v24_v6  }
  0x8d   :  { %v29_v8 = vld [vmem:[#allocation0] sm:$0x1] }
  0x8e   :  { %32 = vst [vmem:[%s56_s1] sm:$0x1] %v29_v8 }

// kernel: upconv_forward.2
= control target key start
LH: loop header
LB: loop body
LE: loop exit
PB: predicated region body
PF: predicated region fallthrough
CT: control target
= control target key end

     0   :  { %s2716_s12 = smov 0   ;;  %s4260_s0 = inlined_call_operand.vmem [shape: bf16[2,18,18,4], index: 0, kind: input, shape index: {}]   ;;  %s4261_s1 = inlined_call_operand.vmem [shape: f32[9,4,32], index: 1, kind: input, shape index: {}]   ;;  %s4262_s2 = inlined_call_operand.vmem [shape: f32[16,32], index: 2, kind: output, shape index: {0}]   ;;  %s4263_s3 = inlined_call_operand.vmem [shape: f32[16,32], index: 3, kind: output, shape index: {1}]  }
   0x1 LB: > { %s2317_s13 = sadd.s32 4294967295, %s2694_s12   ;;  %p2321_p0 = scmp.ge.s32.totalorder %s2694_s12, 1  ;;  %s2694_s12 = sphi %s2716_s12, %s14_s12  }
   0x2   : > { %p140_p1 = scmp.lt.s32.totalorder %s2694_s12, 3 }
   0x4   : > { %p141_p2 = pnand %p2321_p0, %p140_p1 }
   0x6   : > { %144 = sbr.rel (%p141_p2) target bundleno = 827 (0x33b), region = 28 }
   0xb   : > { %v2325_v0 = vld [vmem:[%s4261_s1 + $0x4] sm:$0xf]  ;;  %vm485_vm0 = vcmask 1043456   ;;  %p167_p3 = scmp.lt.s32.totalorder %s2317_s13, 1  ;;  %v2392_v1 = vld [vmem:[%s4261_s1 + $0x8] sm:$0xf] }
   0xc   : > { %2676 = vmatpush.msk.msra.mxu1 %vm485_vm0, %v2325_v0  ;;  %2677 = vmatpush.msk.msra.mxu2 %vm485_vm0, %v2325_v0  ;;  %v2426_v2 = vld [vmem:[%s4261_s1 + $0xc] sm:$0xf]  ;;  %v288_v3 = vld [vmem:[%s4261_s1] sm:$0xf]  ;;  %v2460_v4 = vld [vmem:[%s4261_s1 + $0x10] sm:$0xf] }
   0xd   : > { %s4578_s13 = smov (!%p167_p3, %s2317_s13), 1  ;;  %2678 = vmatpush.msk.msra.mxu3 %vm485_vm0, %v2325_v0  ;;  %2326 = vmatpush.msk.msra.mxu0 %vm485_vm0, %v2325_v0  ;;  %vm337_vm1 = vcmask 1046528   ;;  %vm420_vm2 = vcmask 31744   ;;  %vm782_vm3 = vcmask 1045504   ;;  %vm2027_vm4 = vcmask 261120  }
   0xe   : > { %2393 = vmatpush.msk.msrb.mxu2 %vm485_vm0, %v2392_v1  ;;  %2359 = vmatpush.msk.msrb.mxu1 %vm485_vm0, %v288_v3  ;;  %s2679_s24 = smul.u32 216, %s4578_s13  ;;  %s2323_s9 = sshll.u32 %s4578_s13, 3 }
   0xf   : > { %2427 = vmatpush.msk.msrb.mxu3 %vm485_vm0, %v2426_v2  ;;  %2461 = vmatpush.msk.msrb.mxu0 %vm485_vm0, %v2460_v4  ;;  %s175_s14 = scalar_lea.vmem %s4262_s2, %s2323_s9  ;;  %s179_s17 = scalar_lea.vmem %s4263_s3, %s2323_s9 }
  0x10   : > { %s2753_s27 = scalar_lea.vmem %s4260_s0, %s2679_s24 }
  0x11   : > { %v2669_v5 = vld [vmem:[%s2753_s27 + $0x30] sm:$0xff]   ;;  %v2671_v6 = vld [vmem:[%s2753_s27 + $0x60] sm:$0xff]   ;;  %v2767_v12 = vld [vmem:[%s2753_s27 + $0x38] sm:$0x1] }
  0x12   : > { %v2673_v7 = vld [vmem:[%s2753_s27 + $0x90] sm:$0xff]   ;;  %v2758_v8 = vunpack.c.l.bf16 %v2669_v5  ;;  %v2760_v9 = vunpack.c.h.bf16 %v2669_v5  ;;  %v2762_v10 = vunpack.c.l.bf16 %v2671_v6  ;;  %v2764_v11 = vunpack.c.h.bf16 %v2671_v6  ;;  %v2770_v13 = vld [vmem:[%s2753_s27 + $0x68] sm:$0x1]  ;;  %v2633_v18 = vld [vmem:[%s2753_s27] sm:$0xff]  }
  0x13   : > { %v2772_v14 = vunpack.c.l.bf16 %v2673_v7  ;;  %v2774_v15 = vunpack.c.h.bf16 %v2673_v7  ;;  %v4269_v16 = vunpack.c.l.bf16 %v2767_v12  ;;  %v4267_v17 = vunpack.c.l.bf16 %v2770_v13  ;;  %v2784_v23 = vld [vmem:[%s2753_s27 + $0x98] sm:$0x1]  ;;  %v2799_v30 = vld [vmem:[%s2753_s27 + $0x8] sm:$0x1]  ;;  %v195_v37 = vld [vmem:[%s2753_s27 + $0x3c] sm:$0xff]  }
  0x14   : > { %4376 = vst [vmem:[#allocation2_spill] sm:$0xff] %v2760_v9  ;;  %v358_v19 = vrot.slane %v2758_v8, 1  ;;  %v359_v20 = vrot.slane %v2760_v9, 1  ;;  %v378_v21 = vrot.slane %v2762_v10, 1  ;;  %v379_v22 = vrot.slane %v2764_v11, 1  ;;  %v207_v38 = vld [vmem:[%s2753_s27 + $0x6c] sm:$0xff]  }
  0x15   : > { %4377 = vst [vmem:[#allocation3_spill] sm:$0xff] %v2762_v10  ;;  %v398_v24 = vrot.slane %v2772_v14, 1  ;;  %v399_v25 = vrot.slane %v2774_v15, 1  ;;  %v2794_v28 = vunpack.c.l.bf16 %v2633_v18  ;;  %v2796_v29 = vunpack.c.h.bf16 %v2633_v18  ;;  %v219_v42 = vld [vmem:[%s2753_s27 + $0x9c] sm:$0xff]   ;;  %v183_v53 = vld [vmem:[%s2753_s27 + $0xc] sm:$0xff]  }
  0x16   : > { %4378 = vst [vmem:[#allocation4_spill] sm:$0xff] %v2772_v14  ;;  %v2789_v26 = vsel %vm337_vm1, %v358_v19, %v359_v20  ;;  %v2792_v27 = vsel %vm337_vm1, %v378_v21, %v379_v22  ;;  %v4265_v32 = vunpack.c.l.bf16 %v2784_v23  ;;  %v361_v33 = vrot.slane %v4269_v16, 1  ;;  %v2861_v59 = vld [vmem:[%s2753_s27 + $0x44] sm:$0x1]  ;;  %v2870_v0 = vld [vmem:[%s2753_s27 + $0x74] sm:$0x1] }
  0x17   : > { %4379 = vst [vmem:[#allocation5_spill] sm:$0xff] %v2774_v15  ;;  %2335 = vmatmul.msk.f32.vlgmr.msra.gmra.mxu1 %vm420_vm2, %v2789_v26  ;;  %2343 = vmatmul.msk.f32.vlgmr.msra.gmra.mxu2 %vm420_vm2, %v2792_v27  ;;  %v2806_v31 = vsel %vm337_vm1, %v398_v24, %v399_v25  ;;  %v381_v34 = vrot.slane %v4267_v17, 1  ;;  %v338_v35 = vrot.slane %v2794_v28, 1  ;;  %v339_v36 = vrot.slane %v2796_v29, 1  ;;  %v2873_v1 = vld [vmem:[%s2753_s27 + $0xa4] sm:$0x1] }
  0x18   : > { %4380 = vst [vmem:[#allocation6_spill] sm:$0xff] %v2784_v23  ;;  %2351 = vmatmul.msk.f32.vlgmr.msra.gmra.mxu3 %vm420_vm2, %v2806_v31  ;;  %v401_v39 = vrot.slane %v4265_v32, 1  ;;  %v4271_v40 = vunpack.c.l.bf16 %v2799_v30  ;;  %v2825_v43 = vunpack.c.l.bf16 %v195_v37  ;;  %v2827_v44 = vunpack.c.h.bf16 %v195_v37  ;;  %v2964_v32 = vld [vmem:[%s2753_s27 + $0xb0] sm:$0x1] }
  0x19   : > { %4381 = vst [vmem:[#allocation7_spill] sm:$0xff] %v2792_v27  ;;  %v340_v41 = vsel %vm337_vm1, %v338_v35, %v339_v36  ;;  %v2829_v45 = vunpack.c.l.bf16 %v207_v38  ;;  %v2832_v46 = vsel %vm337_vm1, %v359_v20, %v361_v33  ;;  %v2835_v47 = vsel %vm337_vm1, %v379_v22, %v381_v34  ;;  %v2891_v20 = vld [vmem:[%s2753_s27 + $0x14] sm:$0x1]  ;;  %v2672_v33 = vld [vmem:[%s2753_s27 + $0x78] sm:$0xff]  }
  0x1a   : > { %4382 = vst [vmem:[#allocation8_spill] sm:$0xff] %v2806_v31  ;;  %2327 = vmatmul.msk.f32.vlgmr.msra.gmra.mxu0 %vm420_vm2, %v340_v41  ;;  %v2837_v48 = vunpack.c.h.bf16 %v207_v38  ;;  %v341_v49 = vrot.slane %v4271_v40, 1  ;;  %v2842_v50 = vsel %vm337_vm1, %v399_v25, %v401_v39  ;;  %v2844_v51 = vunpack.c.l.bf16 %v219_v42  ;;  %v2670_v25 = vld [vmem:[%s2753_s27 + $0x48] sm:$0xff]  }
  0x1b   : > { %4383 = vst [vmem:[#allocation9_spill] sm:$0xff] %v2825_v43  ;;  %v2846_v52 = vunpack.c.h.bf16 %v219_v42  ;;  %v363_v54 = vrot.slane %v2825_v43, 1  ;;  %v364_v55 = vrot.slane %v2827_v44, 1  ;;  %v383_v56 = vrot.slane %v2829_v45, 1  ;;  %v213_v40 = vld [vmem:[%s2753_s27 + $0x84] sm:$0xff]  }
  0x1c   : > { %4384 = vst [vmem:[#allocation10_spill] sm:$0xff] %v2827_v44  ;;  %v384_v57 = vrot.slane %v2837_v48, 1  ;;  %v342_v58 = vsel %vm337_vm1, %v339_v36, %v341_v49  ;;  %v2863_v60 = vunpack.c.l.bf16 %v183_v53  ;;  %v2865_v61 = vunpack.c.h.bf16 %v183_v53  ;;  %v2674_v36 = vld [vmem:[%s2753_s27 + $0xa8] sm:$0xff]  }
  0x1d   : > { %4385 = vst [vmem:[#allocation11_spill] sm:$0xff] %v2832_v46  ;;  %v403_v62 = vrot.slane %v2844_v51, 1  ;;  %v404_v63 = vrot.slane %v2846_v52, 1  ;;  %v2876_v2 = vsel %vm337_vm1, %v363_v54, %v364_v55  ;;  %v4268_v3 = vunpack.c.l.bf16 %v2861_v59  ;;  %v3068_v31 = vld [vmem:[%s2753_s27 + $0x8c] sm:$0x1] }
  0x1e   : > { %4386 = vst [vmem:[#allocation12_spill] sm:$0xff] %v2835_v47  ;;  %v2881_v4 = vsel %vm337_vm1, %v383_v56, %v384_v57  ;;  %v4266_v5 = vunpack.c.l.bf16 %v2870_v0  ;;  %v343_v6 = vrot.slane %v2863_v60, 1  ;;  %v344_v7 = vrot.slane %v2865_v61, 1 }
  0x1f   : > { %4387 = vst [vmem:[#allocation13_spill] sm:$0xff] %v2842_v50  ;;  %2336 = vmatmul.msk.f32.gmra.mxu1 %vm420_vm2, %v2832_v46  ;;  %2344 = vmatmul.msk.f32.gmra.mxu2 %vm420_vm2, %v2835_v47  ;;  %v2887_v18 = vsel %vm337_vm1, %v403_v62, %v404_v63  ;;  %v4264_v19 = vunpack.c.l.bf16 %v2873_v1  ;;  %v366_v21 = vrot.slane %v4268_v3, 1  ;;  %v4270_v34 = vunpack.c.l.bf16 %v2891_v20 }
  0x20   : > { %4388 = vst [vmem:[#allocation14_spill] sm:$0xff] %v2844_v51  ;;  %2352 = vmatmul.msk.f32.gmra.mxu3 %vm420_vm2, %v2842_v50  ;;  %v386_v22 = vrot.slane %v4266_v5, 1  ;;  %v2904_v24 = vsel %vm337_vm1, %v343_v6, %v344_v7  ;;  %v2914_v37 = vunpack.c.l.bf16 %v2670_v25  ;;  %v2916_v38 = vunpack.c.h.bf16 %v2670_v25  ;;  %v2528_v5 = vld [vmem:[%s4261_s1 + $0x18] sm:$0xf]  ;;  %v189_v50 = vld [vmem:[%s2753_s27 + $0x24] sm:$0xff]  }
  0x21   : > { %4389 = vst [vmem:[#allocation15_spill] sm:$0xff] %v2846_v52  ;;  %v406_v35 = vrot.slane %v4264_v19, 1  ;;  %v2918_v39 = vunpack.c.l.bf16 %v2672_v33  ;;  %v2921_v41 = vsel %vm337_vm1, %v364_v55, %v366_v21  ;;  %v2926_v49 = vunpack.c.h.bf16 %v2672_v33  ;;  %v2668_v55 = vld [vmem:[%s2753_s27 + $0x18] sm:$0xff]   ;;  %v2961_v19 = vld [vmem:[%s2753_s27 + $0x80] sm:$0x1]  ;;  %2529 = vmatpush.msk.msra.mxu2 %vm485_vm0, %v2528_v5 }
  0x22   : > { %4390 = vst [vmem:[#allocation16_spill] sm:$0xff] %v2873_v1  ;;  %2328 = vmatmul.msk.f32.gmra.mxu0 %vm420_vm2, %v342_v58  ;;  %v2924_v42 = vsel %vm337_vm1, %v384_v57, %v386_v22  ;;  %v346_v53 = vrot.slane %v4270_v34, 1  ;;  %v2933_v56 = vunpack.c.l.bf16 %v2674_v36  ;;  %v2935_v58 = vunpack.c.h.bf16 %v2674_v36  ;;  %v2952_v22 = vld [vmem:[%s2753_s27 + $0x50] sm:$0x1]  ;;  %v2983_v34 = vld [vmem:[%s2753_s27 + $0x20] sm:$0x1] }
  0x23   : > { %4391 = vst [vmem:[#allocation17_spill] sm:$0xff] %v2876_v2  ;;  %v2931_v54 = vsel %vm337_vm1, %v404_v63, %v406_v35  ;;  %v368_v57 = vrot.slane %v2914_v37, 1  ;;  %v369_v62 = vrot.slane %v2916_v38, 1  ;;  %v388_v63 = vrot.slane %v2918_v39, 1 }
  0x24   : > { %4392 = vst [vmem:[#allocation18_spill] sm:$0xff] %v2887_v18  ;;  %v389_v6 = vrot.slane %v2926_v49, 1  ;;  %v2949_v21 = vsel %vm337_vm1, %v344_v7, %v346_v53  ;;  %v2954_v25 = vunpack.c.l.bf16 %v2668_v55  ;;  %v2956_v33 = vunpack.c.h.bf16 %v2668_v55 }
  0x25   : > { %4393 = vst [vmem:[#allocation19_spill] sm:$0xff] %v2914_v37  ;;  %v408_v35 = vrot.slane %v2933_v56, 1  ;;  %v409_v36 = vrot.slane %v2935_v58, 1  ;;  %v2967_v7 = vsel %vm337_vm1, %v368_v57, %v369_v62  ;;  %v4281_v53 = vunpack.c.l.bf16 %v2952_v22 }
  0x26   : > { %4394 = vst [vmem:[#allocation20_spill] sm:$0xff] %v2916_v38  ;;  %v2973_v55 = vsel %vm337_vm1, %v388_v63, %v389_v6  ;;  %v348_v17 = vrot.slane %v2954_v25, 1  ;;  %v349_v3 = vrot.slane %v2956_v33, 1  ;;  %v201_v63 = vld [vmem:[%s2753_s27 + $0x54] sm:$0xff]   ;;  %v4405_v57 = vunpack.c.l.bf16 %v2961_v19 }
  0x27   : > { %2337 = vmatmul.msk.f32.gmra.mxu1 %vm420_vm2, %v2876_v2  ;;  %2345 = vmatmul.msk.f32.gmra.mxu2 %vm420_vm2, %v2881_v4  ;;  %4395 = vst [vmem:[#allocation21_spill] sm:$0xff] %v2921_v41  ;;  %v2979_v16 = vsel %vm337_vm1, %v408_v35, %v409_v36  ;;  %v371_v35 = vrot.slane %v4281_v53, 1  ;;  %v4406_v53 = vunpack.c.l.bf16 %v2964_v32  ;;  %v3018_v5 = vunpack.c.l.bf16 %v201_v63 }
  0x28   : > { %2353 = vmatmul.msk.f32.gmra.mxu3 %vm420_vm2, %v2887_v18  ;;  %4396 = vst [vmem:[#allocation22_spill] sm:$0xff] %v2926_v49  ;;  %v3001_v1 = vsel %vm337_vm1, %v348_v17, %v349_v3  ;;  %v225_v17 = vld [vmem:[%s2753_s27 + $0xb4] sm:$0xff]  }
  0x29   : > { %4397 = vst [vmem:[#allocation23_spill] sm:$0xff] %v2931_v54  ;;  %v411_v52 = vrot.slane %v4406_v53, 1  ;;  %v3025_v18 = vsel %vm337_vm1, %v369_v62, %v371_v35  ;;  %v3037_v51 = vunpack.c.l.bf16 %v225_v17  ;;  %v3058_v35 = vunpack.c.l.bf16 %v189_v50 }
  0x2a   : > { %2329 = vmatmul.msk.f32.gmra.mxu0 %vm420_vm2, %v2904_v24  ;;  %4398 = vst [vmem:[#allocation24_spill] sm:$0xff] %v2933_v56  ;;  %v3022_v56 = vunpack.c.l.bf16 %v213_v40 }
  0x2b   : > { %4399 = vst [vmem:[#allocation25_spill] sm:$0xff] %v2935_v58  ;;  %v391_v58 = vrot.slane %v4405_v57, 1  ;;  %v3020_v57 = vunpack.c.h.bf16 %v201_v63  ;;  %v3035_v23 = vsel %vm337_vm1, %v409_v36, %v411_v52  ;;  %v3039_v63 = vunpack.c.h.bf16 %v225_v17  ;;  %v3056_v36 = vld [vmem:[%s2753_s27 + $0x5c] sm:$0x1] }
  0x2c   : > { %4400 = vst [vmem:[#allocation26_spill] sm:$0xff] %v2961_v19  ;;  %v393_v52 = vrot.slane %v3022_v56, 1  ;;  %v3060_v17 = vunpack.c.h.bf16 %v189_v50  ;;  %v413_v15 = vrot.slane %v3037_v51, 1  ;;  %v4317_v50 = vunpack.c.l.bf16 %v3056_v36  ;;  %v3091_v19 = vld [vmem:[%s2753_s27 + $0x2c] sm:$0x1] }
  0x2d   : > { %4401 = vst [vmem:[#allocation27_spill] sm:$0xff] %v2964_v32  ;;  %v3028_v53 = vsel %vm337_vm1, %v389_v6, %v391_v58  ;;  %v374_v58 = vrot.slane %v3020_v57, 1 }
  0x2e   : > { %4402 = vst [vmem:[#allocation28_spill] sm:$0xff] %v2967_v7 }
  0x2f   : > { %2338 = vmatmul.msk.f32.gmra.mxu1 %vm420_vm2, %v2921_v41  ;;  %2346 = vmatmul.msk.f32.gmra.mxu2 %vm420_vm2, %v2924_v42  ;;  %4403 = vst [vmem:[#allocation29_spill] sm:$0xff] %v2973_v55 }
  0x30   : > { %2354 = vmatmul.msk.f32.gmra.mxu3 %vm420_vm2, %v2931_v54  ;;  %4404 = vst [vmem:[#allocation30_spill] sm:$0xff] %v2979_v16  ;;  %v2562_v54 = vld [vmem:[%s4261_s1 + $0x1c] sm:$0xf] }
  0x31   : > { %2563 = vmatpush.msk.msra.mxu3 %vm485_vm0, %v2562_v54  ;;  %4407 = vst [vmem:[#allocation31_spill] sm:$0xff] %v3018_v5  ;;  %v3030_v54 = vunpack.c.h.bf16 %v213_v40  ;;  %v373_v40 = vrot.slane %v3018_v5, 1 }
  0x32   : > { %2330 = vmatmul.msk.f32.gmra.mxu0 %vm420_vm2, %v2949_v21  ;;  %4408 = vst [vmem:[#allocation32_spill] sm:$0xff] %v3020_v57 }
  0x33   : > { %4409 = vst [vmem:[#allocation33_spill] sm:$0xff] %v3022_v56  ;;  %v394_v62 = vrot.slane %v3030_v54, 1 }
  0x34   : > { %4410 = vst [vmem:[#allocation34_spill] sm:$0xff] %v3025_v18 }
  0x35   : > { %4411 = vst [vmem:[#allocation35_spill] sm:$0xff] %v3028_v53  ;;  %v3081_v14 = vsel %vm337_vm1, %v393_v52, %v394_v62  ;;  %v376_v52 = vrot.slane %v4317_v50, 1 }
  0x36   : > { %4412 = vst [vmem:[#allocation36_spill] sm:$0xff] %v3030_v54  ;;  %v354_v54 = vrot.slane %v3060_v17, 1 }
  0x37   : > { %2339 = vmatmul.msk.f32.gmra.mxu1 %vm420_vm2, %v2967_v7  ;;  %2347 = vmatmul.msk.f32.gmra.mxu2 %vm420_vm2, %v2973_v55  ;;  %4414 = vst [vmem:[#allocation37_spill] sm:$0xff] %v3035_v23 }
  0x38   : > { %2355 = vmatmul.msk.f32.gmra.mxu3 %vm420_vm2, %v2979_v16  ;;  %v2494_v16 = vld [vmem:[%s4261_s1 + $0x14] sm:$0xf]  ;;  %4415 = vst [vmem:[#allocation38_spill] sm:$0xff] %v3037_v51  ;;  %v4318_v51 = vunpack.c.l.bf16 %v3068_v31 }
  0x39   : > { %2495 = vmatpush.msk.msra.mxu1 %vm485_vm0, %v2494_v16  ;;  %v4413_v16 = vunpack.c.l.bf16 %v2983_v34  ;;  %4416 = vst [vmem:[#allocation39_spill] sm:$0xff] %v3039_v63 }
  0x3a   : > { %2331 = vmatmul.msk.f32.gmra.mxu0 %vm420_vm2, %v3001_v1  ;;  %4418 = vst [vmem:[#allocation41_spill] sm:$0xff] %v3081_v14 }
  0x3b   : > { %v351_v32 = vrot.slane %v4413_v16, 1  ;;  %v2596_v16 = vld [vmem:[%s4261_s1 + $0x20] sm:$0xf] }
  0x3c   : > { %2597 = vmatpush.msk.msra.mxu0 %vm485_vm0, %v2596_v16 }
  0x3d   : > { %v3053_v6 = vsel %vm337_vm1, %v349_v3, %v351_v32  ;;  %v3072_v32 = vld [vmem:[%s2753_s27 + $0xbc] sm:$0x1]  ;;  %v3075_v3 = vsel %vm337_vm1, %v373_v40, %v374_v58  ;;  %v245_v40 = vunpack.c.l.bf16 %v3091_v19  ;;  %v783_v19 = vrot.slane %v2794_v28, 2 }
  0x3e   : > { %4417 = vst [vmem:[#allocation40_spill] sm:$0xff] %v3075_v3 }
  0x3f   : > { %2340 = vmatmul.msk.f32.gmra.mxu1 %vm420_vm2, %v3025_v18  ;;  %2348 = vmatmul.msk.f32.gmra.mxu2 %vm420_vm2, %v3028_v53  ;;  %v4420_v53 = vunpack.c.l.bf16 %v3072_v32  ;;  %v356_v50 = vrot.slane %v245_v40, 1 }
  0x40   : > { %2356 = vmatmul.msk.f32.gmra.mxu3 %vm420_vm2, %v3035_v23  ;;  %v414_v23 = vrot.slane %v3039_v63, 1  ;;  %v353_v63 = vrot.slane %v3058_v35, 1 }
  0x41   : > { %v416_v49 = vrot.slane %v4420_v53, 1  ;;  %v784_v53 = vrot.slane %v2796_v29, 2 }
  0x42   : > { %2332 = vmatmul.msk.f32.gmra.mxu0 %vm420_vm2, %v3053_v6  ;;  %v3087_v16 = vsel %vm337_vm1, %v413_v15, %v414_v23  ;;  %v396_v15 = vrot.slane %v4318_v51, 1  ;;  %v3104_v56 = vsel %vm337_vm1, %v353_v63, %v354_v54  ;;  %v3129_v63 = vsel %vm337_vm1, %v354_v54, %v356_v50 }
  0x43   : > { %4419 = vst [vmem:[#allocation42_spill] sm:$0xff] %v3087_v16  ;;  %v3118_v51 = vsel %vm337_vm1, %v414_v23, %v416_v49  ;;  %v785_v23 = vsel %vm782_vm3, %v783_v19, %v784_v53  ;;  %v4423_v49 = vunpack.c.l.bf16 %v2799_v30  ;;  %v798_v19 = vrot.slane %v3058_v35, 2 }
  0x47   : > { %2341 = vmatmul.msk.f32.gmra.mxu1 %vm420_vm2, %v3075_v3  ;;  %2349 = vmatmul.msk.f32.gmra.mxu2 %vm420_vm2, %v3081_v14  ;;  %v3112_v14 = vsel %vm337_vm1, %v374_v58, %v376_v52  ;;  %v786_v58 = vrot.slane %v4423_v49, 2 }
  0x48   : > { %2357 = vmatmul.msk.f32.gmra.mxu3 %vm420_vm2, %v3087_v16  ;;  %4421 = vst [vmem:[#allocation43_spill] sm:$0xff] %v3112_v14  ;;  %v3115_v16 = vsel %vm337_vm1, %v394_v62, %v396_v15  ;;  %v789_v62 = vrot.slane %v2865_v61, 2 }
  0x49   : > { %4422 = vst [vmem:[#allocation44_spill] sm:$0xff] %v3115_v16  ;;  %v787_v54 = vsel %vm782_vm3, %v784_v53, %v786_v58  ;;  %v803_v58 = vrot.slane %v2758_v8, 2 }
  0x4a   : > { %2333 = vmatmul.msk.f32.gmra.mxu0 %vm420_vm2, %v3104_v56 }
  0x4f   : > { %2342 = vmatmul.msk.f32.gmra.mxu1 %vm420_vm2, %v3112_v14  ;;  %2350 = vmatmul.msk.f32.gmra.mxu2 %vm420_vm2, %v3115_v16 }
  0x50   : > { %2358 = vmatmul.msk.f32.gmra.mxu3 %vm420_vm2, %v3118_v51 }
  0x52   : > { %2334 = vmatmul.msk.f32.gmra.mxu0 %vm420_vm2, %v3129_v63 }
  0x57   : > { %2360 = vmatmul.msk.f32.vlgmr.msrb.gmra.mxu1 %vm420_vm2, %v2794_v28  ;;  %2394 = vmatmul.msk.f32.vlgmr.msrb.gmra.mxu2 %vm420_vm2, %v785_v23  ;;  %v788_v28 = vrot.slane %v2863_v60, 2  ;;  %v801_v23 = vrot.slane %v245_v40, 2 }
  0x58   : > { %2428 = vmatmul.msk.f32.vlgmr.msrb.gmra.mxu3 %vm420_vm2, %v2863_v60 }
  0x59   : > { %v3154_v30 = vsel %vm782_vm3, %v788_v28, %v789_v62 }
  0x5a   : > { %2462 = vmatmul.msk.f32.vlgmr.msrb.gmra.mxu0 %vm420_vm2, %v2904_v24 }
  0x5f   : > { %2361 = vmatmul.msk.f32.gmra.mxu1 %vm420_vm2, %v2796_v29  ;;  %2395 = vmatmul.msk.f32.gmra.mxu2 %vm420_vm2, %v787_v54  ;;  %v4424_v29 = vunpack.c.l.bf16 %v2891_v20  ;;  %v794_v20 = vrot.slane %v2956_v33, 2  ;;  %v804_v54 = vrot.slane %v2760_v9, 2 }
  0x60   : > { %2429 = vmatmul.msk.f32.gmra.mxu3 %vm420_vm2, %v2865_v61 }
  0x61   : > { %v791_v24 = vrot.slane %v4424_v29, 2  ;;  %v3232_v28 = vsel %vm782_vm3, %v803_v58, %v804_v54  ;;  %v4426_v29 = vunpack.c.l.bf16 %v2767_v12 }
  0x62   : > { %2463 = vmatmul.msk.f32.gmra.mxu0 %vm420_vm2, %v2949_v21 }
  0x63   : > { %v3167_v21 = vsel %vm782_vm3, %v789_v62, %v791_v24  ;;  %v806_v24 = vrot.slane %v4426_v29, 2 }
  0x67   : > { %2362 = vmatmul.msk.f32.gmra.mxu1 %vm420_vm2, %v2863_v60  ;;  %2396 = vmatmul.msk.f32.gmra.mxu2 %vm420_vm2, %v3154_v30  ;;  %v793_v60 = vrot.slane %v2954_v25, 2 }
  0x68   : > { %2430 = vmatmul.msk.f32.gmra.mxu3 %vm420_vm2, %v2954_v25 }
  0x69   : > { %v3180_v50 = vsel %vm782_vm3, %v793_v60, %v794_v20 }
  0x6a   : > { %2464 = vmatmul.msk.f32.gmra.mxu0 %vm420_vm2, %v3001_v1 }
  0x6f   : > { %2363 = vmatmul.msk.f32.gmra.mxu1 %vm420_vm2, %v2865_v61  ;;  %2397 = vmatmul.msk.f32.gmra.mxu2 %vm420_vm2, %v3167_v21  ;;  %v4425_v61 = vunpack.c.l.bf16 %v2983_v34  ;;  %v799_v34 = vrot.slane %v3060_v17, 2 }
  0x70   : > { %2431 = vmatmul.msk.f32.gmra.mxu3 %vm420_vm2, %v2956_v33 }
  0x71   : > { %v796_v52 = vrot.slane %v4425_v61, 2  ;;  %v3206_v53 = vsel %vm782_vm3, %v798_v19, %v799_v34  ;;  %v3217_v49 = vsel %vm782_vm3, %v799_v34, %v801_v23  ;;  %v808_v19 = vrot.slane %v2825_v43, 2 }
  0x72   : > { %2465 = vmatmul.msk.f32.gmra.mxu0 %vm420_vm2, %v3053_v6  ;;  %v809_v34 = vrot.slane %v2827_v44, 2 }
  0x73   : > { %v3193_v15 = vsel %vm782_vm3, %v794_v20, %v796_v52  ;;  %v3253_v52 = vsel %vm782_vm3, %v804_v54, %v806_v24 }
  0x74   : > { %4428 = vst [vmem:[#allocation46_spill] sm:$0xff] %v3253_v52  ;;  %v3274_v29 = vsel %vm782_vm3, %v808_v19, %v809_v34 }
  0x75   : > { %4430 = vst [vmem:[#allocation48_spill] sm:$0xff] %v3274_v29 }
  0x77   : > { %2364 = vmatmul.msk.f32.gmra.mxu1 %vm420_vm2, %v2954_v25  ;;  %2398 = vmatmul.msk.f32.gmra.mxu2 %vm420_vm2, %v3180_v50 }
  0x78   : > { %2432 = vmatmul.msk.f32.gmra.mxu3 %vm420_vm2, %v3058_v35 }
  0x7a   : > { %2466 = vmatmul.msk.f32.gmra.mxu0 %vm420_vm2, %v3104_v56 }
  0x7f   : > { %2365 = vmatmul.msk.f32.gmra.mxu1 %vm420_vm2, %v2956_v33  ;;  %2399 = vmatmul.msk.f32.gmra.mxu2 %vm420_vm2, %v3193_v15 }
  0x80   : > { %2433 = vmatmul.msk.f32.gmra.mxu3 %vm420_vm2, %v3060_v17 }
  0x82   : > { %2467 = vmatmul.msk.f32.gmra.mxu0 %vm420_vm2, %v3129_v63 }
  0x87   : > { %2366 = vmatmul.msk.f32.gmra.mxu1 %vm420_vm2, %v3058_v35  ;;  %2400 = vmatmul.msk.f32.gmra.mxu2 %vm420_vm2, %v3206_v53 }
  0x88   : > { %2434 = vmatmul.msk.f32.gmra.mxu3 %vm420_vm2, %v2758_v8 }
  0x8a   : > { %2468 = vmatmul.msk.f32.gmra.mxu0 %vm420_vm2, %v2789_v26 }
  0x8f   : > { %2367 = vmatmul.msk.f32.gmra.mxu1 %vm420_vm2, %v3060_v17  ;;  %2401 = vmatmul.msk.f32.gmra.mxu2 %vm420_vm2, %v3217_v49 }
  0x90   : > { %2435 = vmatmul.msk.f32.gmra.mxu3 %vm420_vm2, %v2760_v9 }
  0x92   : > { %2469 = vmatmul.msk.f32.gmra.mxu0 %vm420_vm2, %v2832_v46 }
  0x94   : > { %v3229_v40 = vpop.f32.mrf.mxu1 }
  0x97   : > { %2368 = vmatmul.msk.f32.gmra.mxu1 %vm420_vm2, %v2758_v8  ;;  %2402 = vmatmul.msk.f32.gmra.mxu2 %vm420_vm2, %v3232_v28  ;;  %v3240_v62 = vpop.f32.mrf.mxu0 }
  0x98   : > { %2436 = vmatmul.msk.f32.gmra.mxu3 %vm420_vm2, %v2825_v43 }
  0x9a   : > { %v3244_v60 = vpop.f32.mrf.mxu2  ;;  %2470 = vmatmul.msk.f32.gmra.mxu0 %vm420_vm2, %v2876_v2 }
  0x9b   : > { %v3246_v20 = vpop.f32.mrf.mxu3 }
  0x9c   : > { %4427 = vst [vmem:[#allocation45_spill] sm:$0xff] %v3246_v20  ;;  %v3250_v61 = vpop.f32.mrf.mxu1 }
  0x9f   : > { %2369 = vmatmul.msk.f32.gmra.mxu1 %vm420_vm2, %v2760_v9  ;;  %2403 = vmatmul.msk.f32.gmra.mxu2 %vm420_vm2, %v3253_v52  ;;  %v3261_v12 = vpop.f32.mrf.mxu0 }
  0xa0   : > { %2437 = vmatmul.msk.f32.gmra.mxu3 %vm420_vm2, %v2827_v44 }
  0xa2   : > { %v3265_v23 = vpop.f32.mrf.mxu2  ;;  %2471 = vmatmul.msk.f32.gmra.mxu0 %vm420_vm2, %v2921_v41 }
  0xa3   : > { %v3267_v58 = vpop.f32.mrf.mxu3 }
  0xa4   : > { %4429 = vst [vmem:[#allocation47_spill] sm:$0xff] %v3267_v58  ;;  %v3271_v54 = vpop.f32.mrf.mxu1  ;;  %v4431_v58 = vunpack.c.l.bf16 %v2861_v59 }
  0xa6   : > { %v811_v20 = vrot.slane %v4431_v58, 2  ;;  %v813_v58 = vrot.slane %v2914_v37, 2 }
  0xa7   : > { %2370 = vmatmul.msk.f32.gmra.mxu1 %vm420_vm2, %v2825_v43  ;;  %2404 = vmatmul.msk.f32.gmra.mxu2 %vm420_vm2, %v3274_v29  ;;  %v3282_v24 = vpop.f32.mrf.mxu0 }
  0xa8   : > { %2438 = vmatmul.msk.f32.gmra.mxu3 %vm420_vm2, %v2914_v37  ;;  %v3295_v43 = vsel %vm782_vm3, %v809_v34, %v811_v20 }
  0xa9   : > { %4433 = vst [vmem:[#allocation50_spill] sm:$0xff] %v3295_v43 }
  0xaa   : > { %v3286_v41 = vpop.f32.mrf.mxu2  ;;  %2472 = vmatmul.msk.f32.gmra.mxu0 %vm420_vm2, %v2967_v7 }
  0xab   : > { %v3288_v2 = vpop.f32.mrf.mxu3 }
  0xac   : > { %4432 = vst [vmem:[#allocation49_spill] sm:$0xff] %v3288_v2  ;;  %v3292_v19 = vpop.f32.mrf.mxu1  ;;  %v814_v2 = vrot.slane %v2916_v38, 2 }
  0xae   : > { %v3316_v34 = vsel %vm782_vm3, %v813_v58, %v814_v2 }
  0xaf   : > { %2371 = vmatmul.msk.f32.gmra.mxu1 %vm420_vm2, %v2827_v44  ;;  %2405 = vmatmul.msk.f32.gmra.mxu2 %vm420_vm2, %v3295_v43  ;;  %v3303_v59 = vpop.f32.mrf.mxu0  ;;  %4435 = vst [vmem:[#allocation52_spill] sm:$0xff] %v3316_v34 }
  0xb0   : > { %2439 = vmatmul.msk.f32.gmra.mxu3 %vm420_vm2, %v2916_v38 }
  0xb2   : > { %v3307_v7 = vpop.f32.mrf.mxu2  ;;  %2473 = vmatmul.msk.f32.gmra.mxu0 %vm420_vm2, %v3025_v18 }
  0xb3   : > { %v3309_v29 = vpop.f32.mrf.mxu3 }
  0xb4   : > { %4434 = vst [vmem:[#allocation51_spill] sm:$0xff] %v3309_v29  ;;  %v3313_v20 = vpop.f32.mrf.mxu1  ;;  %v4436_v29 = vunpack.c.l.bf16 %v2952_v22 }
  0xb6   : > { %v816_v44 = vrot.slane %v4436_v29, 2  ;;  %v818_v29 = vrot.slane %v3018_v5, 2 }
  0xb7   : > { %2372 = vmatmul.msk.f32.gmra.mxu1 %vm420_vm2, %v2914_v37  ;;  %2406 = vmatmul.msk.f32.gmra.mxu2 %vm420_vm2, %v3316_v34  ;;  %v3324_v43 = vpop.f32.mrf.mxu0 }
  0xb8   : > { %2440 = vmatmul.msk.f32.gmra.mxu3 %vm420_vm2, %v3018_v5  ;;  %v3337_v37 = vsel %vm782_vm3, %v814_v2, %v816_v44 }
  0xb9   : > { %4438 = vst [vmem:[#allocation54_spill] sm:$0xff] %v3337_v37 }
  0xba   : > { %v3328_v18 = vpop.f32.mrf.mxu2  ;;  %2474 = vmatmul.msk.f32.gmra.mxu0 %vm420_vm2, %v3075_v3 }
  0xbb   : > { %v3330_v52 = vpop.f32.mrf.mxu3 }
  0xbc   : > { %4437 = vst [vmem:[#allocation53_spill] sm:$0xff] %v3330_v52  ;;  %v3334_v58 = vpop.f32.mrf.mxu1  ;;  %v819_v52 = vrot.slane %v3020_v57, 2 }
  0xbe   : > { %v3358_v2 = vsel %vm782_vm3, %v818_v29, %v819_v52 }
  0xbf   : > { %2373 = vmatmul.msk.f32.gmra.mxu1 %vm420_vm2, %v2916_v38  ;;  %2407 = vmatmul.msk.f32.gmra.mxu2 %vm420_vm2, %v3337_v37  ;;  %v3345_v22 = vpop.f32.mrf.mxu0  ;;  %4441 = vst [vmem:[#allocation57_spill] sm:$0xff] %v3358_v2 }
  0xc0   : > { %2441 = vmatmul.msk.f32.gmra.mxu3 %vm420_vm2, %v3020_v57 }
  0xc2   : > { %v3349_v3 = vpop.f32.mrf.mxu2  ;;  %2475 = vmatmul.msk.f32.gmra.mxu0 %vm420_vm2, %v3112_v14 }
  0xc3   : > { %4439 = vst [vmem:[#allocation55_spill] sm:$0xff] %v3349_v3  ;;  %v3351_v34 = vpop.f32.mrf.mxu3 }
  0xc4   : > { %4440 = vst [vmem:[#allocation56_spill] sm:$0xff] %v3351_v34  ;;  %v3355_v44 = vpop.f32.mrf.mxu1  ;;  %v4442_v34 = vunpack.c.l.bf16 %v3056_v36 }
  0xc6   : > { %v821_v38 = vrot.slane %v4442_v34, 2  ;;  %v823_v34 = vrot.slane %v2762_v10, 2 }
  0xc7   : > { %2374 = vmatmul.msk.f32.gmra.mxu1 %vm420_vm2, %v3018_v5  ;;  %2408 = vmatmul.msk.f32.gmra.mxu2 %vm420_vm2, %v3358_v2  ;;  %v3366_v37 = vpop.f32.mrf.mxu0 }
  0xc8   : > { %2442 = vmatmul.msk.f32.gmra.mxu3 %vm420_vm2, %v2762_v10  ;;  %v3379_v5 = vsel %vm782_vm3, %v819_v52, %v821_v38 }
  0xc9   : > { %4445 = vst [vmem:[#allocation60_spill] sm:$0xff] %v3379_v5 }
  0xca   : > { %v3370_v14 = vpop.f32.mrf.mxu2  ;;  %2476 = vmatmul.msk.f32.gmra.mxu0 %vm420_vm2, %v2792_v27 }
  0xcb   : > { %4443 = vst [vmem:[#allocation58_spill] sm:$0xff] %v3370_v14  ;;  %v3372_v3 = vpop.f32.mrf.mxu3 }
  0xcc   : > { %4444 = vst [vmem:[#allocation59_spill] sm:$0xff] %v3372_v3  ;;  %v3376_v29 = vpop.f32.mrf.mxu1  ;;  %v824_v3 = vrot.slane %v2764_v11, 2 }
  0xce   : > { %v3398_v52 = vsel %vm782_vm3, %v823_v34, %v824_v3 }
  0xcf   : > { %2375 = vmatmul.msk.f32.gmra.mxu1 %vm420_vm2, %v3020_v57  ;;  %2409 = vmatmul.msk.f32.gmra.mxu2 %vm420_vm2, %v3379_v5  ;;  %v3387_v36 = vpop.f32.mrf.mxu0  ;;  %4448 = vst [vmem:[#allocation63_spill] sm:$0xff] %v3398_v52  ;;  %v4449_v57 = vunpack.c.l.bf16 %v2770_v13 }
  0xd0   : > { %2443 = vmatmul.msk.f32.gmra.mxu3 %vm420_vm2, %v2764_v11 }
  0xd2   : > { %v3391_v27 = vpop.f32.mrf.mxu2  ;;  %2477 = vmatmul.msk.f32.gmra.mxu0 %vm420_vm2, %v2835_v47 }
  0xd3   : > { %4446 = vst [vmem:[#allocation61_spill] sm:$0xff] %v3391_v27  ;;  %v3393_v2 = vpop.f32.mrf.mxu3 }
  0xd4   : > { %4447 = vst [vmem:[#allocation62_spill] sm:$0xff] %v3393_v2  ;;  %v686_v38 = vpop.f32.mrf.mxu1  ;;  %v826_v2 = vrot.slane %v4449_v57, 2 }
  0xd5   : > { %v687_v27 = vadd.f32 %v686_v38, %v3240_v62 }
  0xd7   : > { %2376 = vmatmul.msk.f32.gmra.mxu1 %vm420_vm2, %v2762_v10  ;;  %2410 = vmatmul.msk.f32.gmra.mxu2 %vm420_vm2, %v3398_v52  ;;  %v1265_v5 = vpop.f32.mrf.mxu0  ;;  %v3412_v10 = vsel %vm782_vm3, %v824_v3, %v826_v2 }
  0xd8   : > { %2444 = vmatmul.msk.f32.gmra.mxu3 %vm420_vm2, %v2829_v45 }
  0xda   : > { %v949_v47 = vpop.f32.mrf.mxu2  ;;  %2478 = vmatmul.msk.f32.gmra.mxu0 %vm420_vm2, %v2881_v4 }
  0xdb   : > { %v1045_v14 = vadd.f32 %v949_v47, %v687_v27  ;;  %v1105_v46 = vpop.f32.mrf.mxu3  ;;  %v828_v27 = vrot.slane %v2829_v45, 2  ;;  %v829_v47 = vrot.slane %v2837_v48, 2 }
  0xdc   : > { %v689_v34 = vpop.f32.mrf.mxu1 }
  0xdd   : > { %v1201_v52 = vadd.f32 %v1105_v46, %v1045_v14  ;;  %v690_v57 = vadd.f32 %v689_v34, %v3261_v12  ;;  %v3428_v62 = vsel %vm782_vm3, %v828_v27, %v829_v47 }
  0xdf   : > { %v3414_v9 = vadd.f32 %v1265_v5, %v1201_v52  ;;  %2377 = vmatmul.msk.f32.gmra.mxu1 %vm420_vm2, %v2764_v11  ;;  %2411 = vmatmul.msk.f32.gmra.mxu2 %vm420_vm2, %v3412_v10  ;;  %v1268_v13 = vpop.f32.mrf.mxu0  ;;  %v4452_v52 = vunpack.c.l.bf16 %v2870_v0  ;;  %v4454_v0 = vld [vmem:[#allocation22_spill] sm:$0xff] }
  0xe0   : > { %2445 = vmatmul.msk.f32.gmra.mxu3 %vm420_vm2, %v2837_v48 }
  0xe1   : > { %4450 = vst [vmem:[#allocation64_spill] sm:$0xff] %v3414_v9  ;;  %v831_v34 = vrot.slane %v4452_v52, 2  ;;  %v834_v52 = vrot.slane %v4454_v0, 2 }
  0xe2   : > { %v952_v3 = vpop.f32.mrf.mxu2  ;;  %2479 = vmatmul.msk.f32.gmra.mxu0 %vm420_vm2, %v2924_v42 }
  0xe3   : > { %v1046_v14 = vadd.f32 %v952_v3, %v690_v57  ;;  %v1108_v46 = vpop.f32.mrf.mxu3 }
  0xe4   : > { %v692_v5 = vpop.f32.mrf.mxu1 }
  0xe5   : > { %v1202_v2 = vadd.f32 %v1108_v46, %v1046_v14  ;;  %v693_v57 = vadd.f32 %v692_v5, %v3282_v24  ;;  %v3444_v46 = vsel %vm782_vm3, %v829_v47, %v831_v34  ;;  %v833_v5 = vrot.slane %v2918_v39, 2 }
  0xe7   : > { %v3430_v38 = vadd.f32 %v1268_v13, %v1202_v2  ;;  %2378 = vmatmul.msk.f32.gmra.mxu1 %vm420_vm2, %v2829_v45  ;;  %2412 = vmatmul.msk.f32.gmra.mxu2 %vm420_vm2, %v3428_v62  ;;  %v1271_v12 = vpop.f32.mrf.mxu0 }
  0xe8   : > { %2446 = vmatmul.msk.f32.gmra.mxu3 %vm420_vm2, %v2918_v39 }
  0xe9   : > { %4451 = vst [vmem:[#allocation65_spill] sm:$0xff] %v3430_v38 }
  0xea   : > { %v955_v27 = vpop.f32.mrf.mxu2  ;;  %2480 = vmatmul.msk.f32.gmra.mxu0 %vm420_vm2, %v2973_v55 }
  0xeb   : > { %v1047_v3 = vadd.f32 %v955_v27, %v693_v57  ;;  %v1111_v14 = vpop.f32.mrf.mxu3  ;;  %v4455_v27 = vld [vmem:[#allocation35_spill] sm:$0xff] }
  0xec   : > { %v695_v13 = vpop.f32.mrf.mxu1 }
  0xed   : > { %v1203_v2 = vadd.f32 %v1111_v14, %v1047_v3  ;;  %v696_v47 = vadd.f32 %v695_v13, %v3303_v59  ;;  %v3460_v14 = vsel %vm782_vm3, %v833_v5, %v834_v52  ;;  %v4458_v59 = vld [vmem:[#allocation33_spill] sm:$0xff] }
  0xee   : > { %4456 = vst [vmem:[#allocation22_spill] sm:$0xff] %v3460_v14 }
  0xef   : > { %v3446_v38 = vadd.f32 %v1271_v12, %v1203_v2  ;;  %2379 = vmatmul.msk.f32.gmra.mxu1 %vm420_vm2, %v2837_v48  ;;  %2413 = vmatmul.msk.f32.gmra.mxu2 %vm420_vm2, %v3444_v46  ;;  %v1274_v24 = vpop.f32.mrf.mxu0 }
  0xf0   : > { %2447 = vmatmul.msk.f32.gmra.mxu3 %vm420_vm2, %v4454_v0 }
  0xf1   : > { %4453 = vst [vmem:[#allocation66_spill] sm:$0xff] %v3446_v38 }
  0xf2   : > { %v958_v34 = vpop.f32.mrf.mxu2  ;;  %2481 = vmatmul.msk.f32.gmra.mxu0 %vm420_vm2, %v4455_v27 }
  0xf3   : > { %v1048_v57 = vadd.f32 %v958_v34, %v696_v47  ;;  %v1114_v12 = vpop.f32.mrf.mxu3  ;;  %v4459_v47 = vld [vmem:[#allocation26_spill] sm:$0xff] }
  0xf4   : > { %v698_v3 = vpop.f32.mrf.mxu1  ;;  %v4460_v34 = vunpack.c.l.bf16 %v4459_v47 }
  0xf5   : > { %v1204_v2 = vadd.f32 %v1114_v12, %v1048_v57  ;;  %v699_v9 = vadd.f32 %v698_v3, %v3324_v43  ;;  %v4463_v43 = vld [vmem:[#allocation36_spill] sm:$0xff]  ;;  %v838_v3 = vrot.slane %v4458_v59, 2 }
  0xf6   : > { %v836_v27 = vrot.slane %v4460_v34, 2  ;;  %v839_v47 = vrot.slane %v4463_v43, 2 }
  0xf7   : > { %v3462_v38 = vadd.f32 %v1274_v24, %v1204_v2  ;;  %2380 = vmatmul.msk.f32.gmra.mxu1 %vm420_vm2, %v2918_v39  ;;  %2414 = vmatmul.msk.f32.gmra.mxu2 %vm420_vm2, %v3460_v14  ;;  %v1277_v13 = vpop.f32.mrf.mxu0  ;;  %v4461_v24 = vld [vmem:[#allocation41_spill] sm:$0xff] }
  0xf8   : > { %2448 = vmatmul.msk.f32.gmra.mxu3 %vm420_vm2, %v4458_v59  ;;  %v3476_v2 = vsel %vm782_vm3, %v834_v52, %v836_v27  ;;  %v3492_v34 = vsel %vm782_vm3, %v838_v3, %v839_v47 }
  0xf9   : > { %4457 = vst [vmem:[#allocation67_spill] sm:$0xff] %v3462_v38 }
  0xfa   : > { %v961_v5 = vpop.f32.mrf.mxu2  ;;  %2482 = vmatmul.msk.f32.gmra.mxu0 %vm420_vm2, %v4461_v24  ;;  %4464 = vst [vmem:[#allocation26_spill] sm:$0xff] %v3492_v34 }
  0xfb   : > { %v1049_v55 = vadd.f32 %v961_v5, %v699_v9  ;;  %v1117_v57 = vpop.f32.mrf.mxu3 }
  0xfc   : > { %v701_v12 = vpop.f32.mrf.mxu1 }
  0xfd   : > { %v1205_v38 = vadd.f32 %v1117_v57, %v1049_v55  ;;  %v702_v52 = vadd.f32 %v701_v12, %v3345_v22  ;;  %v4466_v22 = vld [vmem:[#allocation4_spill] sm:$0xff] }
  0xff   : > { %v3478_v14 = vadd.f32 %v1277_v13, %v1205_v38  ;;  %2381 = vmatmul.msk.f32.gmra.mxu1 %vm420_vm2, %v4454_v0  ;;  %2415 = vmatmul.msk.f32.gmra.mxu2 %vm420_vm2, %v3476_v2  ;;  %v1280_v9 = vpop.f32.mrf.mxu0 }
 0x100   : > { %2449 = vmatmul.msk.f32.gmra.mxu3 %vm420_vm2, %v4463_v43 }
 0x101   : > { %4462 = vst [vmem:[#allocation33_spill] sm:$0xff] %v3478_v14 }
 0x102   : > { %v964_v27 = vpop.f32.mrf.mxu2  ;;  %2483 = vmatmul.msk.f32.gmra.mxu0 %vm420_vm2, %v3115_v16 }
 0x103   : > { %v1050_v55 = vadd.f32 %v964_v27, %v702_v52  ;;  %v1120_v38 = vpop.f32.mrf.mxu3  ;;  %v4467_v52 = vunpack.c.l.bf16 %v3068_v31  ;;  %v4471_v31 = vld [vmem:[#allocation5_spill] sm:$0xff] }
 0x104   : > { %v704_v13 = vpop.f32.mrf.mxu1 }
 0x105   : > { %v1206_v5 = vadd.f32 %v1120_v38, %v1050_v55  ;;  %v841_v27 = vrot.slane %v4467_v52, 2  ;;  %v705_v14 = vadd.f32 %v704_v13, %v3366_v37  ;;  %v844_v13 = vrot.slane %v4471_v31, 2 }
 0x107   : > { %v3494_v57 = vadd.f32 %v1280_v9, %v1206_v5  ;;  %2382 = vmatmul.msk.f32.gmra.mxu1 %vm420_vm2, %v4458_v59  ;;  %2416 = vmatmul.msk.f32.gmra.mxu2 %vm420_vm2, %v3492_v34  ;;  %v1283_v12 = vpop.f32.mrf.mxu0  ;;  %v4468_v9 = vld [vmem:[#allocation8_spill] sm:$0xff]  ;;  %v3508_v5 = vsel %vm782_vm3, %v839_v47, %v841_v27 }
 0x108   : > { %2450 = vmatmul.msk.f32.gmra.mxu3 %vm420_vm2, %v4466_v22  ;;  %4469 = vst [vmem:[#allocation36_spill] sm:$0xff] %v3508_v5 }
 0x109   : > { %4465 = vst [vmem:[#allocation41_spill] sm:$0xff] %v3494_v57 }
 0x10a   : > { %v967_v3 = vpop.f32.mrf.mxu2  ;;  %2484 = vmatmul.msk.f32.gmra.mxu0 %vm420_vm2, %v4468_v9 }
 0x10b   : > { %v1051_v16 = vadd.f32 %v967_v3, %v705_v14  ;;  %v1123_v55 = vpop.f32.mrf.mxu3  ;;  %v843_v14 = vrot.slane %v4466_v22, 2 }
 0x10c   : > { %v707_v38 = vpop.f32.mrf.mxu1 }
 0x10d   : > { %v1207_v57 = vadd.f32 %v1123_v55, %v1051_v16  ;;  %v708_v47 = vadd.f32 %v707_v38, %v3387_v36  ;;  %v3524_v3 = vsel %vm782_vm3, %v843_v14, %v844_v13  ;;  %v4475_v36 = vld [vmem:[#allocation14_spill] sm:$0xff] }
 0x10e   : > { %4473 = vst [vmem:[#allocation5_spill] sm:$0xff] %v3524_v3 }
 0x10f   : > { %v3510_v34 = vadd.f32 %v1283_v12, %v1207_v57  ;;  %2383 = vmatmul.msk.f32.gmra.mxu1 %vm420_vm2, %v4463_v43  ;;  %2417 = vmatmul.msk.f32.gmra.mxu2 %vm420_vm2, %v3508_v5  ;;  %v1286_v37 = vpop.f32.mrf.mxu0  ;;  %v4472_v12 = vld [vmem:[#allocation13_spill] sm:$0xff] }
 0x110   : > { %2451 = vmatmul.msk.f32.gmra.mxu3 %vm420_vm2, %v4471_v31 }
 0x111   : > { %4470 = vst [vmem:[#allocation4_spill] sm:$0xff] %v3510_v34 }
 0x112   : > { %v970_v52 = vpop.f32.mrf.mxu2  ;;  %2485 = vmatmul.msk.f32.gmra.mxu0 %vm420_vm2, %v4472_v12 }
 0x113   : > { %v1052_v16 = vadd.f32 %v970_v52, %v708_v47  ;;  %v1126_v57 = vpop.f32.mrf.mxu3  ;;  %v4476_v47 = vld [vmem:[#allocation6_spill] sm:$0xff] }
 0x114   : > { %v710_v27 = vpop.f32.mrf.mxu1  ;;  %v4477_v52 = vunpack.c.l.bf16 %v4476_v47 }
 0x115   : > { %v1208_v55 = vadd.f32 %v1126_v57, %v1052_v16  ;;  %v711_v9 = vadd.f32 %v710_v27, %v3229_v40  ;;  %v4481_v40 = vld [vmem:[#allocation15_spill] sm:$0xff]  ;;  %v848_v27 = vrot.slane %v4475_v36, 2 }
 0x116   : > { %v846_v12 = vrot.slane %v4477_v52, 2  ;;  %v849_v47 = vrot.slane %v4481_v40, 2 }
 0x117   : > { %v3526_v34 = vadd.f32 %v1286_v37, %v1208_v55  ;;  %2384 = vmatmul.msk.f32.gmra.mxu1 %vm420_vm2, %v4466_v22  ;;  %2418 = vmatmul.msk.f32.gmra.mxu2 %vm420_vm2, %v3524_v3  ;;  %v1289_v38 = vpop.f32.mrf.mxu0  ;;  %v4478_v37 = vld [vmem:[#allocation18_spill] sm:$0xff] }
 0x118   : > { %2452 = vmatmul.msk.f32.gmra.mxu3 %vm420_vm2, %v4475_v36  ;;  %v3540_v55 = vsel %vm782_vm3, %v844_v13, %v846_v12 }
 0x119   : > { %4474 = vst [vmem:[#allocation68_spill] sm:$0xff] %v3526_v34 }
 0x11a   : > { %v973_v14 = vpop.f32.mrf.mxu2  ;;  %2486 = vmatmul.msk.f32.gmra.mxu0 %vm420_vm2, %v4478_v37  ;;  %4479 = vst [vmem:[#allocation14_spill] sm:$0xff] %v3540_v55 }
 0x11b   : > { %v1053_v5 = vadd.f32 %v973_v14, %v711_v9  ;;  %v1129_v16 = vpop.f32.mrf.mxu3  ;;  %v3556_v14 = vsel %vm782_vm3, %v848_v27, %v849_v47 }
 0x11c   : > { %v713_v57 = vpop.f32.mrf.mxu1  ;;  %4483 = vst [vmem:[#allocation15_spill] sm:$0xff] %v3556_v14 }
 0x11d   : > { %v1209_v34 = vadd.f32 %v1129_v16, %v1053_v5  ;;  %v714_v13 = vadd.f32 %v713_v57, %v3250_v61  ;;  %v4485_v61 = vld [vmem:[#allocation24_spill] sm:$0xff] }
 0x11f   : > { %v3542_v3 = vadd.f32 %v1289_v38, %v1209_v34  ;;  %2385 = vmatmul.msk.f32.gmra.mxu1 %vm420_vm2, %v4471_v31  ;;  %2419 = vmatmul.msk.f32.gmra.mxu2 %vm420_vm2, %v3540_v55  ;;  %v1292_v9 = vpop.f32.mrf.mxu0  ;;  %v4482_v38 = vld [vmem:[#allocation23_spill] sm:$0xff] }
 0x120   : > { %2453 = vmatmul.msk.f32.gmra.mxu3 %vm420_vm2, %v4481_v40 }
 0x121   : > { %4480 = vst [vmem:[#allocation6_spill] sm:$0xff] %v3542_v3 }
 0x122   : > { %v976_v12 = vpop.f32.mrf.mxu2  ;;  %2487 = vmatmul.msk.f32.gmra.mxu0 %vm420_vm2, %v4482_v38 }
 0x123   : > { %v1054_v5 = vadd.f32 %v976_v12, %v714_v13  ;;  %v1132_v34 = vpop.f32.mrf.mxu3  ;;  %v4486_v13 = vld [vmem:[#allocation16_spill] sm:$0xff] }
 0x124   : > { %v716_v52 = vpop.f32.mrf.mxu1  ;;  %v4487_v12 = vunpack.c.l.bf16 %v4486_v13 }
 0x125   : > { %v1210_v16 = vadd.f32 %v1132_v34, %v1054_v5  ;;  %v717_v37 = vadd.f32 %v716_v52, %v3271_v54  ;;  %v4491_v54 = vld [vmem:[#allocation25_spill] sm:$0xff]  ;;  %v853_v52 = vrot.slane %v4485_v61, 2 }
 0x126   : > { %v851_v38 = vrot.slane %v4487_v12, 2  ;;  %v854_v13 = vrot.slane %v4491_v54, 2 }
 0x127   : > { %v3558_v3 = vadd.f32 %v1292_v9, %v1210_v16  ;;  %2386 = vmatmul.msk.f32.gmra.mxu1 %vm420_vm2, %v4475_v36  ;;  %2420 = vmatmul.msk.f32.gmra.mxu2 %vm420_vm2, %v3556_v14  ;;  %v1295_v57 = vpop.f32.mrf.mxu0  ;;  %v4488_v9 = vld [vmem:[#allocation30_spill] sm:$0xff] }
 0x128   : > { %2454 = vmatmul.msk.f32.gmra.mxu3 %vm420_vm2, %v4485_v61  ;;  %v3572_v16 = vsel %vm782_vm3, %v849_v47, %v851_v38 }
 0x129   : > { %4484 = vst [vmem:[#allocation69_spill] sm:$0xff] %v3558_v3 }
 0x12a   : > { %v979_v27 = vpop.f32.mrf.mxu2  ;;  %2488 = vmatmul.msk.f32.gmra.mxu0 %vm420_vm2, %v4488_v9  ;;  %4489 = vst [vmem:[#allocation16_spill] sm:$0xff] %v3572_v16 }
 0x12b   : > { %v1055_v55 = vadd.f32 %v979_v27, %v717_v37  ;;  %v1135_v5 = vpop.f32.mrf.mxu3  ;;  %v3588_v27 = vsel %vm782_vm3, %v853_v52, %v854_v13 }
 0x12c   : > { %v719_v34 = vpop.f32.mrf.mxu1  ;;  %4493 = vst [vmem:[#allocation71_spill] sm:$0xff] %v3588_v27 }
 0x12d   : > { %v1211_v3 = vadd.f32 %v1135_v5, %v1055_v55  ;;  %v720_v47 = vadd.f32 %v719_v34, %v3292_v19  ;;  %v4495_v19 = vld [vmem:[#allocation38_spill] sm:$0xff] }
 0x12f   : > { %v3574_v14 = vadd.f32 %v1295_v57, %v1211_v3  ;;  %2387 = vmatmul.msk.f32.gmra.mxu1 %vm420_vm2, %v4481_v40  ;;  %2421 = vmatmul.msk.f32.gmra.mxu2 %vm420_vm2, %v3572_v16  ;;  %v1298_v37 = vpop.f32.mrf.mxu0  ;;  %v4492_v57 = vld [vmem:[#allocation37_spill] sm:$0xff]  ;;  %v3630_v16 = vld [vmem:[%s2753_s27 + $0xc8] sm:$0x1] }
 0x130   : > { %2455 = vmatmul.msk.f32.gmra.mxu3 %vm420_vm2, %v4491_v54 }
 0x131   : > { %4490 = vst [vmem:[#allocation70_spill] sm:$0xff] %v3574_v14 }
 0x132   : > { %v982_v38 = vpop.f32.mrf.mxu2  ;;  %2489 = vmatmul.msk.f32.gmra.mxu0 %vm420_vm2, %v4492_v57 }
 0x133   : > { %v1056_v55 = vadd.f32 %v982_v38, %v720_v47  ;;  %v1138_v3 = vpop.f32.mrf.mxu3  ;;  %v4496_v47 = vld [vmem:[#allocation27_spill] sm:$0xff] }
 0x134   : > { %v722_v12 = vpop.f32.mrf.mxu1  ;;  %v4497_v38 = vunpack.c.l.bf16 %v4496_v47  ;;  %v858_v47 = vrot.slane %v4495_v19, 2 }
 0x135   : > { %v1212_v5 = vadd.f32 %v1138_v3, %v1056_v55  ;;  %v723_v52 = vadd.f32 %v722_v12, %v3313_v20  ;;  %v4498_v3 = vld [vmem:[#allocation42_spill] sm:$0xff]  ;;  %v4501_v12 = vld [vmem:[#allocation39_spill] sm:$0xff] }
 0x136   : > { %v856_v57 = vrot.slane %v4497_v38, 2  ;;  %v2675_v20 = vld [vmem:[%s2753_s27 + $0xc0] sm:$0xff]  }
 0x137   : > { %v3590_v14 = vadd.f32 %v1298_v37, %v1212_v5  ;;  %2388 = vmatmul.msk.f32.gmra.mxu1 %vm420_vm2, %v4485_v61  ;;  %2422 = vmatmul.msk.f32.gmra.mxu2 %vm420_vm2, %v3588_v27  ;;  %v1301_v34 = vpop.f32.mrf.mxu0  ;;  %v3620_v38 = vunpack.c.l.bf16 %v2675_v20 }
 0x138   : > { %2456 = vmatmul.msk.f32.gmra.mxu3 %vm420_vm2, %v4495_v19 }
 0x139   : > { %4494 = vst [vmem:[#allocation72_spill] sm:$0xff] %v3590_v14  ;;  %v3604_v14 = vsel %vm782_vm3, %v854_v13, %v856_v57  ;;  %v859_v13 = vrot.slane %v4501_v12, 2  ;;  %v3617_v57 = vunpack.c.h.bf16 %v2675_v20  ;;  %v4504_v20 = vunpack.c.l.bf16 %v3072_v32 }
 0x13a   : > { %v985_v9 = vpop.f32.mrf.mxu2  ;;  %2490 = vmatmul.msk.f32.gmra.mxu0 %vm420_vm2, %v4498_v3  ;;  %4499 = vst [vmem:[#allocation38_spill] sm:$0xff] %v3604_v14  ;;  %v1234_v3 = vrot.slane %v3620_v38, 1 }
 0x13b   : > { %v1057_v55 = vadd.f32 %v985_v9, %v723_v52  ;;  %v1141_v37 = vpop.f32.mrf.mxu3  ;;  %4502 = vst [vmem:[#allocation39_spill] sm:$0xff] %v3620_v38 }
 0x13c   : > { %v725_v5 = vpop.f32.mrf.mxu1 }
 0x13d   : > { %v1213_v27 = vadd.f32 %v1141_v37, %v1057_v55 }
 0x13f   : > { %v3606_v61 = vadd.f32 %v1301_v34, %v1213_v27  ;;  %2389 = vmatmul.msk.f32.gmra.mxu1 %vm420_vm2, %v4491_v54  ;;  %2423 = vmatmul.msk.f32.gmra.mxu2 %vm420_vm2, %v3604_v14  ;;  %v1304_v9 = vpop.f32.mrf.mxu0  ;;  %v726_v27 = vadd.f32 %v725_v5, %v3334_v58  ;;  %v1235_v14 = vrot.slane %v3617_v57, 1 }
 0x140   : > { %2457 = vmatmul.msk.f32.gmra.mxu3 %vm420_vm2, %v4501_v12 }
 0x141   : > { %4500 = vst [vmem:[#allocation27_spill] sm:$0xff] %v3606_v61  ;;  %v3625_v61 = vsel %vm782_vm3, %v858_v47, %v859_v13  ;;  %v861_v47 = vrot.slane %v4504_v20, 2 }
 0x142   : > { %v988_v34 = vpop.f32.mrf.mxu2  ;;  %2491 = vmatmul.msk.f32.gmra.mxu0 %vm420_vm2, %v3118_v51 }
 0x143   : > { %v1058_v52 = vadd.f32 %v988_v34, %v726_v27  ;;  %v1144_v55 = vpop.f32.mrf.mxu3  ;;  %v3643_v27 = vsel %vm337_vm1, %v1234_v3, %v1235_v14  ;;  %v284_v34 = vunpack.c.l.bf16 %v3630_v16 }
 0x144   : > { %v728_v37 = vpop.f32.mrf.mxu1 }
 0x145   : > { %v1214_v54 = vadd.f32 %v1144_v55, %v1058_v52  ;;  %v1237_v32 = vrot.slane %v284_v34, 1 }
 0x147   : > { %v3632_v58 = vadd.f32 %v1304_v9, %v1214_v54  ;;  %2390 = vmatmul.msk.f32.gmra.mxu1 %vm420_vm2, %v4495_v19  ;;  %2424 = vmatmul.msk.f32.gmra.mxu2 %vm420_vm2, %v3625_v61  ;;  %v1307_v5 = vpop.f32.mrf.mxu0  ;;  %v729_v54 = vadd.f32 %v728_v37, %v3355_v44  ;;  %v3663_v37 = vsel %vm337_vm1, %v1235_v14, %v1237_v32 }
 0x148   : > { %2458 = vmatmul.msk.f32.gmra.mxu3 %vm420_vm2, %v3620_v38  ;;  %v3650_v38 = vsel %vm782_vm3, %v859_v13, %v861_v47 }
 0x149   : > { %4503 = vst [vmem:[#allocation73_spill] sm:$0xff] %v3632_v58 }
 0x14a   : > { %v991_v9 = vpop.f32.mrf.mxu2  ;;  %2492 = vmatmul.msk.f32.gmra.mxu0 %vm420_vm2, %v3643_v27 }
 0x14b   : > { %v1059_v52 = vadd.f32 %v991_v9, %v729_v54  ;;  %v1147_v55 = vpop.f32.mrf.mxu3 }
 0x14c   : > { %v731_v58 = vpop.f32.mrf.mxu1 }
 0x14d   : > { %v1215_v20 = vadd.f32 %v1147_v55, %v1059_v52  ;;  %v732_v13 = vadd.f32 %v731_v58, %v3376_v29 }
 0x14f   : > { %v3654_v3 = vadd.f32 %v1307_v5, %v1215_v20  ;;  %2391 = vmatmul.msk.f32.gmra.mxu1 %vm420_vm2, %v4501_v12  ;;  %2425 = vmatmul.msk.f32.gmra.mxu2 %vm420_vm2, %v3650_v38  ;;  %v1310_v44 = vpop.f32.mrf.mxu0 }
 0x150   : > { %2459 = vmatmul.msk.f32.gmra.mxu3 %vm420_vm2, %v3617_v57 }
 0x152   : > { %v994_v47 = vpop.f32.mrf.mxu2  ;;  %2493 = vmatmul.msk.f32.gmra.mxu0 %vm420_vm2, %v3663_v37 }
 0x153   : > { %v1060_v54 = vadd.f32 %v994_v47, %v732_v13  ;;  %v1150_v9 = vpop.f32.mrf.mxu3 }
 0x154   : > { %v734_v5 = vpop.f32.mrf.mxu1 }
 0x155   : > { %v1216_v52 = vadd.f32 %v1150_v9, %v1060_v54  ;;  %v735_v14 = vadd.f32 %v734_v5, %v3244_v60 }
 0x157   : > { %v3668_v55 = vadd.f32 %v1310_v44, %v1216_v52  ;;  %2496 = vmatmul.msk.f32.vlgmr.msra.gmra.mxu1 %vm420_vm2, %v3154_v30  ;;  %2530 = vmatmul.msk.f32.vlgmr.msra.gmra.mxu2 %vm420_vm2, %v2954_v25  ;;  %v1313_v29 = vpop.f32.mrf.mxu0 }
 0x158   : > { %2564 = vmatmul.msk.f32.vlgmr.msra.gmra.mxu3 %vm420_vm2, %v3001_v1 }
 0x15a   : > { %v997_v58 = vpop.f32.mrf.mxu2  ;;  %2598 = vmatmul.msk.f32.vlgmr.msra.gmra.mxu0 %vm420_vm2, %v3180_v50 }
 0x15b   : > { %v1061_v32 = vadd.f32 %v997_v58, %v735_v14  ;;  %v1153_v20 = vpop.f32.mrf.mxu3 }
 0x15c   : > { %v737_v44 = vpop.f32.mrf.mxu1 }
 0x15d   : > { %v1217_v13 = vadd.f32 %v1153_v20, %v1061_v32  ;;  %v738_v25 = vadd.f32 %v737_v44, %v3265_v23 }
 0x15f   : > { %v3679_v47 = vadd.f32 %v1313_v29, %v1217_v13  ;;  %2497 = vmatmul.msk.f32.gmra.mxu1 %vm420_vm2, %v3167_v21  ;;  %2531 = vmatmul.msk.f32.gmra.mxu2 %vm420_vm2, %v2956_v33  ;;  %v1316_v1 = vpop.f32.mrf.mxu0 }
 0x160   : > { %2565 = vmatmul.msk.f32.gmra.mxu3 %vm420_vm2, %v3053_v6 }
 0x162   : > { %v1000_v30 = vpop.f32.mrf.mxu2  ;;  %2599 = vmatmul.msk.f32.gmra.mxu0 %vm420_vm2, %v3193_v15 }
 0x163   : > { %v1062_v60 = vadd.f32 %v1000_v30, %v738_v25  ;;  %v1156_v54 = vpop.f32.mrf.mxu3 }
 0x164   : > { %v740_v9 = vpop.f32.mrf.mxu1 }
 0x165   : > { %v1218_v5 = vadd.f32 %v1156_v54, %v1062_v60  ;;  %v741_v6 = vadd.f32 %v740_v9, %v3286_v41 }
 0x167   : > { %v3690_v52 = vadd.f32 %v1316_v1, %v1218_v5  ;;  %2498 = vmatmul.msk.f32.gmra.mxu1 %vm420_vm2, %v3180_v50  ;;  %2532 = vmatmul.msk.f32.gmra.mxu2 %vm420_vm2, %v3058_v35  ;;  %v1319_v33 = vpop.f32.mrf.mxu0 }
 0x168   : > { %2566 = vmatmul.msk.f32.gmra.mxu3 %vm420_vm2, %v3104_v56 }
 0x16a   : > { %v1003_v21 = vpop.f32.mrf.mxu2  ;;  %2600 = vmatmul.msk.f32.gmra.mxu0 %vm420_vm2, %v3206_v53 }
 0x16b   : > { %v1063_v23 = vadd.f32 %v1003_v21, %v741_v6  ;;  %v1159_v29 = vpop.f32.mrf.mxu3  ;;  %v4508_v21 = vld [vmem:[#allocation46_spill] sm:$0xff] }
 0x16c   : > { %v743_v14 = vpop.f32.mrf.mxu1 }
 0x16d   : > { %v1219_v58 = vadd.f32 %v1159_v29, %v1063_v23  ;;  %v744_v56 = vadd.f32 %v743_v14, %v3307_v7 }
 0x16f   : > { %v3701_v32 = vadd.f32 %v1319_v33, %v1219_v58  ;;  %2499 = vmatmul.msk.f32.gmra.mxu1 %vm420_vm2, %v3193_v15  ;;  %2533 = vmatmul.msk.f32.gmra.mxu2 %vm420_vm2, %v3060_v17  ;;  %v1322_v41 = vpop.f32.mrf.mxu0  ;;  %v4510_v58 = vld [vmem:[#allocation17_spill] sm:$0xff] }
 0x170   : > { %2567 = vmatmul.msk.f32.gmra.mxu3 %vm420_vm2, %v3129_v63 }
 0x172   : > { %v1006_v35 = vpop.f32.mrf.mxu2  ;;  %2601 = vmatmul.msk.f32.gmra.mxu0 %vm420_vm2, %v3217_v49 }
 0x173   : > { %v1064_v50 = vadd.f32 %v1006_v35, %v744_v56  ;;  %v1162_v20 = vpop.f32.mrf.mxu3  ;;  %v4511_v56 = vld [vmem:[#allocation58_spill] sm:$0xff] }
 0x174   : > { %v746_v44 = vpop.f32.mrf.mxu1 }
 0x175   : > { %v1220_v13 = vadd.f32 %v1162_v20, %v1064_v50  ;;  %v747_v17 = vadd.f32 %v746_v44, %v3328_v18 }
 0x177   : > { %v3712_v1 = vadd.f32 %v1322_v41, %v1220_v13  ;;  %2500 = vmatmul.msk.f32.gmra.mxu1 %vm420_vm2, %v3206_v53  ;;  %2534 = vmatmul.msk.f32.gmra.mxu2 %vm420_vm2, %v2758_v8  ;;  %v1325_v7 = vpop.f32.mrf.mxu0  ;;  %v4505_v8 = vld [vmem:[#allocation2_spill] sm:$0xff]  ;;  %v4507_v53 = vld [vmem:[#allocation55_spill] sm:$0xff]  ;;  %v4512_v13 = vld [vmem:[#allocation48_spill] sm:$0xff] }
 0x178   : > { %2568 = vmatmul.msk.f32.gmra.mxu3 %vm420_vm2, %v2789_v26  ;;  %v4506_v26 = vld [vmem:[#allocation11_spill] sm:$0xff] }
 0x17a   : > { %v1009_v63 = vpop.f32.mrf.mxu2  ;;  %2602 = vmatmul.msk.f32.gmra.mxu0 %vm420_vm2, %v3232_v28 }
 0x17b   : > { %v1065_v15 = vadd.f32 %v1009_v63, %v747_v17  ;;  %v1165_v25 = vpop.f32.mrf.mxu3 }
 0x17c   : > { %v749_v30 = vpop.f32.mrf.mxu1 }
 0x17d   : > { %v1221_v60 = vadd.f32 %v1165_v25, %v1065_v15  ;;  %v750_v9 = vadd.f32 %v749_v30, %v4507_v53  ;;  %v4514_v15 = vld [vmem:[#allocation21_spill] sm:$0xff]  ;;  %v4516_v53 = vld [vmem:[#allocation50_spill] sm:$0xff] }
 0x17e   : > { %v4515_v30 = vld [vmem:[#allocation61_spill] sm:$0xff] }
 0x17f   : > { %v3723_v54 = vadd.f32 %v1325_v7, %v1221_v60  ;;  %2501 = vmatmul.msk.f32.gmra.mxu1 %vm420_vm2, %v3217_v49  ;;  %2535 = vmatmul.msk.f32.gmra.mxu2 %vm420_vm2, %v4505_v8  ;;  %v1328_v18 = vpop.f32.mrf.mxu0  ;;  %v4509_v49 = vld [vmem:[#allocation9_spill] sm:$0xff] }
 0x180   : > { %2569 = vmatmul.msk.f32.gmra.mxu3 %vm420_vm2, %v4506_v26 }
 0x182   : > { %v1012_v5 = vpop.f32.mrf.mxu2  ;;  %2603 = vmatmul.msk.f32.gmra.mxu0 %vm420_vm2, %v4508_v21 }
 0x183   : > { %v1066_v33 = vadd.f32 %v1012_v5, %v750_v9  ;;  %v1168_v6 = vpop.f32.mrf.mxu3 }
 0x184   : > { %v752_v23 = vpop.f32.mrf.mxu1 }
 0x185   : > { %v1222_v29 = vadd.f32 %v1168_v6, %v1066_v33  ;;  %v753_v35 = vadd.f32 %v752_v23, %v4511_v56  ;;  %v4517_v6 = vld [vmem:[#allocation19_spill] sm:$0xff] }
 0x187   : > { %v3734_v14 = vadd.f32 %v1328_v18, %v1222_v29  ;;  %2502 = vmatmul.msk.f32.gmra.mxu1 %vm420_vm2, %v3232_v28  ;;  %2536 = vmatmul.msk.f32.gmra.mxu2 %vm420_vm2, %v4509_v49  ;;  %v1331_v41 = vpop.f32.mrf.mxu0  ;;  %v4513_v28 = vld [vmem:[#allocation10_spill] sm:$0xff]  ;;  %v4519_v29 = vld [vmem:[#allocation45_spill] sm:$0xff] }
 0x188   : > { %2570 = vmatmul.msk.f32.gmra.mxu3 %vm420_vm2, %v4510_v58 }
 0x18a   : > { %v1015_v50 = vpop.f32.mrf.mxu2  ;;  %2604 = vmatmul.msk.f32.gmra.mxu0 %vm420_vm2, %v4512_v13 }
 0x18b   : > { %v1067_v20 = vadd.f32 %v1015_v50, %v753_v35  ;;  %v1171_v44 = vpop.f32.mrf.mxu3  ;;  %v4520_v35 = vld [vmem:[#allocation52_spill] sm:$0xff] }
 0x18c   : > { %v755_v7 = vpop.f32.mrf.mxu1 }
 0x18d   : > { %v1223_v17 = vadd.f32 %v1171_v44, %v1067_v20  ;;  %v756_v60 = vadd.f32 %v755_v7, %v4515_v30  ;;  %v4522_v7 = vld [vmem:[#allocation34_spill] sm:$0xff] }
 0x18f   : > { %v3745_v63 = vadd.f32 %v1331_v41, %v1223_v17  ;;  %2503 = vmatmul.msk.f32.gmra.mxu1 %vm420_vm2, %v4508_v21  ;;  %2537 = vmatmul.msk.f32.gmra.mxu2 %vm420_vm2, %v4513_v28  ;;  %v1334_v25 = vpop.f32.mrf.mxu0  ;;  %v4518_v21 = vld [vmem:[#allocation28_spill] sm:$0xff]  ;;  %v4523_v28 = vld [vmem:[#allocation47_spill] sm:$0xff] }
 0x190   : > { %2571 = vmatmul.msk.f32.gmra.mxu3 %vm420_vm2, %v4514_v15 }
 0x192   : > { %v1018_v8 = vpop.f32.mrf.mxu2  ;;  %2605 = vmatmul.msk.f32.gmra.mxu0 %vm420_vm2, %v4516_v53 }
 0x193   : > { %v1068_v26 = vadd.f32 %v1018_v8, %v756_v60  ;;  %v1174_v18 = vpop.f32.mrf.mxu3  ;;  %v4524_v8 = vld [vmem:[#allocation54_spill] sm:$0xff] }
 0x194   : > { %v758_v9 = vpop.f32.mrf.mxu1 }
 0x195   : > { %v1224_v5 = vadd.f32 %v1174_v18, %v1068_v26  ;;  %v759_v49 = vadd.f32 %v758_v9, %v4519_v29 }
 0x197   : > { %v3756_v33 = vadd.f32 %v1334_v25, %v1224_v5  ;;  %2504 = vmatmul.msk.f32.gmra.mxu1 %vm420_vm2, %v4512_v13  ;;  %2538 = vmatmul.msk.f32.gmra.mxu2 %vm420_vm2, %v4517_v6  ;;  %v1337_v23 = vpop.f32.mrf.mxu0  ;;  %v4521_v13 = vld [vmem:[#allocation20_spill] sm:$0xff] }
 0x198   : > { %2572 = vmatmul.msk.f32.gmra.mxu3 %vm420_vm2, %v4518_v21  ;;  %v4526_v5 = vld [vmem:[#allocation40_spill] sm:$0xff]  ;;  %v4527_v21 = vld [vmem:[#allocation49_spill] sm:$0xff] }
 0x19a   : > { %v1021_v58 = vpop.f32.mrf.mxu2  ;;  %2606 = vmatmul.msk.f32.gmra.mxu0 %vm420_vm2, %v4520_v35 }
 0x19b   : > { %v1069_v41 = vadd.f32 %v1021_v58, %v759_v49  ;;  %v1177_v56 = vpop.f32.mrf.mxu3 }
 0x19c   : > { %v761_v50 = vpop.f32.mrf.mxu1 }
 0x19d   : > { %v1225_v20 = vadd.f32 %v1177_v56, %v1069_v41  ;;  %v762_v15 = vadd.f32 %v761_v50, %v4523_v28  ;;  %v4528_v41 = vld [vmem:[#allocation57_spill] sm:$0xff] }
 0x19f   : > { %v3767_v44 = vadd.f32 %v1337_v23, %v1225_v20  ;;  %2505 = vmatmul.msk.f32.gmra.mxu1 %vm420_vm2, %v4516_v53  ;;  %2539 = vmatmul.msk.f32.gmra.mxu2 %vm420_vm2, %v4521_v13  ;;  %v1340_v17 = vpop.f32.mrf.mxu0  ;;  %v4525_v53 = vld [vmem:[#allocation31_spill] sm:$0xff] }
 0x1a0   : > { %2573 = vmatmul.msk.f32.gmra.mxu3 %vm420_vm2, %v4522_v7  ;;  %v4530_v13 = vld [vmem:[#allocation43_spill] sm:$0xff] }
 0x1a2   : > { %v1024_v25 = vpop.f32.mrf.mxu2  ;;  %2607 = vmatmul.msk.f32.gmra.mxu0 %vm420_vm2, %v4524_v8 }
 0x1a3   : > { %v1070_v30 = vadd.f32 %v1024_v25, %v762_v15  ;;  %v1180_v60 = vpop.f32.mrf.mxu3 }
 0x1a4   : > { %v764_v26 = vpop.f32.mrf.mxu1 }
 0x1a5   : > { %v1226_v18 = vadd.f32 %v1180_v60, %v1070_v30  ;;  %v765_v23 = vadd.f32 %v764_v26, %v4527_v21  ;;  %v4532_v60 = vld [vmem:[#allocation60_spill] sm:$0xff]  ;;  %v4535_v21 = vld [vmem:[#allocation53_spill] sm:$0xff] }
 0x1a7   : > { %v3778_v9 = vadd.f32 %v1340_v17, %v1226_v18  ;;  %2506 = vmatmul.msk.f32.gmra.mxu1 %vm420_vm2, %v4520_v35  ;;  %2540 = vmatmul.msk.f32.gmra.mxu2 %vm420_vm2, %v4525_v53  ;;  %v1343_v6 = vpop.f32.mrf.mxu0  ;;  %v4529_v35 = vld [vmem:[#allocation32_spill] sm:$0xff]  ;;  %v4531_v17 = vld [vmem:[#allocation51_spill] sm:$0xff] }
 0x1a8   : > { %2574 = vmatmul.msk.f32.gmra.mxu3 %vm420_vm2, %v4526_v5  ;;  %v4534_v5 = vld [vmem:[#allocation7_spill] sm:$0xff] }
 0x1aa   : > { %v1027_v29 = vpop.f32.mrf.mxu2  ;;  %2608 = vmatmul.msk.f32.gmra.mxu0 %vm420_vm2, %v4528_v41 }
 0x1ab   : > { %v1071_v49 = vadd.f32 %v1027_v29, %v765_v23  ;;  %v1183_v58 = vpop.f32.mrf.mxu3 }
 0x1ac   : > { %v767_v56 = vpop.f32.mrf.mxu1 }
 0x1ad   : > { %v1227_v50 = vadd.f32 %v1183_v58, %v1071_v49  ;;  %v768_v28 = vadd.f32 %v767_v56, %v4531_v17  ;;  %v4536_v56 = vld [vmem:[#allocation63_spill] sm:$0xff]  ;;  %v4538_v17 = vld [vmem:[#allocation56_spill] sm:$0xff] }
 0x1af   : > { %v3789_v20 = vadd.f32 %v1343_v6, %v1227_v50  ;;  %2507 = vmatmul.msk.f32.gmra.mxu1 %vm420_vm2, %v4524_v8  ;;  %2541 = vmatmul.msk.f32.gmra.mxu2 %vm420_vm2, %v4529_v35  ;;  %v1346_v7 = vpop.f32.mrf.mxu0  ;;  %v4533_v8 = vld [vmem:[#allocation3_spill] sm:$0xff] }
 0x1b0   : > { %2575 = vmatmul.msk.f32.gmra.mxu3 %vm420_vm2, %v4530_v13 }
 0x1b2   : > { %v1030_v15 = vpop.f32.mrf.mxu2  ;;  %2609 = vmatmul.msk.f32.gmra.mxu0 %vm420_vm2, %v4532_v60 }
 0x1b3   : > { %v1072_v25 = vadd.f32 %v1030_v15, %v768_v28  ;;  %v1186_v30 = vpop.f32.mrf.mxu3 }
 0x1b4   : > { %v770_v26 = vpop.f32.mrf.mxu1 }
 0x1b5   : > { %v1228_v18 = vadd.f32 %v1186_v30, %v1072_v25  ;;  %v771_v23 = vadd.f32 %v770_v26, %v4535_v21 }
 0x1b7   : > { %v3800_v53 = vadd.f32 %v1346_v7, %v1228_v18  ;;  %2508 = vmatmul.msk.f32.gmra.mxu1 %vm420_vm2, %v4528_v41  ;;  %2542 = vmatmul.msk.f32.gmra.mxu2 %vm420_vm2, %v4533_v8  ;;  %v1349_v6 = vpop.f32.mrf.mxu0  ;;  %v4537_v41 = vld [vmem:[#allocation12_spill] sm:$0xff] }
 0x1b8   : > { %2576 = vmatmul.msk.f32.gmra.mxu3 %vm420_vm2, %v4534_v5 }
 0x1ba   : > { %v1033_v29 = vpop.f32.mrf.mxu2  ;;  %2610 = vmatmul.msk.f32.gmra.mxu0 %vm420_vm2, %v4536_v56 }
 0x1bb   : > { %v1073_v49 = vadd.f32 %v1033_v29, %v771_v23  ;;  %v1189_v58 = vpop.f32.mrf.mxu3 }
 0x1bc   : > { %v773_v50 = vpop.f32.mrf.mxu1 }
 0x1bd   : > { %v1229_v35 = vadd.f32 %v1189_v58, %v1073_v49  ;;  %v774_v28 = vadd.f32 %v773_v50, %v4538_v17 }
 0x1bf   : > { %v3811_v13 = vadd.f32 %v1349_v6, %v1229_v35  ;;  %2509 = vmatmul.msk.f32.gmra.mxu1 %vm420_vm2, %v4532_v60  ;;  %2543 = vmatmul.msk.f32.gmra.mxu2 %vm420_vm2, %v2764_v11  ;;  %v1352_v7 = vpop.f32.mrf.mxu0  ;;  %v4539_v60 = vld [vmem:[#allocation59_spill] sm:$0xff] }
 0x1c0   : > { %2577 = vmatmul.msk.f32.gmra.mxu3 %vm420_vm2, %v4537_v41 }
 0x1c2   : > { %v1036_v15 = vpop.f32.mrf.mxu2  ;;  %2611 = vmatmul.msk.f32.gmra.mxu0 %vm420_vm2, %v3412_v10 }
 0x1c3   : > { %v1074_v25 = vadd.f32 %v1036_v15, %v774_v28  ;;  %v1192_v30 = vpop.f32.mrf.mxu3 }
 0x1c4   : > { %v776_v26 = vpop.f32.mrf.mxu1 }
 0x1c5   : > { %v1230_v18 = vadd.f32 %v1192_v30, %v1074_v25  ;;  %v777_v5 = vadd.f32 %v776_v26, %v4539_v60 }
 0x1c7   : > { %v3822_v8 = vadd.f32 %v1352_v7, %v1230_v18  ;;  %2510 = vmatmul.msk.f32.gmra.mxu1 %vm420_vm2, %v4536_v56  ;;  %2544 = vmatmul.msk.f32.gmra.mxu2 %vm420_vm2, %v2829_v45  ;;  %v1355_v11 = vpop.f32.mrf.mxu0  ;;  %v4543_v18 = vld [vmem:[#allocation22_spill] sm:$0xff] }
 0x1c8   : > { %2578 = vmatmul.msk.f32.gmra.mxu3 %vm420_vm2, %v2881_v4  ;;  %v4540_v4 = vld [vmem:[#allocation62_spill] sm:$0xff] }
 0x1ca   : > { %v1039_v6 = vpop.f32.mrf.mxu2  ;;  %2612 = vmatmul.msk.f32.gmra.mxu0 %vm420_vm2, %v3428_v62 }
 0x1cb   : > { %v1075_v21 = vadd.f32 %v1039_v6, %v777_v5  ;;  %v1195_v23 = vpop.f32.mrf.mxu3  ;;  %v4545_v6 = vld [vmem:[#allocation65_spill] sm:$0xff] }
 0x1cc   : > { %v779_v29 = vpop.f32.mrf.mxu1 }
 0x1cd   : > { %v1231_v49 = vadd.f32 %v1195_v23, %v1075_v21  ;;  %v780_v56 = vadd.f32 %v779_v29, %v4540_v4 }
 0x1cf   : > { %v3833_v58 = vadd.f32 %v1355_v11, %v1231_v49  ;;  %2511 = vmatmul.msk.f32.gmra.mxu1 %vm420_vm2, %v3412_v10  ;;  %2545 = vmatmul.msk.f32.gmra.mxu2 %vm420_vm2, %v2837_v48  ;;  %v1358_v45 = vpop.f32.mrf.mxu0  ;;  %v4541_v10 = vld [vmem:[#allocation29_spill] sm:$0xff] }
 0x1d0   : > { %2579 = vmatmul.msk.f32.gmra.mxu3 %vm420_vm2, %v2924_v42  ;;  %v4542_v42 = vld [vmem:[#allocation64_spill] sm:$0xff] }
 0x1d2   : > { %v1042_v50 = vpop.f32.mrf.mxu2  ;;  %2613 = vmatmul.msk.f32.gmra.mxu0 %vm420_vm2, %v3444_v46 }
 0x1d3   : > { %v1076_v35 = vadd.f32 %v1042_v50, %v780_v56  ;;  %v1198_v41 = vpop.f32.mrf.mxu3 }
 0x1d4   : > { %v1424_v7 = vpop.f32.mrf.mxu1 }
 0x1d5   : > { %v1232_v17 = vadd.f32 %v1198_v41, %v1076_v35  ;;  %v1520_v15 = vadd.f32 %v1424_v7, %v4542_v42 }
 0x1d7   : > { %v3844_v28 = vadd.f32 %v1358_v45, %v1232_v17  ;;  %2512 = vmatmul.msk.f32.gmra.mxu1 %vm420_vm2, %v3428_v62  ;;  %2546 = vmatmul.msk.f32.gmra.mxu2 %vm420_vm2, %v2918_v39  ;;  %v1899_v48 = vpop.f32.mrf.mxu0  ;;  %v4544_v39 = vld [vmem:[#allocation35_spill] sm:$0xff]  ;;  %v4547_v17 = vld [vmem:[#allocation26_spill] sm:$0xff] }
 0x1d8   : > { %2580 = vmatmul.msk.f32.gmra.mxu3 %vm420_vm2, %v4541_v10 }
 0x1da   : > { %v1580_v25 = vpop.f32.mrf.mxu2  ;;  %2614 = vmatmul.msk.f32.gmra.mxu0 %vm420_vm2, %v4543_v18 }
 0x1db   : > { %v1676_v30 = vadd.f32 %v1580_v25, %v1520_v15  ;;  %v1740_v26 = vpop.f32.mrf.mxu3  ;;  %v4549_v15 = vld [vmem:[#allocation67_spill] sm:$0xff] }
 0x1dc   : > { %v1427_v11 = vpop.f32.mrf.mxu1 }
 0x1dd   : > { %v1836_v60 = vadd.f32 %v1740_v26, %v1676_v30  ;;  %v1521_v21 = vadd.f32 %v1427_v11, %v4545_v6  ;;  %v4550_v11 = vld [vmem:[#allocation36_spill] sm:$0xff]  ;;  %v4552_v6 = vld [vmem:[#allocation33_spill] sm:$0xff] }
 0x1df   : > { %v3855_v5 = vadd.f32 %v1899_v48, %v1836_v60  ;;  %2513 = vmatmul.msk.f32.gmra.mxu1 %vm420_vm2, %v3444_v46  ;;  %2547 = vmatmul.msk.f32.gmra.mxu2 %vm420_vm2, %v4454_v0  ;;  %v1902_v62 = vpop.f32.mrf.mxu0  ;;  %v4546_v0 = vld [vmem:[#allocation66_spill] sm:$0xff] }
 0x1e0   : > { %2581 = vmatmul.msk.f32.gmra.mxu3 %vm420_vm2, %v4544_v39 }
 0x1e2   : > { %v1583_v23 = vpop.f32.mrf.mxu2  ;;  %2615 = vmatmul.msk.f32.gmra.mxu0 %vm420_vm2, %v3476_v2 }
 0x1e3   : > { %v1677_v29 = vadd.f32 %v1583_v23, %v1521_v21  ;;  %v1743_v49 = vpop.f32.mrf.mxu3 }
 0x1e4   : > { %v1430_v45 = vpop.f32.mrf.mxu1 }
 0x1e5   : > { %v1837_v4 = vadd.f32 %v1743_v49, %v1677_v29  ;;  %v1522_v50 = vadd.f32 %v1430_v45, %v4546_v0  ;;  %v4553_v45 = vld [vmem:[#allocation5_spill] sm:$0xff] }
 0x1e7   : > { %v3866_v56 = vadd.f32 %v1902_v62, %v1837_v4  ;;  %2514 = vmatmul.msk.f32.gmra.mxu1 %vm420_vm2, %v4543_v18  ;;  %2548 = vmatmul.msk.f32.gmra.mxu2 %vm420_vm2, %v4458_v59  ;;  %v1905_v46 = vpop.f32.mrf.mxu0  ;;  %v4548_v59 = vld [vmem:[#allocation44_spill] sm:$0xff] }
 0x1e8   : > { %2582 = vmatmul.msk.f32.gmra.mxu3 %vm420_vm2, %v4461_v24 }
 0x1ea   : > { %v1586_v35 = vpop.f32.mrf.mxu2  ;;  %2616 = vmatmul.msk.f32.gmra.mxu0 %vm420_vm2, %v4547_v17 }
 0x1eb   : > { %v1678_v41 = vadd.f32 %v1586_v35, %v1522_v50  ;;  %v1746_v7 = vpop.f32.mrf.mxu3  ;;  %v4555_v35 = vld [vmem:[#allocation41_spill] sm:$0xff] }
 0x1ec   : > { %v1433_v10 = vpop.f32.mrf.mxu1 }
 0x1ed   : > { %v1838_v48 = vadd.f32 %v1746_v7, %v1678_v41  ;;  %v1523_v25 = vadd.f32 %v1433_v10, %v4549_v15 }
 0x1ef   : > { %v3877_v42 = vadd.f32 %v1905_v46, %v1838_v48  ;;  %2515 = vmatmul.msk.f32.gmra.mxu1 %vm420_vm2, %v3476_v2  ;;  %2549 = vmatmul.msk.f32.gmra.mxu2 %vm420_vm2, %v4463_v43  ;;  %v1908_v24 = vpop.f32.mrf.mxu0  ;;  %v4551_v2 = vld [vmem:[#allocation8_spill] sm:$0xff]  ;;  %v4556_v48 = vld [vmem:[#allocation14_spill] sm:$0xff] }
 0x1f0   : > { %2583 = vmatmul.msk.f32.gmra.mxu3 %vm420_vm2, %v4548_v59 }
 0x1f2   : > { %v1589_v30 = vpop.f32.mrf.mxu2  ;;  %2617 = vmatmul.msk.f32.gmra.mxu0 %vm420_vm2, %v4550_v11 }
 0x1f3   : > { %v1679_v26 = vadd.f32 %v1589_v30, %v1523_v25  ;;  %v1749_v18 = vpop.f32.mrf.mxu3  ;;  %v4558_v30 = vld [vmem:[#allocation4_spill] sm:$0xff] }
 0x1f4   : > { %v1436_v60 = vpop.f32.mrf.mxu1 }
 0x1f5   : > { %v1839_v39 = vadd.f32 %v1749_v18, %v1679_v26  ;;  %v1524_v21 = vadd.f32 %v1436_v60, %v4552_v6 }
 0x1f7   : > { %v3888_v62 = vadd.f32 %v1908_v24, %v1839_v39  ;;  %2516 = vmatmul.msk.f32.gmra.mxu1 %vm420_vm2, %v4547_v17  ;;  %2550 = vmatmul.msk.f32.gmra.mxu2 %vm420_vm2, %v4466_v22  ;;  %v1911_v43 = vpop.f32.mrf.mxu0  ;;  %v4554_v22 = vld [vmem:[#allocation13_spill] sm:$0xff]  ;;  %v4559_v39 = vld [vmem:[#allocation15_spill] sm:$0xff] }
 0x1f8   : > { %2584 = vmatmul.msk.f32.gmra.mxu3 %vm420_vm2, %v4551_v2 }
 0x1fa   : > { %v1592_v23 = vpop.f32.mrf.mxu2  ;;  %2618 = vmatmul.msk.f32.gmra.mxu0 %vm420_vm2, %v4553_v45 }
 0x1fb   : > { %v1680_v29 = vadd.f32 %v1592_v23, %v1524_v21  ;;  %v1752_v49 = vpop.f32.mrf.mxu3  ;;  %v4561_v23 = vld [vmem:[#allocation68_spill] sm:$0xff] }
 0x1fc   : > { %v1439_v4 = vpop.f32.mrf.mxu1 }
 0x1fd   : > { %v1840_v46 = vadd.f32 %v1752_v49, %v1680_v29  ;;  %v1525_v41 = vadd.f32 %v1439_v4, %v4555_v35 }
 0x1ff   : > { %v3899_v0 = vadd.f32 %v1911_v43, %v1840_v46  ;;  %2517 = vmatmul.msk.f32.gmra.mxu1 %vm420_vm2, %v4550_v11  ;;  %2551 = vmatmul.msk.f32.gmra.mxu2 %vm420_vm2, %v4471_v31  ;;  %v1914_v50 = vpop.f32.mrf.mxu0  ;;  %v4557_v31 = vld [vmem:[#allocation18_spill] sm:$0xff]  ;;  %v4562_v46 = vld [vmem:[#allocation16_spill] sm:$0xff] }
 0x200   : > { %2585 = vmatmul.msk.f32.gmra.mxu3 %vm420_vm2, %v4554_v22 }
 0x202   : > { %v1595_v7 = vpop.f32.mrf.mxu2  ;;  %2619 = vmatmul.msk.f32.gmra.mxu0 %vm420_vm2, %v4556_v48 }
 0x203   : > { %v1681_v17 = vadd.f32 %v1595_v7, %v1525_v41  ;;  %v1755_v10 = vpop.f32.mrf.mxu3 }
 0x204   : > { %v1442_v59 = vpop.f32.mrf.mxu1 }
 0x205   : > { %v1841_v24 = vadd.f32 %v1755_v10, %v1681_v17  ;;  %v1526_v26 = vadd.f32 %v1442_v59, %v4558_v30  ;;  %v4565_v17 = vld [vmem:[#allocation30_spill] sm:$0xff]  ;;  %v4567_v30 = vld [vmem:[#allocation69_spill] sm:$0xff] }
 0x207   : > { %v3910_v15 = vadd.f32 %v1914_v50, %v1841_v24  ;;  %2518 = vmatmul.msk.f32.gmra.mxu1 %vm420_vm2, %v4553_v45  ;;  %2552 = vmatmul.msk.f32.gmra.mxu2 %vm420_vm2, %v4475_v36  ;;  %v1917_v25 = vpop.f32.mrf.mxu0  ;;  %v4560_v36 = vld [vmem:[#allocation23_spill] sm:$0xff]  ;;  %v4563_v50 = vld [vmem:[#allocation6_spill] sm:$0xff] }
 0x208   : > { %2586 = vmatmul.msk.f32.gmra.mxu3 %vm420_vm2, %v4557_v31  ;;  %v4566_v31 = vld [vmem:[#allocation71_spill] sm:$0xff] }
 0x20a   : > { %v1598_v18 = vpop.f32.mrf.mxu2  ;;  %2620 = vmatmul.msk.f32.gmra.mxu0 %vm420_vm2, %v4559_v39 }
 0x20b   : > { %v1682_v11 = vadd.f32 %v1598_v18, %v1526_v26  ;;  %v1758_v60 = vpop.f32.mrf.mxu3 }
 0x20c   : > { %v1445_v2 = vpop.f32.mrf.mxu1 }
 0x20d   : > { %v1842_v43 = vadd.f32 %v1758_v60, %v1682_v11  ;;  %v1527_v29 = vadd.f32 %v1445_v2, %v4561_v23  ;;  %v4568_v60 = vld [vmem:[#allocation25_spill] sm:$0xff]  ;;  %v4570_v23 = vld [vmem:[#allocation38_spill] sm:$0xff] }
 0x20f   : > { %v3921_v6 = vadd.f32 %v1917_v25, %v1842_v43  ;;  %2519 = vmatmul.msk.f32.gmra.mxu1 %vm420_vm2, %v4556_v48  ;;  %2553 = vmatmul.msk.f32.gmra.mxu2 %vm420_vm2, %v4481_v40  ;;  %v1920_v21 = vpop.f32.mrf.mxu0  ;;  %v4564_v40 = vld [vmem:[#allocation24_spill] sm:$0xff] }
 0x210   : > { %2587 = vmatmul.msk.f32.gmra.mxu3 %vm420_vm2, %v4560_v36 }
 0x212   : > { %v1601_v49 = vpop.f32.mrf.mxu2  ;;  %2621 = vmatmul.msk.f32.gmra.mxu0 %vm420_vm2, %v4562_v46 }
 0x213   : > { %v1683_v45 = vadd.f32 %v1601_v49, %v1527_v29  ;;  %v1761_v4 = vpop.f32.mrf.mxu3  ;;  %v4571_v49 = vld [vmem:[#allocation70_spill] sm:$0xff] }
 0x214   : > { %v1448_v22 = vpop.f32.mrf.mxu1 }
 0x215   : > { %v1528_v35 = vadd.f32 %v1448_v22, %v4563_v50  ;;  %v1843_v41 = vadd.f32 %v1761_v4, %v1683_v45 }
 0x217   : > { %v3933_v7 = vadd.f32 %v1920_v21, %v1843_v41  ;;  %2520 = vmatmul.msk.f32.gmra.mxu1 %vm420_vm2, %v4559_v39  ;;  %2554 = vmatmul.msk.f32.gmra.mxu2 %vm420_vm2, %v4564_v40  ;;  %v1923_v10 = vpop.f32.mrf.mxu0  ;;  %v4569_v39 = vld [vmem:[#allocation37_spill] sm:$0xff] }
 0x218   : > { %2588 = vmatmul.msk.f32.gmra.mxu3 %vm420_vm2, %v4565_v17 }
 0x21a   : > { %v1604_v48 = vpop.f32.mrf.mxu2  ;;  %2622 = vmatmul.msk.f32.gmra.mxu0 %vm420_vm2, %v4566_v31 }
 0x21b   : > { %v1684_v59 = vadd.f32 %v1604_v48, %v1528_v35  ;;  %v1764_v24 = vpop.f32.mrf.mxu3 }
 0x21c   : > { %v1451_v25 = vpop.f32.mrf.mxu1 }
 0x21d   : > { %v1529_v26 = vadd.f32 %v1451_v25, %v4567_v30  ;;  %v1844_v18 = vadd.f32 %v1764_v24, %v1684_v59 }
 0x21f   : > { %v3944_v11 = vadd.f32 %v1923_v10, %v1844_v18  ;;  %2521 = vmatmul.msk.f32.gmra.mxu1 %vm420_vm2, %v4562_v46  ;;  %2555 = vmatmul.msk.f32.gmra.mxu2 %vm420_vm2, %v4568_v60  ;;  %v1926_v2 = vpop.f32.mrf.mxu0  ;;  %v4572_v46 = vld [vmem:[#allocation42_spill] sm:$0xff]  ;;  %v4573_v10 = vld [vmem:[#allocation72_spill] sm:$0xff]  ;;  %v4574_v18 = vld [vmem:[#allocation39_spill] sm:$0xff] }
 0x220   : > { %2589 = vmatmul.msk.f32.gmra.mxu3 %vm420_vm2, %v4569_v39  ;;  %v1393_v60 = vrot.slane %v4574_v18, 2  ;;  %v1394_v39 = vrot.slane %v3617_v57, 2 }
 0x222   : > { %v1607_v43 = vpop.f32.mrf.mxu2  ;;  %2623 = vmatmul.msk.f32.gmra.mxu0 %vm420_vm2, %v4570_v23 }
 0x223   : > { %v1685_v36 = vadd.f32 %v1607_v43, %v1529_v26  ;;  %v1767_v21 = vpop.f32.mrf.mxu3 }
 0x224   : > { %v1454_v29 = vpop.f32.mrf.mxu1 }
 0x225   : > { %v1530_v45 = vadd.f32 %v1454_v29, %v4571_v49  ;;  %v1845_v4 = vadd.f32 %v1767_v21, %v1685_v36  ;;  %v1395_v21 = vsel %vm782_vm3, %v1393_v60, %v1394_v39  ;;  %v231_v29 = vld [vmem:[%s2753_s27 + $0xcc] sm:$0xff]  }
 0x227   : > { %v3955_v22 = vadd.f32 %v1926_v2, %v1845_v4  ;;  %2522 = vmatmul.msk.f32.gmra.mxu1 %vm420_vm2, %v4566_v31  ;;  %2556 = vmatmul.msk.f32.gmra.mxu2 %vm420_vm2, %v4495_v19  ;;  %v1929_v50 = vpop.f32.mrf.mxu0  ;;  %v4575_v2 = vld [vmem:[#allocation27_spill] sm:$0xff] }
 0x228   : > { %2590 = vmatmul.msk.f32.gmra.mxu3 %vm420_vm2, %v4572_v46  ;;  %v4576_v46 = vld [vmem:[#allocation73_spill] sm:$0xff] }
 0x22a   : > { %v1610_v35 = vpop.f32.mrf.mxu2  ;;  %2624 = vmatmul.msk.f32.gmra.mxu0 %vm420_vm2, %v3625_v61 }
 0x22b   : > { %v1686_v41 = vadd.f32 %v1610_v35, %v1530_v45  ;;  %v1770_v40 = vpop.f32.mrf.mxu3 }
 0x22c   : > { %v1457_v17 = vpop.f32.mrf.mxu1 }
 0x22d   : > { %v1531_v48 = vadd.f32 %v1457_v17, %v4573_v10  ;;  %v1846_v59 = vadd.f32 %v1770_v40, %v1686_v41  ;;  %v285_v41 = vunpack.c.l.bf16 %v231_v29  ;;  %v286_v40 = vunpack.c.h.bf16 %v231_v29 }
 0x22f   : > { %v3966_v24 = vadd.f32 %v1929_v50, %v1846_v59  ;;  %2523 = vmatmul.msk.f32.gmra.mxu1 %vm420_vm2, %v4570_v23  ;;  %2557 = vmatmul.msk.f32.gmra.mxu2 %vm420_vm2, %v4501_v12  ;;  %v1932_v19 = vpop.f32.mrf.mxu0  ;;  %v1710_v10 = vrot.slane %v286_v40, 1  ;;  %v233_v59 = vld [vmem:[%s2753_s27 + $0xd4] sm:$0x1] }
 0x230   : > { %2591 = vmatmul.msk.f32.gmra.mxu3 %vm420_vm2, %v3118_v51 }
 0x232   : > { %v1613_v31 = vpop.f32.mrf.mxu2  ;;  %2625 = vmatmul.msk.f32.gmra.mxu0 %vm420_vm2, %v3650_v38 }
 0x233   : > { %v1687_v25 = vadd.f32 %v1613_v31, %v1531_v48  ;;  %v1773_v30 = vpop.f32.mrf.mxu3 }
 0x234   : > { %v1460_v26 = vpop.f32.mrf.mxu1 }
 0x235   : > { %v1532_v43 = vadd.f32 %v1460_v26, %v4575_v2  ;;  %v1847_v36 = vadd.f32 %v1773_v30, %v1687_v25  ;;  %v1868_v30 = vrot.slane %v285_v41, 2 }
 0x237   : > { %v3979_v12 = vadd.f32 %v1932_v19, %v1847_v36  ;;  %2524 = vmatmul.msk.f32.gmra.mxu1 %vm420_vm2, %v3625_v61  ;;  %2558 = vmatmul.msk.f32.gmra.mxu2 %vm420_vm2, %v4574_v18  ;;  %v1935_v51 = vpop.f32.mrf.mxu0  ;;  %v1396_v61 = vrot.slane %v284_v34, 2  ;;  %v1709_v34 = vrot.slane %v285_v41, 1 }
 0x238   : > { %2592 = vmatmul.msk.f32.gmra.mxu3 %vm420_vm2, %v3643_v27 }
 0x239   : > { %v1397_v16 = vsel %vm782_vm3, %v1394_v39, %v1396_v61  ;;  %v1711_v18 = vsel %vm337_vm1, %v1709_v34, %v1710_v10 }
 0x23a   : > { %v1616_v23 = vpop.f32.mrf.mxu2  ;;  %2626 = vmatmul.msk.f32.gmra.mxu0 %vm420_vm2, %v1395_v21 }
 0x23b   : > { %v1688_v49 = vadd.f32 %v1616_v23, %v1532_v43  ;;  %v1776_v45 = vpop.f32.mrf.mxu3 }
 0x23c   : > { %v1463_v4 = vpop.f32.mrf.mxu1 }
 0x23d   : > { %v1533_v50 = vadd.f32 %v1463_v4, %v4576_v46  ;;  %v1848_v35 = vadd.f32 %v1776_v45, %v1688_v49 }
 0x23f   : > { %v3993_v27 = vadd.f32 %v1935_v51, %v1848_v35  ;;  %2525 = vmatmul.msk.f32.gmra.mxu1 %vm420_vm2, %v3650_v38  ;;  %2559 = vmatmul.msk.f32.gmra.mxu2 %vm420_vm2, %v3617_v57  ;;  %v1938_v17 = vpop.f32.mrf.mxu0  ;;  %v1869_v38 = vrot.slane %v286_v40, 2 }
 0x240   : > { %2593 = vmatmul.msk.f32.gmra.mxu3 %vm420_vm2, %v3663_v37  ;;  %v287_v37 = vunpack.c.l.bf16 %v233_v59 }
 0x241   : > { %v1870_v2 = vsel %vm782_vm3, %v1868_v30, %v1869_v38 }
 0x242   : > { %v1619_v48 = vpop.f32.mrf.mxu2  ;;  %2627 = vmatmul.msk.f32.gmra.mxu0 %vm420_vm2, %v1397_v16  ;;  %v1712_v43 = vrot.slane %v287_v37, 1  ;;  %v1871_v29 = vrot.slane %v287_v37, 2 }
 0x243   : > { %v1689_v19 = vadd.f32 %v1619_v48, %v1533_v50  ;;  %v1779_v31 = vpop.f32.mrf.mxu3 }
 0x244   : > { %v1466_v25 = vpop.f32.mrf.mxu1  ;;  %v1872_v46 = vsel %vm782_vm3, %v1869_v38, %v1871_v29 }
 0x245   : > { %v1534_v26 = vadd.f32 %v1466_v25, %v3654_v3  ;;  %v1849_v57 = vadd.f32 %v1779_v31, %v1689_v19 }
 0x247   : > { %v4006_v60 = vadd.f32 %v1938_v17, %v1849_v57  ;;  %2526 = vmatmul.msk.f32.gmra.mxu1 %vm420_vm2, %v1395_v21  ;;  %2560 = vmatmul.msk.f32.gmra.mxu2 %vm420_vm2, %v285_v41  ;;  %v1941_v39 = vpop.f32.mrf.mxu0  ;;  %v1713_v21 = vsel %vm337_vm1, %v1710_v10, %v1712_v43 }
 0x248   : > { %2594 = vmatmul.msk.f32.gmra.mxu3 %vm420_vm2, %v1711_v18 }
 0x24a   : > { %v1622_v36 = vpop.f32.mrf.mxu2  ;;  %2628 = vmatmul.msk.f32.gmra.mxu0 %vm420_vm2, %v1870_v2 }
 0x24b   : > { %v1690_v51 = vadd.f32 %v1622_v36, %v1534_v26  ;;  %v1782_v23 = vpop.f32.mrf.mxu3 }
 0x24c   : > { %v1469_v3 = vpop.f32.mrf.mxu1 }
 0x24d   : > { %v1535_v49 = vadd.f32 %v1469_v3, %v3668_v55  ;;  %v1850_v45 = vadd.f32 %v1782_v23, %v1690_v51 }
 0x24f   : > { %v4015_v4 = vadd.f32 %v1941_v39, %v1850_v45  ;;  %2527 = vmatmul.msk.f32.gmra.mxu1 %vm420_vm2, %v1397_v16  ;;  %2561 = vmatmul.msk.f32.gmra.mxu2 %vm420_vm2, %v286_v40  ;;  %v1944_v61 = vpop.f32.mrf.mxu0 }
 0x250   : > { %2595 = vmatmul.msk.f32.gmra.mxu3 %vm420_vm2, %v1713_v21 }
 0x252   : > { %v1625_v50 = vpop.f32.mrf.mxu2  ;;  %2629 = vmatmul.msk.f32.gmra.mxu0 %vm420_vm2, %v1872_v46 }
 0x253   : > { %v1691_v35 = vadd.f32 %v1625_v50, %v1535_v49  ;;  %v1785_v41 = vpop.f32.mrf.mxu3 }
 0x254   : > { %v1472_v55 = vpop.f32.mrf.mxu1 }
 0x255   : > { %v1536_v17 = vadd.f32 %v1472_v55, %v3679_v47  ;;  %v1851_v34 = vadd.f32 %v1785_v41, %v1691_v35 }
 0x257   : > { %v4023_v10 = vadd.f32 %v1944_v61, %v1851_v34  ;;  %v1947_v48 = vpop.f32.mrf.mxu0 }
 0x25a   : > { %v1628_v16 = vpop.f32.mrf.mxu2 }
 0x25b   : > { %v1692_v59 = vadd.f32 %v1628_v16, %v1536_v17  ;;  %v1788_v40 = vpop.f32.mrf.mxu3 }
 0x25c   : > { %v1475_v19 = vpop.f32.mrf.mxu1 }
 0x25d   : > { %v1537_v31 = vadd.f32 %v1475_v19, %v3690_v52  ;;  %v1852_v25 = vadd.f32 %v1788_v40, %v1692_v59 }
 0x25f   : > { %v4026_v30 = vadd.f32 %v1947_v48, %v1852_v25  ;;  %v1950_v38 = vpop.f32.mrf.mxu0 }
 0x262   : > { %v1631_v26 = vpop.f32.mrf.mxu2 }
 0x263   : > { %v1693_v57 = vadd.f32 %v1631_v26, %v1537_v31  ;;  %v1791_v18 = vpop.f32.mrf.mxu3  ;;  %v2029_v31 = vsel %vm2027_vm4, %v3866_v56, 0.0  ;;  %v2031_v26 = vsel %vm2027_vm4, %v3877_v42, 0.0 }
 0x264   : > { %v1478_v37 = vpop.f32.mrf.mxu1 }
 0x265   : > { %v1538_v47 = vadd.f32 %v1478_v37, %v3701_v32  ;;  %v1853_v39 = vadd.f32 %v1791_v18, %v1693_v57  ;;  %v2033_v18 = vsel %vm2027_vm4, %v3888_v62, 0.0 }
 0x267   : > { %v4029_v2 = vadd.f32 %v1950_v38, %v1853_v39  ;;  %v1953_v43 = vpop.f32.mrf.mxu0  ;;  %v2028_v38 = vsel %vm2027_vm4, %v3855_v5, 0.0  ;;  %v2035_v39 = vsel %vm2027_vm4, %v3899_v0, 0.0 }
 0x268   : > { %v2030_v57 = vadd.f32 %v2029_v31, %v2028_v38  ;;  %v2049_v38 = vsel %vm2027_vm4, %v3979_v12, 0.0 }
 0x26a   : > { %v1634_v36 = vpop.f32.mrf.mxu2  ;;  %v2032_v37 = vadd.f32 %v2031_v26, %v2030_v57 }
 0x26b   : > { %v1694_v51 = vadd.f32 %v1634_v36, %v1538_v47  ;;  %v1794_v23 = vpop.f32.mrf.mxu3 }
 0x26c   : > { %v1481_v3 = vpop.f32.mrf.mxu1 }
 0x26d   : > { %v1539_v52 = vadd.f32 %v1481_v3, %v3712_v1  ;;  %v1854_v29 = vadd.f32 %v1794_v23, %v1694_v51  ;;  %v2037_v51 = vsel %vm2027_vm4, %v3910_v15, 0.0 }
 0x26f   : > { %v4032_v49 = vadd.f32 %v1953_v43, %v1854_v29  ;;  %v1956_v45 = vpop.f32.mrf.mxu0  ;;  %v2034_v43 = vadd.f32 %v2033_v18, %v2032_v37  ;;  %v2039_v29 = vsel %vm2027_vm4, %v3921_v6, 0.0  ;;  %v2051_v18 = vsel %vm2027_vm4, %v3993_v27, 0.0 }
 0x271   : > { %v2036_v3 = vadd.f32 %v2035_v39, %v2034_v43  ;;  %v2053_v43 = vsel %vm2027_vm4, %v4006_v60, 0.0 }
 0x272   : > { %v1637_v21 = vpop.f32.mrf.mxu2 }
 0x273   : > { %v1695_v61 = vadd.f32 %v1637_v21, %v1539_v52  ;;  %v1797_v46 = vpop.f32.mrf.mxu3  ;;  %v2041_v21 = vsel %vm2027_vm4, %v3933_v7, 0.0 }
 0x274   : > { %v1484_v50 = vpop.f32.mrf.mxu1 }
 0x275   : > { %v1540_v32 = vadd.f32 %v1484_v50, %v3723_v54  ;;  %v1855_v35 = vadd.f32 %v1797_v46, %v1695_v61  ;;  %v2043_v50 = vsel %vm2027_vm4, %v3944_v11, 0.0 }
 0x277   : > { %v4035_v41 = vadd.f32 %v1956_v45, %v1855_v35  ;;  %v1959_v55 = vpop.f32.mrf.mxu0  ;;  %v2038_v45 = vadd.f32 %v2037_v51, %v2036_v3 }
 0x279   : > { %v2040_v61 = vadd.f32 %v2039_v29, %v2038_v45  ;;  %v2055_v45 = vsel %vm2027_vm4, %v4015_v4, 0.0 }
 0x27a   : > { %v1640_v17 = vpop.f32.mrf.mxu2 }
 0x27b   : > { %v1696_v34 = vadd.f32 %v1640_v17, %v1540_v32  ;;  %v1800_v48 = vpop.f32.mrf.mxu3  ;;  %v2042_v32 = vadd.f32 %v2041_v21, %v2040_v61 }
 0x27c   : > { %v1487_v16 = vpop.f32.mrf.mxu1 }
 0x27d   : > { %v1856_v59 = vadd.f32 %v1800_v48, %v1696_v34  ;;  %v2044_v34 = vadd.f32 %v2043_v50, %v2042_v32  ;;  %v1541_v21 = vadd.f32 %v1487_v16, %v3734_v14  ;;  %v2057_v50 = vsel %vm2027_vm4, %v4023_v10, 0.0 }
 0x27e   : > { %v2061_v14 = vsel %vm2027_vm4, %v4029_v2, 0.0 }
 0x27f   : > { %v4037_v1 = vadd.f32 %v1959_v55, %v1856_v59  ;;  %v4039_v40 = vpop.f32.mrf.mxu0  ;;  %v2045_v55 = vsel %vm2027_vm4, %v3955_v22, 0.0  ;;  %v2047_v59 = vsel %vm2027_vm4, %v3966_v24, 0.0 }
 0x280   : > { %v2046_v31 = vadd.f32 %v2045_v55, %v2044_v34 }
 0x282   : > { %v1643_v19 = vpop.f32.mrf.mxu2  ;;  %v2048_v26 = vadd.f32 %v2047_v59, %v2046_v31  ;;  %v2059_v31 = vsel %vm2027_vm4, %v4026_v30, 0.0 }
 0x283   : > { %v1803_v25 = vpop.f32.mrf.mxu3  ;;  %v1697_v32 = vadd.f32 %v1643_v19, %v1541_v21 }
 0x284   : > { %v1490_v54 = vpop.f32.mrf.mxu1  ;;  %v2050_v37 = vadd.f32 %v2049_v38, %v2048_v26 }
 0x285   : > { %v1542_v55 = vadd.f32 %v1490_v54, %v3745_v63  ;;  %v1857_v16 = vadd.f32 %v1803_v25, %v1697_v32  ;;  %v2063_v54 = vsel %vm2027_vm4, %v4032_v49, 0.0  ;;  %v2067_v32 = vsel %vm2027_vm4, %v4037_v1, 0.0 }
 0x286   : > { %v2052_v3 = vadd.f32 %v2051_v18, %v2050_v37 }
 0x287   : > { %v4049_v47 = vpop.f32.mrf.mxu0 }
 0x288   : > { %v2054_v61 = vadd.f32 %v2053_v43, %v2052_v3 }
 0x28a   : > { %v1646_v36 = vpop.f32.mrf.mxu2  ;;  %v2056_v34 = vadd.f32 %v2055_v45, %v2054_v61 }
 0x28b   : > { %v1806_v23 = vpop.f32.mrf.mxu3  ;;  %v1698_v38 = vadd.f32 %v1646_v36, %v1542_v55 }
 0x28c   : > { %v1493_v52 = vpop.f32.mrf.mxu1  ;;  %v2058_v18 = vadd.f32 %v2057_v50, %v2056_v34  ;;  %v4089_v50 = vadd.f32 %v4039_v40, %v1857_v16 }
 0x28d   : > { %v1543_v26 = vadd.f32 %v1493_v52, %v3756_v33  ;;  %v1858_v45 = vadd.f32 %v1806_v23, %v1698_v38  ;;  %v2065_v52 = vsel %vm2027_vm4, %v4035_v41, 0.0 }
 0x28e   : > { %v2060_v21 = vadd.f32 %v2059_v31, %v2058_v18  ;;  %v2069_v34 = vsel %vm2027_vm4, %v4089_v50, 0.0 }
 0x28f   : > { %v1968_v46 = vpop.f32.mrf.mxu0  ;;  %v4094_v55 = vadd.f32 %v4049_v47, %v1858_v45 }
 0x290   : > { %v2062_v33 = vadd.f32 %v2061_v14, %v2060_v21 }
 0x292   : > { %v1649_v35 = vpop.f32.mrf.mxu2 }
 0x293   : > { %v1809_v17 = vpop.f32.mrf.mxu3  ;;  %v1699_v43 = vadd.f32 %v1649_v35, %v1543_v26 }
 0x294   : > { %v1496_v48 = vpop.f32.mrf.mxu1 }
 0x295   : > { %v1544_v3 = vadd.f32 %v1496_v48, %v3767_v44  ;;  %v1859_v25 = vadd.f32 %v1809_v17, %v1699_v43  ;;  %v2064_v44 = vadd.f32 %v2063_v54, %v2062_v33 }
 0x297   : > { %v1971_v57 = vpop.f32.mrf.mxu0  ;;  %v4099_v40 = vadd.f32 %v1968_v46, %v1859_v25 }
 0x29a   : > { %v1652_v39 = vpop.f32.mrf.mxu2 }
 0x29b   : > { %v1812_v51 = vpop.f32.mrf.mxu3  ;;  %v1700_v61 = vadd.f32 %v1652_v39, %v1544_v3  ;;  %v2066_v39 = vadd.f32 %v2065_v52, %v2064_v44 }
 0x29c   : > { %v1499_v29 = vpop.f32.mrf.mxu1 }
 0x29d   : > { %v1545_v36 = vadd.f32 %v1499_v29, %v3778_v9  ;;  %v1860_v23 = vadd.f32 %v1812_v51, %v1700_v61  ;;  %v2068_v26 = vadd.f32 %v2067_v32, %v2066_v39 }
 0x29f   : > { %v1974_v59 = vpop.f32.mrf.mxu0  ;;  %v4103_v47 = vadd.f32 %v1971_v57, %v1860_v23  ;;  %v2070_v14 = vadd.f32 %v2069_v34, %v2068_v26 }
 0x2a1   : > { %v2075_v3 = vsel %vm2027_vm4, %v4103_v47, 0.0 }
 0x2a2   : > { %v1655_v37 = vpop.f32.mrf.mxu2 }
 0x2a3   : > { %v1815_v19 = vpop.f32.mrf.mxu3  ;;  %v1701_v35 = vadd.f32 %v1655_v37, %v1545_v36  ;;  %v2071_v37 = vsel %vm2027_vm4, %v4094_v55, 0.0 }
 0x2a4   : > { %v1502_v63 = vpop.f32.mrf.mxu1  ;;  %v2072_v43 = vadd.f32 %v2071_v37, %v2070_v14 }
 0x2a5   : > { %v1546_v9 = vadd.f32 %v1502_v63, %v3789_v20  ;;  %v1861_v17 = vadd.f32 %v1815_v19, %v1701_v35  ;;  %v2073_v20 = vsel %vm2027_vm4, %v4099_v40, 0.0 }
 0x2a6   : > { %v2074_v63 = vadd.f32 %v2073_v20, %v2072_v43 }
 0x2a7   : > { %v1977_v48 = vpop.f32.mrf.mxu0  ;;  %v4107_v16 = vadd.f32 %v1974_v59, %v1861_v17 }
 0x2a8   : > { %v2076_v36 = vadd.f32 %v2075_v3, %v2074_v63 }
 0x2a9   : > { %v2077_v57 = vsel %vm2027_vm4, %v4107_v16, 0.0 }
 0x2aa   : > { %v1658_v29 = vpop.f32.mrf.mxu2  ;;  %v2078_v25 = vadd.f32 %v2077_v57, %v2076_v36 }
 0x2ab   : > { %v1702_v31 = vadd.f32 %v1658_v29, %v1546_v9  ;;  %v1818_v38 = vpop.f32.mrf.mxu3 }
 0x2ac   : > { %v1505_v18 = vpop.f32.mrf.mxu1 }
 0x2ad   : > { %v1862_v51 = vadd.f32 %v1818_v38, %v1702_v31  ;;  %v1547_v19 = vadd.f32 %v1505_v18, %v3800_v53 }
 0x2af   : > { %v1980_v46 = vpop.f32.mrf.mxu0  ;;  %v4112_v21 = vadd.f32 %v1977_v48, %v1862_v51 }
 0x2b1   : > { %v2079_v59 = vsel %vm2027_vm4, %v4112_v21, 0.0 }
 0x2b2   : > { %v1661_v54 = vpop.f32.mrf.mxu2  ;;  %v2080_v44 = vadd.f32 %v2079_v59, %v2078_v25 }
 0x2b3   : > { %v1703_v45 = vadd.f32 %v1661_v54, %v1547_v19  ;;  %v1821_v61 = vpop.f32.mrf.mxu3 }
 0x2b4   : > { %v1508_v33 = vpop.f32.mrf.mxu1 }
 0x2b5   : > { %v1863_v52 = vadd.f32 %v1821_v61, %v1703_v45  ;;  %v1548_v53 = vadd.f32 %v1508_v33, %v3811_v13 }
 0x2b7   : > { %v2022_v35 = vadd.f32 %v1980_v46, %v1863_v52  ;;  %v1983_v32 = vpop.f32.mrf.mxu0 }
 0x2b9   : > { %v2081_v48 = vsel %vm2027_vm4, %v2022_v35, 0.0 }
 0x2ba   : > { %v2082_v23 = vadd.f32 %v2081_v48, %v2080_v44  ;;  %v1664_v9 = vpop.f32.mrf.mxu2 }
 0x2bb   : > { %v1704_v39 = vadd.f32 %v1664_v9, %v1548_v53  ;;  %v1824_v29 = vpop.f32.mrf.mxu3 }
 0x2bc   : > { %v1511_v34 = vpop.f32.mrf.mxu1 }
 0x2bd   : > { %v1864_v17 = vadd.f32 %v1824_v29, %v1704_v39  ;;  %v1549_v26 = vadd.f32 %v1511_v34, %v3822_v8 }
 0x2bf   : > { %v2023_v31 = vadd.f32 %v1983_v32, %v1864_v17  ;;  %v1986_v38 = vpop.f32.mrf.mxu0 }
 0x2c1   : > { %v2083_v18 = vsel %vm2027_vm4, %v2023_v31, 0.0 }
 0x2c2   : > { %v2084_v37 = vadd.f32 %v2083_v18, %v2082_v23  ;;  %v1667_v51 = vpop.f32.mrf.mxu2 }
 0x2c3   : > { %v1705_v14 = vadd.f32 %v1667_v51, %v1549_v26  ;;  %v1827_v20 = vpop.f32.mrf.mxu3 }
 0x2c4   : > { %v1514_v43 = vpop.f32.mrf.mxu1 }
 0x2c5   : > { %v1865_v13 = vadd.f32 %v1827_v20, %v1705_v14  ;;  %v1550_v3 = vadd.f32 %v1514_v43, %v3833_v58 }
 0x2c7   : > { %v2024_v46 = vadd.f32 %v1986_v38, %v1865_v13  ;;  %v1989_v57 = vpop.f32.mrf.mxu0 }
 0x2c9   : > { %v2085_v19 = vsel %vm2027_vm4, %v2024_v46, 0.0 }
 0x2ca   : > { %v2086_v63 = vadd.f32 %v2085_v19, %v2084_v37  ;;  %v1670_v54 = vpop.f32.mrf.mxu2 }
 0x2cb   : > { %v1706_v45 = vadd.f32 %v1670_v54, %v1550_v3  ;;  %v1830_v61 = vpop.f32.mrf.mxu3 }
 0x2cc   : > { %v1517_v8 = vpop.f32.mrf.mxu1 }
 0x2cd   : > { %v1866_v36 = vadd.f32 %v1830_v61, %v1706_v45  ;;  %v1551_v59 = vadd.f32 %v1517_v8, %v3844_v28 }
 0x2cf   : > { %v2025_v33 = vadd.f32 %v1989_v57, %v1866_v36  ;;  %v1992_v53 = vpop.f32.mrf.mxu0 }
 0x2d1   : > { %v2087_v52 = vsel %vm2027_vm4, %v2025_v33, 0.0 }
 0x2d2   : > { %v2088_v25 = vadd.f32 %v2087_v52, %v2086_v63  ;;  %v1673_v44 = vpop.f32.mrf.mxu2 }
 0x2d3   : > { %v1707_v32 = vadd.f32 %v1673_v44, %v1551_v59  ;;  %v1833_v58 = vpop.f32.mrf.mxu3 }
 0x2d5   : > { %v1867_v48 = vadd.f32 %v1833_v58, %v1707_v32 }
 0x2d7   : > { %v2026_v23 = vadd.f32 %v1992_v53, %v1867_v48 }
 0x2d9   : > { %v2089_v9 = vsel %vm2027_vm4, %v2026_v23, 0.0 }
 0x2da   : > { %v2090_v39 = vadd.f32 %v2089_v9, %v2088_v25 }
 0x2dc   : > { %v2091_v29 = vrot.slane %v2090_v39, 4 }
 0x2de   : > { %v2092_v34 = vadd.f32 %v2091_v29, %v2090_v39 }
 0x2e0   : > { %v2093_v17 = vrot.slane %v2092_v34, 2 }
 0x2e2   : > { %v2094_v38 = vadd.f32 %v2093_v17, %v2092_v34 }
 0x2e4   : > { %v2095_v26 = vrot.slane %v2094_v38, 1 }
 0x2e6   : > { %v2096_v28 = vadd.f32 %v2095_v26, %v2094_v38 }
 0x2e8   : > { %2231 = vst.msk [vmem:[%s175_s14] sm:$0xff] %vm2027_vm4, %v2096_v28  ;;  %v4134_v18 = vmul.f32 0.00390625, %v2096_v28 }
 0x2ea   : > { %v4138_v37 = vsub.f32 %v4112_v21, %v4134_v18  ;;  %v4141_v51 = vsub.f32 %v2022_v35, %v4134_v18  ;;  %v4144_v14 = vsub.f32 %v2023_v31, %v4134_v18  ;;  %v4147_v20 = vsub.f32 %v2024_v46, %v4134_v18 }
 0x2eb   : > { %v4150_v43 = vsub.f32 %v2025_v33, %v4134_v18  ;;  %v4153_v13 = vsub.f32 %v2026_v23, %v4134_v18  ;;  %v2098_v3 = vsub.f32 %v3855_v5, %v4134_v18  ;;  %v2099_v21 = vsub.f32 %v3866_v56, %v4134_v18 }
 0x2ec   : > { %v2100_v35 = vsub.f32 %v3877_v42, %v4134_v18  ;;  %v2101_v31 = vsub.f32 %v3888_v62, %v4134_v18  ;;  %v2102_v63 = vsub.f32 %v3899_v0, %v4134_v18  ;;  %v2103_v57 = vsub.f32 %v3910_v15, %v4134_v18 }
 0x2ed   : > { %v2130_v46 = vmul.f32 %v2098_v3, %v2098_v3  ;;  %v2131_v19 = vmul.f32 %v2099_v21, %v2099_v21  ;;  %v2104_v42 = vsub.f32 %v3921_v6, %v4134_v18  ;;  %v2105_v0 = vsub.f32 %v3933_v7, %v4134_v18 }
 0x2ee   : > { %v2132_v54 = vmul.f32 %v2100_v35, %v2100_v35  ;;  %v2133_v45 = vmul.f32 %v2101_v31, %v2101_v31  ;;  %v2134_v36 = vmul.f32 %v2102_v63, %v2102_v63  ;;  %v2135_v33 = vmul.f32 %v2103_v57, %v2103_v57 }
 0x2ef   : > { %v2162_v5 = vsel %vm2027_vm4, %v2130_v46, 0.0  ;;  %v2163_v56 = vsel %vm2027_vm4, %v2131_v19, 0.0  ;;  %v2106_v52 = vsub.f32 %v3944_v11, %v4134_v18  ;;  %v2136_v25 = vmul.f32 %v2104_v42, %v2104_v42 }
 0x2f0   : > { %v2164_v61 = vadd.f32 %v2163_v56, %v2162_v5  ;;  %v2165_v62 = vsel %vm2027_vm4, %v2132_v54, 0.0  ;;  %v2167_v59 = vsel %vm2027_vm4, %v2133_v45, 0.0  ;;  %v2169_v44 = vsel %vm2027_vm4, %v2134_v36, 0.0 }
 0x2f1   : > { %v2107_v6 = vsub.f32 %v3955_v22, %v4134_v18  ;;  %v2137_v58 = vmul.f32 %v2105_v0, %v2105_v0  ;;  %v2171_v53 = vsel %vm2027_vm4, %v2135_v33, 0.0  ;;  %v2108_v7 = vsub.f32 %v3966_v24, %v4134_v18 }
 0x2f2   : > { %v2166_v8 = vadd.f32 %v2165_v62, %v2164_v61  ;;  %v2138_v23 = vmul.f32 %v2106_v52, %v2106_v52  ;;  %v2173_v9 = vsel %vm2027_vm4, %v2136_v25, 0.0  ;;  %v2109_v11 = vsub.f32 %v3979_v12, %v4134_v18 }
 0x2f3   : > { %v2139_v29 = vmul.f32 %v2107_v6, %v2107_v6  ;;  %v2175_v34 = vsel %vm2027_vm4, %v2137_v58, 0.0  ;;  %v2110_v22 = vsub.f32 %v3993_v27, %v4134_v18  ;;  %v2140_v38 = vmul.f32 %v2108_v7, %v2108_v7 }
 0x2f4   : > { %v2168_v15 = vadd.f32 %v2167_v59, %v2166_v8  ;;  %v2177_v26 = vsel %vm2027_vm4, %v2138_v23, 0.0  ;;  %v2111_v24 = vsub.f32 %v4006_v60, %v4134_v18  ;;  %v2141_v3 = vmul.f32 %v2109_v11, %v2109_v11 }
 0x2f5   : > { %v2179_v21 = vsel %vm2027_vm4, %v2139_v29, 0.0  ;;  %v2112_v12 = vsub.f32 %v4015_v4, %v4134_v18  ;;  %v2142_v31 = vmul.f32 %v2110_v22, %v2110_v22  ;;  %v2181_v46 = vsel %vm2027_vm4, %v2140_v38, 0.0 }
 0x2f6   : > { %v2170_v32 = vadd.f32 %v2169_v44, %v2168_v15  ;;  %v2113_v27 = vsub.f32 %v4023_v10, %v4134_v18  ;;  %v2143_v63 = vmul.f32 %v2111_v24, %v2111_v24  ;;  %v2183_v54 = vsel %vm2027_vm4, %v2141_v3, 0.0 }
 0x2f7   : > { %v2114_v60 = vsub.f32 %v4026_v30, %v4134_v18  ;;  %v2144_v45 = vmul.f32 %v2112_v12, %v2112_v12  ;;  %v2185_v5 = vsel %vm2027_vm4, %v2142_v31, 0.0  ;;  %v2115_v4 = vsub.f32 %v4029_v2, %v4134_v18 }
 0x2f8   : > { %v2172_v48 = vadd.f32 %v2171_v53, %v2170_v32  ;;  %v2145_v61 = vmul.f32 %v2113_v27, %v2113_v27  ;;  %v2187_v42 = vsel %vm2027_vm4, %v2143_v63, 0.0  ;;  %v2116_v10 = vsub.f32 %v4032_v49, %v4134_v18 }
 0x2f9   : > { %v2146_v62 = vmul.f32 %v2114_v60, %v2114_v60  ;;  %v2189_v8 = vsel %vm2027_vm4, %v2144_v45, 0.0  ;;  %v2117_v30 = vsub.f32 %v4035_v41, %v4134_v18  ;;  %v2147_v33 = vmul.f32 %v2115_v4, %v2115_v4 }
 0x2fa   : > { %v2174_v39 = vadd.f32 %v2173_v9, %v2172_v48  ;;  %v2191_v59 = vsel %vm2027_vm4, %v2145_v61, 0.0  ;;  %v2118_v2 = vsub.f32 %v4037_v1, %v4134_v18  ;;  %v2148_v52 = vmul.f32 %v2116_v10, %v2116_v10 }
 0x2fb   : > { %v2193_v25 = vsel %vm2027_vm4, %v2146_v62, 0.0  ;;  %v2119_v49 = vsub.f32 %v4089_v50, %v4134_v18  ;;  %v2149_v32 = vmul.f32 %v2117_v30, %v2117_v30  ;;  %v2195_v6 = vsel %vm2027_vm4, %v2147_v33, 0.0 }
 0x2fc   : > { %v2176_v17 = vadd.f32 %v2175_v34, %v2174_v39  ;;  %v2120_v41 = vsub.f32 %v4094_v55, %v4134_v18  ;;  %v2150_v53 = vmul.f32 %v2118_v2, %v2118_v2  ;;  %v2197_v48 = vsel %vm2027_vm4, %v2148_v52, 0.0 }
 0x2fd   : > { %v2121_v1 = vsub.f32 %v4099_v40, %v4134_v18  ;;  %v2151_v23 = vmul.f32 %v2119_v49, %v2119_v49  ;;  %v2199_v9 = vsel %vm2027_vm4, %v2149_v32, 0.0  ;;  %v2122_v50 = vsub.f32 %v4103_v47, %v4134_v18 }
 0x2fe   : > { %v2178_v28 = vadd.f32 %v2177_v26, %v2176_v17  ;;  %v2152_v11 = vmul.f32 %v2120_v41, %v2120_v41  ;;  %v2201_v29 = vsel %vm2027_vm4, %v2150_v53, 0.0  ;;  %v2123_v55 = vsub.f32 %v4107_v16, %v4134_v18 }
 0x2ff   : > { %v2153_v17 = vmul.f32 %v2121_v1, %v2121_v1  ;;  %v2203_v22 = vsel %vm2027_vm4, %v2151_v23, 0.0  ;;  %v2154_v26 = vmul.f32 %v2122_v50, %v2122_v50  ;;  %v2156_v47 = vmul.f32 %v4138_v37, %v4138_v37 }
 0x300   : > { %v2180_v35 = vadd.f32 %v2179_v21, %v2178_v28  ;;  %v2205_v40 = vsel %vm2027_vm4, %v2152_v11, 0.0  ;;  %v2155_v24 = vmul.f32 %v2123_v55, %v2123_v55  ;;  %v2157_v16 = vmul.f32 %v4141_v51, %v4141_v51 }
 0x301   : > { %v2207_v3 = vsel %vm2027_vm4, %v2153_v17, 0.0  ;;  %v2159_v63 = vmul.f32 %v4147_v20, %v4147_v20  ;;  %v2161_v45 = vmul.f32 %v4153_v13, %v4153_v13 }
 0x302   : > { %v2182_v19 = vadd.f32 %v2181_v46, %v2180_v35  ;;  %v2209_v35 = vsel %vm2027_vm4, %v2154_v26, 0.0  ;;  %v2211_v18 = vsel %vm2027_vm4, %v2155_v24, 0.0  ;;  %v2158_v46 = vmul.f32 %v4144_v14, %v4144_v14 }
 0x303   : > { %v2215_v37 = vsel %vm2027_vm4, %v2157_v16, 0.0  ;;  %v2219_v14 = vsel %vm2027_vm4, %v2159_v63, 0.0  ;;  %v2223_v20 = vsel %vm2027_vm4, %v2161_v45, 0.0 }
 0x304   : > { %v2184_v57 = vadd.f32 %v2183_v54, %v2182_v19  ;;  %v2213_v19 = vsel %vm2027_vm4, %v2156_v47, 0.0  ;;  %v2217_v51 = vsel %vm2027_vm4, %v2158_v46, 0.0 }
 0x306   : > { %v2186_v56 = vadd.f32 %v2185_v5, %v2184_v57  ;;  %v2160_v57 = vmul.f32 %v4150_v43, %v4150_v43 }
 0x308   : > { %v2188_v36 = vadd.f32 %v2187_v42, %v2186_v56  ;;  %v2221_v56 = vsel %vm2027_vm4, %v2160_v57, 0.0 }
 0x30a   : > { %v2190_v0 = vadd.f32 %v2189_v8, %v2188_v36 }
 0x30c   : > { %v2192_v15 = vadd.f32 %v2191_v59, %v2190_v0 }
 0x30e   : > { %v2194_v44 = vadd.f32 %v2193_v25, %v2192_v15 }
 0x310   : > { %v2196_v58 = vadd.f32 %v2195_v6, %v2194_v44 }
 0x312   : > { %v2198_v7 = vadd.f32 %v2197_v48, %v2196_v58 }
 0x314   : > { %v2200_v39 = vadd.f32 %v2199_v9, %v2198_v7 }
 0x316   : > { %v2202_v34 = vadd.f32 %v2201_v29, %v2200_v39 }
 0x318   : > { %v2204_v38 = vadd.f32 %v2203_v22, %v2202_v34 }
 0x31a   : > { %v2206_v28 = vadd.f32 %v2205_v40, %v2204_v38 }
 0x31c   : > { %v2208_v21 = vadd.f32 %v2207_v3, %v2206_v28 }
 0x31e   : > { %v2210_v12 = vadd.f32 %v2209_v35, %v2208_v21 }
 0x320   : > { %v2212_v31 = vadd.f32 %v2211_v18, %v2210_v12 }
 0x322   : > { %v2214_v27 = vadd.f32 %v2213_v19, %v2212_v31 }
 0x324   : > { %v2216_v54 = vadd.f32 %v2215_v37, %v2214_v27 }
 0x326   : > { %v2218_v60 = vadd.f32 %v2217_v51, %v2216_v54 }
 0x328   : > { %v2220_v5 = vadd.f32 %v2219_v14, %v2218_v60 }
 0x32a   : > { %v2222_v4 = vadd.f32 %v2221_v56, %v2220_v5 }
 0x32c   : > { %v2224_v61 = vadd.f32 %v2223_v20, %v2222_v4 }
 0x32e   : > { %v2225_v42 = vrot.slane %v2224_v61, 4 }
 0x330   : > { %v2226_v36 = vadd.f32 %v2225_v42, %v2224_v61 }
 0x332   : > { %v2227_v10 = vrot.slane %v2226_v36, 2 }
 0x334   : > { %v2228_v62 = vadd.f32 %v2227_v10, %v2226_v36 }
 0x336   : > { %v2229_v43 = vrot.slane %v2228_v62, 1 }
 0x338   : > { %v2230_v13 = vadd.f32 %v2229_v43, %v2228_v62 }
 0x33a   : > { %2232 = vst.msk [vmem:[%s179_s17] sm:$0xff] %vm2027_vm4, %v2230_v13 }
 0x33b PF: > { %s14_s12 = sadd.s32 1, %s2694_s12  }
 0x33c   : > { %p11_p4 = scmp.ge.s32.totalorder %s14_s12, 4  }
 0x33e   :  { %13 = sbr.rel (!%p11_p4) target bundleno = 1 (0x1), region = 78 }

// kernel: upconv_forward.3
= control target key start
LH: loop header
LB: loop body
LE: loop exit
PB: predicated region body
PF: predicated region fallthrough
CT: control target
= control target key end

     0   :  { %s2903_s15 = smov 0   ;;  %s4358_s0 = inlined_call_operand.vmem [shape: bf16[2,18,18,4], index: 0, kind: input, shape index: {}]   ;;  %s4359_s1 = inlined_call_operand.vmem [shape: f32[9,4,32], index: 1, kind: input, shape index: {}]   ;;  %s4360_s2 = inlined_call_operand.vmem [shape: f32[1,32], index: 2, kind: input, shape index: {}]   ;;  %s4361_s3 = inlined_call_operand.vmem [shape: f32[1,32], index: 3, kind: input, shape index: {}]   ;;  %s4362_s4 = inlined_call_operand.vmem [shape: bf16[512,32], index: 4, kind: output, shape index: {}]  }
   0x1 LB: > { %s2909_s16 = sadd.s32 4294967295, %s2876_s15   ;;  %p2403_p0 = scmp.ge.s32.totalorder %s2876_s15, 1  ;;  %s2876_s15 = sphi %s2903_s15, %s14_s15  }
   0x2   : > { %p162_p1 = scmp.lt.s32.totalorder %s2876_s15, 3 }
   0x4   : > { %p163_p2 = pnand %p2403_p0, %p162_p1 }
   0x6   : > { %166 = sbr.rel (%p163_p2) target bundleno = 749 (0x2ed), region = 36 }
   0xb   : > { %v2407_v0 = vld [vmem:[%s4359_s1 + $0x4] sm:$0xf]  ;;  %vm504_vm0 = vcmask 1043456   ;;  %p188_p3 = scmp.lt.s32.totalorder %s2909_s16, 1  ;;  %v2474_v1 = vld [vmem:[%s4359_s1 + $0x8] sm:$0xf] }
   0xc   : > { %2790 = vmatpush.msk.msra.mxu1 %vm504_vm0, %v2407_v0  ;;  %2791 = vmatpush.msk.msra.mxu2 %vm504_vm0, %v2407_v0  ;;  %v2508_v2 = vld [vmem:[%s4359_s1 + $0xc] sm:$0xf]  ;;  %v307_v3 = vld [vmem:[%s4359_s1] sm:$0xf]  ;;  %v2542_v4 = vld [vmem:[%s4359_s1 + $0x10] sm:$0xf] }
   0xd   : > { %s189_s25 = scalar_select %p188_p3, %s2909_s16, 1  ;;  %2792 = vmatpush.msk.msra.mxu3 %vm504_vm0, %v2407_v0  ;;  %2408 = vmatpush.msk.msra.mxu0 %vm504_vm0, %v2407_v0  ;;  %vm356_vm1 = vcmask 1046528   ;;  %vm439_vm2 = vcmask 31744   ;;  %vm801_vm3 = vcmask 1045504   ;;  %vm2310_vm5 = vcmask 257024  }
   0xe   : > { %2475 = vmatpush.msk.msrb.mxu2 %vm504_vm0, %v2474_v1  ;;  %2441 = vmatpush.msk.msrb.mxu1 %vm504_vm0, %v307_v3  ;;  %s2405_s20 = sshll.u32 %s2909_s16, 5 }
   0xf   : > { %2509 = vmatpush.msk.msrb.mxu3 %vm504_vm0, %v2508_v2  ;;  %s2793_s28 = smul.u32 216, %s189_s25  ;;  %2543 = vmatpush.msk.msrb.mxu0 %vm504_vm0, %v2542_v4  ;;  %p194_p4 = scmp.lt.s32.totalorder %s2405_s20, 63 }
  0x11   : > { %s2941_s5 = scalar_lea.vmem %s4358_s0, %s2793_s28  ;;  %s4677_s20 = smov (!%p194_p4, %s2405_s20), 63 }
  0x12   : > { %v2783_v5 = vld [vmem:[%s2941_s5 + $0x30] sm:$0xff]   ;;  %v2785_v6 = vld [vmem:[%s2941_s5 + $0x60] sm:$0xff]   ;;  %v2955_v12 = vld [vmem:[%s2941_s5 + $0x38] sm:$0x1]  ;;  %s2406_s16 = sshll.u32 %s4677_s20, 2 }
  0x13   : > { %v2787_v7 = vld [vmem:[%s2941_s5 + $0x90] sm:$0xff]   ;;  %v2946_v8 = vunpack.c.l.bf16 %v2783_v5  ;;  %v2948_v9 = vunpack.c.h.bf16 %v2783_v5  ;;  %v2950_v10 = vunpack.c.l.bf16 %v2785_v6  ;;  %v2952_v11 = vunpack.c.h.bf16 %v2785_v6  ;;  %v2958_v13 = vld [vmem:[%s2941_s5 + $0x68] sm:$0x1]  ;;  %v2747_v18 = vld [vmem:[%s2941_s5] sm:$0xff]   ;;  %s4083_s23 = scalar_lea.vmem %s4362_s4, %s2406_s16 }
  0x14   : > { %v2960_v14 = vunpack.c.l.bf16 %v2787_v7  ;;  %v2962_v15 = vunpack.c.h.bf16 %v2787_v7  ;;  %v4368_v16 = vunpack.c.l.bf16 %v2955_v12  ;;  %v4366_v17 = vunpack.c.l.bf16 %v2958_v13  ;;  %v2972_v23 = vld [vmem:[%s2941_s5 + $0x98] sm:$0x1]  ;;  %v2987_v30 = vld [vmem:[%s2941_s5 + $0x8] sm:$0x1]  ;;  %v214_v37 = vld [vmem:[%s2941_s5 + $0x3c] sm:$0xff]  }
  0x15   : > { %4475 = vst [vmem:[#allocation2_spill] sm:$0xff] %v2948_v9  ;;  %v377_v19 = vrot.slane %v2946_v8, 1  ;;  %v378_v20 = vrot.slane %v2948_v9, 1  ;;  %v397_v21 = vrot.slane %v2950_v10, 1  ;;  %v398_v22 = vrot.slane %v2952_v11, 1  ;;  %v226_v38 = vld [vmem:[%s2941_s5 + $0x6c] sm:$0xff]  }
  0x16   : > { %4476 = vst [vmem:[#allocation3_spill] sm:$0xff] %v2950_v10  ;;  %v417_v24 = vrot.slane %v2960_v14, 1  ;;  %v418_v25 = vrot.slane %v2962_v15, 1  ;;  %v2982_v28 = vunpack.c.l.bf16 %v2747_v18  ;;  %v2984_v29 = vunpack.c.h.bf16 %v2747_v18  ;;  %v238_v42 = vld [vmem:[%s2941_s5 + $0x9c] sm:$0xff]   ;;  %v202_v53 = vld [vmem:[%s2941_s5 + $0xc] sm:$0xff]  }
  0x17   : > { %4477 = vst [vmem:[#allocation4_spill] sm:$0xff] %v2960_v14  ;;  %v2977_v26 = vsel %vm356_vm1, %v377_v19, %v378_v20  ;;  %v2980_v27 = vsel %vm356_vm1, %v397_v21, %v398_v22  ;;  %v4364_v32 = vunpack.c.l.bf16 %v2972_v23  ;;  %v380_v33 = vrot.slane %v4368_v16, 1  ;;  %v3049_v59 = vld [vmem:[%s2941_s5 + $0x44] sm:$0x1]  ;;  %v3058_v0 = vld [vmem:[%s2941_s5 + $0x74] sm:$0x1] }
  0x18   : > { %4478 = vst [vmem:[#allocation5_spill] sm:$0xff] %v2962_v15  ;;  %2417 = vmatmul.msk.f32.vlgmr.msra.gmra.mxu1 %vm439_vm2, %v2977_v26  ;;  %2425 = vmatmul.msk.f32.vlgmr.msra.gmra.mxu2 %vm439_vm2, %v2980_v27  ;;  %v2994_v31 = vsel %vm356_vm1, %v417_v24, %v418_v25  ;;  %v400_v34 = vrot.slane %v4366_v17, 1  ;;  %v357_v35 = vrot.slane %v2982_v28, 1  ;;  %v358_v36 = vrot.slane %v2984_v29, 1  ;;  %v3061_v1 = vld [vmem:[%s2941_s5 + $0xa4] sm:$0x1] }
  0x19   : > { %4479 = vst [vmem:[#allocation6_spill] sm:$0xff] %v2972_v23  ;;  %2433 = vmatmul.msk.f32.vlgmr.msra.gmra.mxu3 %vm439_vm2, %v2994_v31  ;;  %v420_v39 = vrot.slane %v4364_v32, 1  ;;  %v4370_v40 = vunpack.c.l.bf16 %v2987_v30  ;;  %v3013_v43 = vunpack.c.l.bf16 %v214_v37  ;;  %v3015_v44 = vunpack.c.h.bf16 %v214_v37  ;;  %v3152_v32 = vld [vmem:[%s2941_s5 + $0xb0] sm:$0x1] }
  0x1a   : > { %4480 = vst [vmem:[#allocation7_spill] sm:$0xff] %v2980_v27  ;;  %v359_v41 = vsel %vm356_vm1, %v357_v35, %v358_v36  ;;  %v3017_v45 = vunpack.c.l.bf16 %v226_v38  ;;  %v3020_v46 = vsel %vm356_vm1, %v378_v20, %v380_v33  ;;  %v3023_v47 = vsel %vm356_vm1, %v398_v22, %v400_v34  ;;  %v3079_v20 = vld [vmem:[%s2941_s5 + $0x14] sm:$0x1]  ;;  %v2786_v33 = vld [vmem:[%s2941_s5 + $0x78] sm:$0xff]  }
  0x1b   : > { %4481 = vst [vmem:[#allocation8_spill] sm:$0xff] %v2994_v31  ;;  %2409 = vmatmul.msk.f32.vlgmr.msra.gmra.mxu0 %vm439_vm2, %v359_v41  ;;  %v3025_v48 = vunpack.c.h.bf16 %v226_v38  ;;  %v360_v49 = vrot.slane %v4370_v40, 1  ;;  %v3030_v50 = vsel %vm356_vm1, %v418_v25, %v420_v39  ;;  %v3032_v51 = vunpack.c.l.bf16 %v238_v42  ;;  %v2784_v25 = vld [vmem:[%s2941_s5 + $0x48] sm:$0xff]  }
  0x1c   : > { %4482 = vst [vmem:[#allocation9_spill] sm:$0xff] %v3013_v43  ;;  %v3034_v52 = vunpack.c.h.bf16 %v238_v42  ;;  %v382_v54 = vrot.slane %v3013_v43, 1  ;;  %v383_v55 = vrot.slane %v3015_v44, 1  ;;  %v402_v56 = vrot.slane %v3017_v45, 1  ;;  %v232_v40 = vld [vmem:[%s2941_s5 + $0x84] sm:$0xff]  }
  0x1d   : > { %4483 = vst [vmem:[#allocation10_spill] sm:$0xff] %v3015_v44  ;;  %v403_v57 = vrot.slane %v3025_v48, 1  ;;  %v361_v58 = vsel %vm356_vm1, %v358_v36, %v360_v49  ;;  %v3051_v60 = vunpack.c.l.bf16 %v202_v53  ;;  %v3053_v61 = vunpack.c.h.bf16 %v202_v53  ;;  %v2788_v36 = vld [vmem:[%s2941_s5 + $0xa8] sm:$0xff]  }
  0x1e   : > { %4484 = vst [vmem:[#allocation11_spill] sm:$0xff] %v3020_v46  ;;  %v422_v62 = vrot.slane %v3032_v51, 1  ;;  %v423_v63 = vrot.slane %v3034_v52, 1  ;;  %v3064_v2 = vsel %vm356_vm1, %v382_v54, %v383_v55  ;;  %v4367_v3 = vunpack.c.l.bf16 %v3049_v59  ;;  %v3256_v31 = vld [vmem:[%s2941_s5 + $0x8c] sm:$0x1] }
  0x1f   : > { %4485 = vst [vmem:[#allocation12_spill] sm:$0xff] %v3023_v47  ;;  %v3069_v4 = vsel %vm356_vm1, %v402_v56, %v403_v57  ;;  %v4365_v5 = vunpack.c.l.bf16 %v3058_v0  ;;  %v362_v6 = vrot.slane %v3051_v60, 1  ;;  %v363_v7 = vrot.slane %v3053_v61, 1 }
  0x20   : > { %4486 = vst [vmem:[#allocation13_spill] sm:$0xff] %v3030_v50  ;;  %2418 = vmatmul.msk.f32.gmra.mxu1 %vm439_vm2, %v3020_v46  ;;  %2426 = vmatmul.msk.f32.gmra.mxu2 %vm439_vm2, %v3023_v47  ;;  %v3075_v18 = vsel %vm356_vm1, %v422_v62, %v423_v63  ;;  %v4363_v19 = vunpack.c.l.bf16 %v3061_v1  ;;  %v385_v21 = vrot.slane %v4367_v3, 1  ;;  %v4369_v34 = vunpack.c.l.bf16 %v3079_v20 }
  0x21   : > { %4487 = vst [vmem:[#allocation14_spill] sm:$0xff] %v3032_v51  ;;  %2434 = vmatmul.msk.f32.gmra.mxu3 %vm439_vm2, %v3030_v50  ;;  %v405_v22 = vrot.slane %v4365_v5, 1  ;;  %v3092_v24 = vsel %vm356_vm1, %v362_v6, %v363_v7  ;;  %v3102_v37 = vunpack.c.l.bf16 %v2784_v25  ;;  %v3104_v38 = vunpack.c.h.bf16 %v2784_v25  ;;  %v2610_v5 = vld [vmem:[%s4359_s1 + $0x18] sm:$0xf]  ;;  %v208_v50 = vld [vmem:[%s2941_s5 + $0x24] sm:$0xff]  }
  0x22   : > { %4488 = vst [vmem:[#allocation15_spill] sm:$0xff] %v3034_v52  ;;  %v425_v35 = vrot.slane %v4363_v19, 1  ;;  %v3106_v39 = vunpack.c.l.bf16 %v2786_v33  ;;  %v3109_v41 = vsel %vm356_vm1, %v383_v55, %v385_v21  ;;  %v3114_v49 = vunpack.c.h.bf16 %v2786_v33  ;;  %v2782_v55 = vld [vmem:[%s2941_s5 + $0x18] sm:$0xff]   ;;  %v3149_v19 = vld [vmem:[%s2941_s5 + $0x80] sm:$0x1]  ;;  %2611 = vmatpush.msk.msra.mxu2 %vm504_vm0, %v2610_v5 }
  0x23   : > { %4489 = vst [vmem:[#allocation16_spill] sm:$0xff] %v3061_v1  ;;  %2410 = vmatmul.msk.f32.gmra.mxu0 %vm439_vm2, %v361_v58  ;;  %v3112_v42 = vsel %vm356_vm1, %v403_v57, %v405_v22  ;;  %v365_v53 = vrot.slane %v4369_v34, 1  ;;  %v3121_v56 = vunpack.c.l.bf16 %v2788_v36  ;;  %v3123_v58 = vunpack.c.h.bf16 %v2788_v36  ;;  %v3140_v22 = vld [vmem:[%s2941_s5 + $0x50] sm:$0x1]  ;;  %v3171_v34 = vld [vmem:[%s2941_s5 + $0x20] sm:$0x1] }
  0x24   : > { %4490 = vst [vmem:[#allocation17_spill] sm:$0xff] %v3064_v2  ;;  %v3119_v54 = vsel %vm356_vm1, %v423_v63, %v425_v35  ;;  %v387_v57 = vrot.slane %v3102_v37, 1  ;;  %v388_v62 = vrot.slane %v3104_v38, 1  ;;  %v407_v63 = vrot.slane %v3106_v39, 1 }
  0x25   : > { %4491 = vst [vmem:[#allocation18_spill] sm:$0xff] %v3075_v18  ;;  %v408_v6 = vrot.slane %v3114_v49, 1  ;;  %v3137_v21 = vsel %vm356_vm1, %v363_v7, %v365_v53  ;;  %v3142_v25 = vunpack.c.l.bf16 %v2782_v55  ;;  %v3144_v33 = vunpack.c.h.bf16 %v2782_v55 }
  0x26   : > { %4492 = vst [vmem:[#allocation19_spill] sm:$0xff] %v3102_v37  ;;  %v427_v35 = vrot.slane %v3121_v56, 1  ;;  %v428_v36 = vrot.slane %v3123_v58, 1  ;;  %v3155_v7 = vsel %vm356_vm1, %v387_v57, %v388_v62  ;;  %v4380_v53 = vunpack.c.l.bf16 %v3140_v22 }
  0x27   : > { %4493 = vst [vmem:[#allocation20_spill] sm:$0xff] %v3104_v38  ;;  %v3161_v55 = vsel %vm356_vm1, %v407_v63, %v408_v6  ;;  %v367_v17 = vrot.slane %v3142_v25, 1  ;;  %v368_v3 = vrot.slane %v3144_v33, 1  ;;  %v220_v63 = vld [vmem:[%s2941_s5 + $0x54] sm:$0xff]   ;;  %v4504_v57 = vunpack.c.l.bf16 %v3149_v19 }
  0x28   : > { %2419 = vmatmul.msk.f32.gmra.mxu1 %vm439_vm2, %v3064_v2  ;;  %2427 = vmatmul.msk.f32.gmra.mxu2 %vm439_vm2, %v3069_v4  ;;  %4494 = vst [vmem:[#allocation21_spill] sm:$0xff] %v3109_v41  ;;  %v3167_v16 = vsel %vm356_vm1, %v427_v35, %v428_v36  ;;  %v390_v35 = vrot.slane %v4380_v53, 1  ;;  %v4505_v53 = vunpack.c.l.bf16 %v3152_v32  ;;  %v3206_v5 = vunpack.c.l.bf16 %v220_v63 }
  0x29   : > { %2435 = vmatmul.msk.f32.gmra.mxu3 %vm439_vm2, %v3075_v18  ;;  %4495 = vst [vmem:[#allocation22_spill] sm:$0xff] %v3114_v49  ;;  %v3189_v1 = vsel %vm356_vm1, %v367_v17, %v368_v3  ;;  %v244_v17 = vld [vmem:[%s2941_s5 + $0xb4] sm:$0xff]  }
  0x2a   : > { %4496 = vst [vmem:[#allocation23_spill] sm:$0xff] %v3119_v54  ;;  %v430_v52 = vrot.slane %v4505_v53, 1  ;;  %v3213_v18 = vsel %vm356_vm1, %v388_v62, %v390_v35  ;;  %v3225_v51 = vunpack.c.l.bf16 %v244_v17  ;;  %v3246_v35 = vunpack.c.l.bf16 %v208_v50 }
  0x2b   : > { %2411 = vmatmul.msk.f32.gmra.mxu0 %vm439_vm2, %v3092_v24  ;;  %4497 = vst [vmem:[#allocation24_spill] sm:$0xff] %v3121_v56  ;;  %v3210_v56 = vunpack.c.l.bf16 %v232_v40 }
  0x2c   : > { %4498 = vst [vmem:[#allocation25_spill] sm:$0xff] %v3123_v58  ;;  %v410_v58 = vrot.slane %v4504_v57, 1  ;;  %v3208_v57 = vunpack.c.h.bf16 %v220_v63  ;;  %v3223_v23 = vsel %vm356_vm1, %v428_v36, %v430_v52  ;;  %v3227_v63 = vunpack.c.h.bf16 %v244_v17  ;;  %v3244_v36 = vld [vmem:[%s2941_s5 + $0x5c] sm:$0x1] }
  0x2d   : > { %4499 = vst [vmem:[#allocation26_spill] sm:$0xff] %v3149_v19  ;;  %v412_v52 = vrot.slane %v3210_v56, 1  ;;  %v3248_v17 = vunpack.c.h.bf16 %v208_v50  ;;  %v432_v15 = vrot.slane %v3225_v51, 1  ;;  %v4416_v50 = vunpack.c.l.bf16 %v3244_v36  ;;  %v3279_v19 = vld [vmem:[%s2941_s5 + $0x2c] sm:$0x1] }
  0x2e   : > { %4500 = vst [vmem:[#allocation27_spill] sm:$0xff] %v3152_v32  ;;  %v3216_v53 = vsel %vm356_vm1, %v408_v6, %v410_v58  ;;  %v393_v58 = vrot.slane %v3208_v57, 1 }
  0x2f   : > { %4501 = vst [vmem:[#allocation28_spill] sm:$0xff] %v3155_v7 }
  0x30   : > { %2420 = vmatmul.msk.f32.gmra.mxu1 %vm439_vm2, %v3109_v41  ;;  %2428 = vmatmul.msk.f32.gmra.mxu2 %vm439_vm2, %v3112_v42  ;;  %4502 = vst [vmem:[#allocation29_spill] sm:$0xff] %v3161_v55 }
  0x31   : > { %2436 = vmatmul.msk.f32.gmra.mxu3 %vm439_vm2, %v3119_v54  ;;  %4503 = vst [vmem:[#allocation30_spill] sm:$0xff] %v3167_v16  ;;  %v2644_v54 = vld [vmem:[%s4359_s1 + $0x1c] sm:$0xf] }
  0x32   : > { %2645 = vmatpush.msk.msra.mxu3 %vm504_vm0, %v2644_v54  ;;  %4506 = vst [vmem:[#allocation31_spill] sm:$0xff] %v3206_v5  ;;  %v3218_v54 = vunpack.c.h.bf16 %v232_v40  ;;  %v392_v40 = vrot.slane %v3206_v5, 1 }
  0x33   : > { %2412 = vmatmul.msk.f32.gmra.mxu0 %vm439_vm2, %v3137_v21  ;;  %4507 = vst [vmem:[#allocation32_spill] sm:$0xff] %v3208_v57 }
  0x34   : > { %4508 = vst [vmem:[#allocation33_spill] sm:$0xff] %v3210_v56  ;;  %v413_v62 = vrot.slane %v3218_v54, 1 }
  0x35   : > { %4509 = vst [vmem:[#allocation34_spill] sm:$0xff] %v3213_v18 }
  0x36   : > { %4510 = vst [vmem:[#allocation35_spill] sm:$0xff] %v3216_v53  ;;  %v3269_v14 = vsel %vm356_vm1, %v412_v52, %v413_v62  ;;  %v395_v52 = vrot.slane %v4416_v50, 1 }
  0x37   : > { %4511 = vst [vmem:[#allocation36_spill] sm:$0xff] %v3218_v54  ;;  %v373_v54 = vrot.slane %v3248_v17, 1 }
  0x38   : > { %2421 = vmatmul.msk.f32.gmra.mxu1 %vm439_vm2, %v3155_v7  ;;  %2429 = vmatmul.msk.f32.gmra.mxu2 %vm439_vm2, %v3161_v55  ;;  %4513 = vst [vmem:[#allocation37_spill] sm:$0xff] %v3223_v23 }
  0x39   : > { %2437 = vmatmul.msk.f32.gmra.mxu3 %vm439_vm2, %v3167_v16  ;;  %v2576_v16 = vld [vmem:[%s4359_s1 + $0x14] sm:$0xf]  ;;  %4514 = vst [vmem:[#allocation38_spill] sm:$0xff] %v3225_v51  ;;  %v4417_v51 = vunpack.c.l.bf16 %v3256_v31 }
  0x3a   : > { %2577 = vmatpush.msk.msra.mxu1 %vm504_vm0, %v2576_v16  ;;  %v4512_v16 = vunpack.c.l.bf16 %v3171_v34  ;;  %4515 = vst [vmem:[#allocation39_spill] sm:$0xff] %v3227_v63 }
  0x3b   : > { %2413 = vmatmul.msk.f32.gmra.mxu0 %vm439_vm2, %v3189_v1  ;;  %4517 = vst [vmem:[#allocation41_spill] sm:$0xff] %v3269_v14 }
  0x3c   : > { %v370_v32 = vrot.slane %v4512_v16, 1  ;;  %v2678_v16 = vld [vmem:[%s4359_s1 + $0x20] sm:$0xf] }
  0x3d   : > { %2679 = vmatpush.msk.msra.mxu0 %vm504_vm0, %v2678_v16 }
  0x3e   : > { %v3241_v6 = vsel %vm356_vm1, %v368_v3, %v370_v32  ;;  %v3260_v32 = vld [vmem:[%s2941_s5 + $0xbc] sm:$0x1]  ;;  %v3263_v3 = vsel %vm356_vm1, %v392_v40, %v393_v58  ;;  %v264_v40 = vunpack.c.l.bf16 %v3279_v19  ;;  %v802_v19 = vrot.slane %v2982_v28, 2 }
  0x3f   : > { %4516 = vst [vmem:[#allocation40_spill] sm:$0xff] %v3263_v3 }
  0x40   : > { %2422 = vmatmul.msk.f32.gmra.mxu1 %vm439_vm2, %v3213_v18  ;;  %2430 = vmatmul.msk.f32.gmra.mxu2 %vm439_vm2, %v3216_v53  ;;  %v4519_v53 = vunpack.c.l.bf16 %v3260_v32  ;;  %v375_v50 = vrot.slane %v264_v40, 1 }
  0x41   : > { %2438 = vmatmul.msk.f32.gmra.mxu3 %vm439_vm2, %v3223_v23  ;;  %v433_v23 = vrot.slane %v3227_v63, 1  ;;  %v372_v63 = vrot.slane %v3246_v35, 1 }
  0x42   : > { %v435_v49 = vrot.slane %v4519_v53, 1  ;;  %v803_v53 = vrot.slane %v2984_v29, 2 }
  0x43   : > { %2414 = vmatmul.msk.f32.gmra.mxu0 %vm439_vm2, %v3241_v6  ;;  %v3275_v16 = vsel %vm356_vm1, %v432_v15, %v433_v23  ;;  %v415_v15 = vrot.slane %v4417_v51, 1  ;;  %v3292_v56 = vsel %vm356_vm1, %v372_v63, %v373_v54  ;;  %v3317_v63 = vsel %vm356_vm1, %v373_v54, %v375_v50 }
  0x44   : > { %4518 = vst [vmem:[#allocation42_spill] sm:$0xff] %v3275_v16  ;;  %v3306_v51 = vsel %vm356_vm1, %v433_v23, %v435_v49  ;;  %v804_v23 = vsel %vm801_vm3, %v802_v19, %v803_v53  ;;  %v4522_v49 = vunpack.c.l.bf16 %v2987_v30  ;;  %v817_v19 = vrot.slane %v3246_v35, 2 }
  0x48   : > { %2423 = vmatmul.msk.f32.gmra.mxu1 %vm439_vm2, %v3263_v3  ;;  %2431 = vmatmul.msk.f32.gmra.mxu2 %vm439_vm2, %v3269_v14  ;;  %v3300_v14 = vsel %vm356_vm1, %v393_v58, %v395_v52  ;;  %v805_v58 = vrot.slane %v4522_v49, 2 }
  0x49   : > { %2439 = vmatmul.msk.f32.gmra.mxu3 %vm439_vm2, %v3275_v16  ;;  %4520 = vst [vmem:[#allocation43_spill] sm:$0xff] %v3300_v14  ;;  %v3303_v16 = vsel %vm356_vm1, %v413_v62, %v415_v15  ;;  %v808_v62 = vrot.slane %v3053_v61, 2 }
  0x4a   : > { %4521 = vst [vmem:[#allocation44_spill] sm:$0xff] %v3303_v16  ;;  %v806_v54 = vsel %vm801_vm3, %v803_v53, %v805_v58  ;;  %v822_v58 = vrot.slane %v2946_v8, 2 }
  0x4b   : > { %2415 = vmatmul.msk.f32.gmra.mxu0 %vm439_vm2, %v3292_v56 }
  0x50   : > { %2424 = vmatmul.msk.f32.gmra.mxu1 %vm439_vm2, %v3300_v14  ;;  %2432 = vmatmul.msk.f32.gmra.mxu2 %vm439_vm2, %v3303_v16 }
  0x51   : > { %2440 = vmatmul.msk.f32.gmra.mxu3 %vm439_vm2, %v3306_v51 }
  0x53   : > { %2416 = vmatmul.msk.f32.gmra.mxu0 %vm439_vm2, %v3317_v63 }
  0x58   : > { %2442 = vmatmul.msk.f32.vlgmr.msrb.gmra.mxu1 %vm439_vm2, %v2982_v28  ;;  %2476 = vmatmul.msk.f32.vlgmr.msrb.gmra.mxu2 %vm439_vm2, %v804_v23  ;;  %v807_v28 = vrot.slane %v3051_v60, 2  ;;  %v820_v23 = vrot.slane %v264_v40, 2 }
  0x59   : > { %2510 = vmatmul.msk.f32.vlgmr.msrb.gmra.mxu3 %vm439_vm2, %v3051_v60 }
  0x5a   : > { %v3342_v30 = vsel %vm801_vm3, %v807_v28, %v808_v62 }
  0x5b   : > { %2544 = vmatmul.msk.f32.vlgmr.msrb.gmra.mxu0 %vm439_vm2, %v3092_v24 }
  0x60   : > { %2443 = vmatmul.msk.f32.gmra.mxu1 %vm439_vm2, %v2984_v29  ;;  %2477 = vmatmul.msk.f32.gmra.mxu2 %vm439_vm2, %v806_v54  ;;  %v4523_v29 = vunpack.c.l.bf16 %v3079_v20  ;;  %v813_v20 = vrot.slane %v3144_v33, 2  ;;  %v823_v54 = vrot.slane %v2948_v9, 2 }
  0x61   : > { %2511 = vmatmul.msk.f32.gmra.mxu3 %vm439_vm2, %v3053_v61 }
  0x62   : > { %v810_v24 = vrot.slane %v4523_v29, 2  ;;  %v3420_v28 = vsel %vm801_vm3, %v822_v58, %v823_v54  ;;  %v4525_v29 = vunpack.c.l.bf16 %v2955_v12 }
  0x63   : > { %2545 = vmatmul.msk.f32.gmra.mxu0 %vm439_vm2, %v3137_v21 }
  0x64   : > { %v3355_v21 = vsel %vm801_vm3, %v808_v62, %v810_v24  ;;  %v825_v24 = vrot.slane %v4525_v29, 2 }
  0x68   : > { %2444 = vmatmul.msk.f32.gmra.mxu1 %vm439_vm2, %v3051_v60  ;;  %2478 = vmatmul.msk.f32.gmra.mxu2 %vm439_vm2, %v3342_v30  ;;  %v812_v60 = vrot.slane %v3142_v25, 2 }
  0x69   : > { %2512 = vmatmul.msk.f32.gmra.mxu3 %vm439_vm2, %v3142_v25 }
  0x6a   : > { %v3368_v50 = vsel %vm801_vm3, %v812_v60, %v813_v20 }
  0x6b   : > { %2546 = vmatmul.msk.f32.gmra.mxu0 %vm439_vm2, %v3189_v1 }
  0x70   : > { %2445 = vmatmul.msk.f32.gmra.mxu1 %vm439_vm2, %v3053_v61  ;;  %2479 = vmatmul.msk.f32.gmra.mxu2 %vm439_vm2, %v3355_v21  ;;  %v4524_v61 = vunpack.c.l.bf16 %v3171_v34  ;;  %v818_v34 = vrot.slane %v3248_v17, 2 }
  0x71   : > { %2513 = vmatmul.msk.f32.gmra.mxu3 %vm439_vm2, %v3144_v33 }
  0x72   : > { %v815_v52 = vrot.slane %v4524_v61, 2  ;;  %v3394_v53 = vsel %vm801_vm3, %v817_v19, %v818_v34  ;;  %v3405_v49 = vsel %vm801_vm3, %v818_v34, %v820_v23  ;;  %v827_v19 = vrot.slane %v3013_v43, 2 }
  0x73   : > { %2547 = vmatmul.msk.f32.gmra.mxu0 %vm439_vm2, %v3241_v6  ;;  %v828_v34 = vrot.slane %v3015_v44, 2 }
  0x74   : > { %v3381_v15 = vsel %vm801_vm3, %v813_v20, %v815_v52  ;;  %v3441_v52 = vsel %vm801_vm3, %v823_v54, %v825_v24 }
  0x75   : > { %4527 = vst [vmem:[#allocation46_spill] sm:$0xff] %v3441_v52  ;;  %v3462_v29 = vsel %vm801_vm3, %v827_v19, %v828_v34 }
  0x76   : > { %4529 = vst [vmem:[#allocation48_spill] sm:$0xff] %v3462_v29 }
  0x78   : > { %2446 = vmatmul.msk.f32.gmra.mxu1 %vm439_vm2, %v3142_v25  ;;  %2480 = vmatmul.msk.f32.gmra.mxu2 %vm439_vm2, %v3368_v50 }
  0x79   : > { %2514 = vmatmul.msk.f32.gmra.mxu3 %vm439_vm2, %v3246_v35 }
  0x7b   : > { %2548 = vmatmul.msk.f32.gmra.mxu0 %vm439_vm2, %v3292_v56 }
  0x80   : > { %2447 = vmatmul.msk.f32.gmra.mxu1 %vm439_vm2, %v3144_v33  ;;  %2481 = vmatmul.msk.f32.gmra.mxu2 %vm439_vm2, %v3381_v15 }
  0x81   : > { %2515 = vmatmul.msk.f32.gmra.mxu3 %vm439_vm2, %v3248_v17 }
  0x83   : > { %2549 = vmatmul.msk.f32.gmra.mxu0 %vm439_vm2, %v3317_v63 }
  0x88   : > { %2448 = vmatmul.msk.f32.gmra.mxu1 %vm439_vm2, %v3246_v35  ;;  %2482 = vmatmul.msk.f32.gmra.mxu2 %vm439_vm2, %v3394_v53 }
  0x89   : > { %2516 = vmatmul.msk.f32.gmra.mxu3 %vm439_vm2, %v2946_v8 }
  0x8b   : > { %2550 = vmatmul.msk.f32.gmra.mxu0 %vm439_vm2, %v2977_v26 }
  0x90   : > { %2449 = vmatmul.msk.f32.gmra.mxu1 %vm439_vm2, %v3248_v17  ;;  %2483 = vmatmul.msk.f32.gmra.mxu2 %vm439_vm2, %v3405_v49 }
  0x91   : > { %2517 = vmatmul.msk.f32.gmra.mxu3 %vm439_vm2, %v2948_v9 }
  0x93   : > { %2551 = vmatmul.msk.f32.gmra.mxu0 %vm439_vm2, %v3020_v46 }
  0x95   : > { %v3417_v40 = vpop.f32.mrf.mxu1 }
  0x98   : > { %2450 = vmatmul.msk.f32.gmra.mxu1 %vm439_vm2, %v2946_v8  ;;  %2484 = vmatmul.msk.f32.gmra.mxu2 %vm439_vm2, %v3420_v28  ;;  %v3428_v62 = vpop.f32.mrf.mxu0 }
  0x99   : > { %2518 = vmatmul.msk.f32.gmra.mxu3 %vm439_vm2, %v3013_v43 }
  0x9b   : > { %v3432_v60 = vpop.f32.mrf.mxu2  ;;  %2552 = vmatmul.msk.f32.gmra.mxu0 %vm439_vm2, %v3064_v2 }
  0x9c   : > { %v3434_v20 = vpop.f32.mrf.mxu3 }
  0x9d   : > { %4526 = vst [vmem:[#allocation45_spill] sm:$0xff] %v3434_v20  ;;  %v3438_v61 = vpop.f32.mrf.mxu1 }
  0xa0   : > { %2451 = vmatmul.msk.f32.gmra.mxu1 %vm439_vm2, %v2948_v9  ;;  %2485 = vmatmul.msk.f32.gmra.mxu2 %vm439_vm2, %v3441_v52  ;;  %v3449_v12 = vpop.f32.mrf.mxu0 }
  0xa1   : > { %2519 = vmatmul.msk.f32.gmra.mxu3 %vm439_vm2, %v3015_v44 }
  0xa3   : > { %v3453_v23 = vpop.f32.mrf.mxu2  ;;  %2553 = vmatmul.msk.f32.gmra.mxu0 %vm439_vm2, %v3109_v41 }
  0xa4   : > { %v3455_v58 = vpop.f32.mrf.mxu3 }
  0xa5   : > { %4528 = vst [vmem:[#allocation47_spill] sm:$0xff] %v3455_v58  ;;  %v3459_v54 = vpop.f32.mrf.mxu1  ;;  %v4530_v58 = vunpack.c.l.bf16 %v3049_v59 }
  0xa7   : > { %v830_v20 = vrot.slane %v4530_v58, 2  ;;  %v832_v58 = vrot.slane %v3102_v37, 2 }
  0xa8   : > { %2452 = vmatmul.msk.f32.gmra.mxu1 %vm439_vm2, %v3013_v43  ;;  %2486 = vmatmul.msk.f32.gmra.mxu2 %vm439_vm2, %v3462_v29  ;;  %v3470_v24 = vpop.f32.mrf.mxu0 }
  0xa9   : > { %2520 = vmatmul.msk.f32.gmra.mxu3 %vm439_vm2, %v3102_v37  ;;  %v3483_v43 = vsel %vm801_vm3, %v828_v34, %v830_v20 }
  0xaa   : > { %4532 = vst [vmem:[#allocation50_spill] sm:$0xff] %v3483_v43 }
  0xab   : > { %v3474_v41 = vpop.f32.mrf.mxu2  ;;  %2554 = vmatmul.msk.f32.gmra.mxu0 %vm439_vm2, %v3155_v7 }
  0xac   : > { %v3476_v2 = vpop.f32.mrf.mxu3 }
  0xad   : > { %4531 = vst [vmem:[#allocation49_spill] sm:$0xff] %v3476_v2  ;;  %v3480_v19 = vpop.f32.mrf.mxu1  ;;  %v833_v2 = vrot.slane %v3104_v38, 2 }
  0xaf   : > { %v3504_v34 = vsel %vm801_vm3, %v832_v58, %v833_v2 }
  0xb0   : > { %2453 = vmatmul.msk.f32.gmra.mxu1 %vm439_vm2, %v3015_v44  ;;  %2487 = vmatmul.msk.f32.gmra.mxu2 %vm439_vm2, %v3483_v43  ;;  %v3491_v59 = vpop.f32.mrf.mxu0  ;;  %4534 = vst [vmem:[#allocation52_spill] sm:$0xff] %v3504_v34 }
  0xb1   : > { %2521 = vmatmul.msk.f32.gmra.mxu3 %vm439_vm2, %v3104_v38 }
  0xb3   : > { %v3495_v7 = vpop.f32.mrf.mxu2  ;;  %2555 = vmatmul.msk.f32.gmra.mxu0 %vm439_vm2, %v3213_v18 }
  0xb4   : > { %v3497_v29 = vpop.f32.mrf.mxu3 }
  0xb5   : > { %4533 = vst [vmem:[#allocation51_spill] sm:$0xff] %v3497_v29  ;;  %v3501_v20 = vpop.f32.mrf.mxu1  ;;  %v4535_v29 = vunpack.c.l.bf16 %v3140_v22 }
  0xb7   : > { %v835_v44 = vrot.slane %v4535_v29, 2  ;;  %v837_v29 = vrot.slane %v3206_v5, 2 }
  0xb8   : > { %2454 = vmatmul.msk.f32.gmra.mxu1 %vm439_vm2, %v3102_v37  ;;  %2488 = vmatmul.msk.f32.gmra.mxu2 %vm439_vm2, %v3504_v34  ;;  %v3512_v43 = vpop.f32.mrf.mxu0 }
  0xb9   : > { %2522 = vmatmul.msk.f32.gmra.mxu3 %vm439_vm2, %v3206_v5  ;;  %v3525_v37 = vsel %vm801_vm3, %v833_v2, %v835_v44 }
  0xba   : > { %4537 = vst [vmem:[#allocation54_spill] sm:$0xff] %v3525_v37 }
  0xbb   : > { %v3516_v18 = vpop.f32.mrf.mxu2  ;;  %2556 = vmatmul.msk.f32.gmra.mxu0 %vm439_vm2, %v3263_v3 }
  0xbc   : > { %v3518_v52 = vpop.f32.mrf.mxu3 }
  0xbd   : > { %4536 = vst [vmem:[#allocation53_spill] sm:$0xff] %v3518_v52  ;;  %v3522_v58 = vpop.f32.mrf.mxu1  ;;  %v838_v52 = vrot.slane %v3208_v57, 2 }
  0xbf   : > { %v3546_v2 = vsel %vm801_vm3, %v837_v29, %v838_v52 }
  0xc0   : > { %2455 = vmatmul.msk.f32.gmra.mxu1 %vm439_vm2, %v3104_v38  ;;  %2489 = vmatmul.msk.f32.gmra.mxu2 %vm439_vm2, %v3525_v37  ;;  %v3533_v22 = vpop.f32.mrf.mxu0  ;;  %4540 = vst [vmem:[#allocation57_spill] sm:$0xff] %v3546_v2 }
  0xc1   : > { %2523 = vmatmul.msk.f32.gmra.mxu3 %vm439_vm2, %v3208_v57 }
  0xc3   : > { %v3537_v3 = vpop.f32.mrf.mxu2  ;;  %2557 = vmatmul.msk.f32.gmra.mxu0 %vm439_vm2, %v3300_v14 }
  0xc4   : > { %4538 = vst [vmem:[#allocation55_spill] sm:$0xff] %v3537_v3  ;;  %v3539_v34 = vpop.f32.mrf.mxu3 }
  0xc5   : > { %4539 = vst [vmem:[#allocation56_spill] sm:$0xff] %v3539_v34  ;;  %v3543_v44 = vpop.f32.mrf.mxu1  ;;  %v4541_v34 = vunpack.c.l.bf16 %v3244_v36 }
  0xc7   : > { %v840_v38 = vrot.slane %v4541_v34, 2  ;;  %v842_v34 = vrot.slane %v2950_v10, 2 }
  0xc8   : > { %2456 = vmatmul.msk.f32.gmra.mxu1 %vm439_vm2, %v3206_v5  ;;  %2490 = vmatmul.msk.f32.gmra.mxu2 %vm439_vm2, %v3546_v2  ;;  %v3554_v37 = vpop.f32.mrf.mxu0 }
  0xc9   : > { %2524 = vmatmul.msk.f32.gmra.mxu3 %vm439_vm2, %v2950_v10  ;;  %v3567_v5 = vsel %vm801_vm3, %v838_v52, %v840_v38 }
  0xca   : > { %4544 = vst [vmem:[#allocation60_spill] sm:$0xff] %v3567_v5 }
  0xcb   : > { %v3558_v14 = vpop.f32.mrf.mxu2  ;;  %2558 = vmatmul.msk.f32.gmra.mxu0 %vm439_vm2, %v2980_v27 }
  0xcc   : > { %4542 = vst [vmem:[#allocation58_spill] sm:$0xff] %v3558_v14  ;;  %v3560_v3 = vpop.f32.mrf.mxu3 }
  0xcd   : > { %4543 = vst [vmem:[#allocation59_spill] sm:$0xff] %v3560_v3  ;;  %v3564_v29 = vpop.f32.mrf.mxu1  ;;  %v843_v3 = vrot.slane %v2952_v11, 2 }
  0xcf   : > { %v3586_v52 = vsel %vm801_vm3, %v842_v34, %v843_v3 }
  0xd0   : > { %2457 = vmatmul.msk.f32.gmra.mxu1 %vm439_vm2, %v3208_v57  ;;  %2491 = vmatmul.msk.f32.gmra.mxu2 %vm439_vm2, %v3567_v5  ;;  %v3575_v36 = vpop.f32.mrf.mxu0  ;;  %4547 = vst [vmem:[#allocation63_spill] sm:$0xff] %v3586_v52  ;;  %v4548_v57 = vunpack.c.l.bf16 %v2958_v13 }
  0xd1   : > { %2525 = vmatmul.msk.f32.gmra.mxu3 %vm439_vm2, %v2952_v11 }
  0xd3   : > { %v3579_v27 = vpop.f32.mrf.mxu2  ;;  %2559 = vmatmul.msk.f32.gmra.mxu0 %vm439_vm2, %v3023_v47 }
  0xd4   : > { %4545 = vst [vmem:[#allocation61_spill] sm:$0xff] %v3579_v27  ;;  %v3581_v2 = vpop.f32.mrf.mxu3 }
  0xd5   : > { %4546 = vst [vmem:[#allocation62_spill] sm:$0xff] %v3581_v2  ;;  %v705_v38 = vpop.f32.mrf.mxu1  ;;  %v845_v2 = vrot.slane %v4548_v57, 2 }
  0xd6   : > { %v706_v27 = vadd.f32 %v705_v38, %v3428_v62 }
  0xd8   : > { %2458 = vmatmul.msk.f32.gmra.mxu1 %vm439_vm2, %v2950_v10  ;;  %2492 = vmatmul.msk.f32.gmra.mxu2 %vm439_vm2, %v3586_v52  ;;  %v1284_v5 = vpop.f32.mrf.mxu0  ;;  %v3600_v10 = vsel %vm801_vm3, %v843_v3, %v845_v2 }
  0xd9   : > { %2526 = vmatmul.msk.f32.gmra.mxu3 %vm439_vm2, %v3017_v45 }
  0xdb   : > { %v968_v47 = vpop.f32.mrf.mxu2  ;;  %2560 = vmatmul.msk.f32.gmra.mxu0 %vm439_vm2, %v3069_v4 }
  0xdc   : > { %v1064_v14 = vadd.f32 %v968_v47, %v706_v27  ;;  %v1124_v46 = vpop.f32.mrf.mxu3  ;;  %v847_v27 = vrot.slane %v3017_v45, 2  ;;  %v848_v47 = vrot.slane %v3025_v48, 2 }
  0xdd   : > { %v708_v34 = vpop.f32.mrf.mxu1 }
  0xde   : > { %v1220_v52 = vadd.f32 %v1124_v46, %v1064_v14  ;;  %v709_v57 = vadd.f32 %v708_v34, %v3449_v12  ;;  %v3616_v62 = vsel %vm801_vm3, %v847_v27, %v848_v47 }
  0xe0   : > { %v3602_v9 = vadd.f32 %v1284_v5, %v1220_v52  ;;  %2459 = vmatmul.msk.f32.gmra.mxu1 %vm439_vm2, %v2952_v11  ;;  %2493 = vmatmul.msk.f32.gmra.mxu2 %vm439_vm2, %v3600_v10  ;;  %v1287_v13 = vpop.f32.mrf.mxu0  ;;  %v4551_v52 = vunpack.c.l.bf16 %v3058_v0  ;;  %v4553_v0 = vld [vmem:[#allocation22_spill] sm:$0xff] }
  0xe1   : > { %2527 = vmatmul.msk.f32.gmra.mxu3 %vm439_vm2, %v3025_v48 }
  0xe2   : > { %4549 = vst [vmem:[#allocation64_spill] sm:$0xff] %v3602_v9  ;;  %v850_v34 = vrot.slane %v4551_v52, 2  ;;  %v853_v52 = vrot.slane %v4553_v0, 2 }
  0xe3   : > { %v971_v3 = vpop.f32.mrf.mxu2  ;;  %2561 = vmatmul.msk.f32.gmra.mxu0 %vm439_vm2, %v3112_v42 }
  0xe4   : > { %v1065_v14 = vadd.f32 %v971_v3, %v709_v57  ;;  %v1127_v46 = vpop.f32.mrf.mxu3 }
  0xe5   : > { %v711_v5 = vpop.f32.mrf.mxu1 }
  0xe6   : > { %v1221_v2 = vadd.f32 %v1127_v46, %v1065_v14  ;;  %v712_v57 = vadd.f32 %v711_v5, %v3470_v24  ;;  %v3632_v46 = vsel %vm801_vm3, %v848_v47, %v850_v34  ;;  %v852_v5 = vrot.slane %v3106_v39, 2 }
  0xe8   : > { %v3618_v38 = vadd.f32 %v1287_v13, %v1221_v2  ;;  %2460 = vmatmul.msk.f32.gmra.mxu1 %vm439_vm2, %v3017_v45  ;;  %2494 = vmatmul.msk.f32.gmra.mxu2 %vm439_vm2, %v3616_v62  ;;  %v1290_v12 = vpop.f32.mrf.mxu0 }
  0xe9   : > { %2528 = vmatmul.msk.f32.gmra.mxu3 %vm439_vm2, %v3106_v39 }
  0xea   : > { %4550 = vst [vmem:[#allocation65_spill] sm:$0xff] %v3618_v38 }
  0xeb   : > { %v974_v27 = vpop.f32.mrf.mxu2  ;;  %2562 = vmatmul.msk.f32.gmra.mxu0 %vm439_vm2, %v3161_v55 }
  0xec   : > { %v1066_v3 = vadd.f32 %v974_v27, %v712_v57  ;;  %v1130_v14 = vpop.f32.mrf.mxu3  ;;  %v4554_v27 = vld [vmem:[#allocation35_spill] sm:$0xff] }
  0xed   : > { %v714_v13 = vpop.f32.mrf.mxu1 }
  0xee   : > { %v1222_v2 = vadd.f32 %v1130_v14, %v1066_v3  ;;  %v715_v47 = vadd.f32 %v714_v13, %v3491_v59  ;;  %v3648_v14 = vsel %vm801_vm3, %v852_v5, %v853_v52  ;;  %v4557_v59 = vld [vmem:[#allocation33_spill] sm:$0xff] }
  0xef   : > { %4555 = vst [vmem:[#allocation22_spill] sm:$0xff] %v3648_v14 }
  0xf0   : > { %v3634_v38 = vadd.f32 %v1290_v12, %v1222_v2  ;;  %2461 = vmatmul.msk.f32.gmra.mxu1 %vm439_vm2, %v3025_v48  ;;  %2495 = vmatmul.msk.f32.gmra.mxu2 %vm439_vm2, %v3632_v46  ;;  %v1293_v24 = vpop.f32.mrf.mxu0 }
  0xf1   : > { %2529 = vmatmul.msk.f32.gmra.mxu3 %vm439_vm2, %v4553_v0 }
  0xf2   : > { %4552 = vst [vmem:[#allocation66_spill] sm:$0xff] %v3634_v38 }
  0xf3   : > { %v977_v34 = vpop.f32.mrf.mxu2  ;;  %2563 = vmatmul.msk.f32.gmra.mxu0 %vm439_vm2, %v4554_v27 }
  0xf4   : > { %v1067_v57 = vadd.f32 %v977_v34, %v715_v47  ;;  %v1133_v12 = vpop.f32.mrf.mxu3  ;;  %v4558_v47 = vld [vmem:[#allocation26_spill] sm:$0xff] }
  0xf5   : > { %v717_v3 = vpop.f32.mrf.mxu1  ;;  %v4559_v34 = vunpack.c.l.bf16 %v4558_v47 }
  0xf6   : > { %v1223_v2 = vadd.f32 %v1133_v12, %v1067_v57  ;;  %v718_v9 = vadd.f32 %v717_v3, %v3512_v43  ;;  %v4562_v43 = vld [vmem:[#allocation36_spill] sm:$0xff]  ;;  %v857_v3 = vrot.slane %v4557_v59, 2 }
  0xf7   : > { %v855_v27 = vrot.slane %v4559_v34, 2  ;;  %v858_v47 = vrot.slane %v4562_v43, 2 }
  0xf8   : > { %v3650_v38 = vadd.f32 %v1293_v24, %v1223_v2  ;;  %2462 = vmatmul.msk.f32.gmra.mxu1 %vm439_vm2, %v3106_v39  ;;  %2496 = vmatmul.msk.f32.gmra.mxu2 %vm439_vm2, %v3648_v14  ;;  %v1296_v13 = vpop.f32.mrf.mxu0  ;;  %v4560_v24 = vld [vmem:[#allocation41_spill] sm:$0xff] }
  0xf9   : > { %2530 = vmatmul.msk.f32.gmra.mxu3 %vm439_vm2, %v4557_v59  ;;  %v3664_v2 = vsel %vm801_vm3, %v853_v52, %v855_v27  ;;  %v3680_v34 = vsel %vm801_vm3, %v857_v3, %v858_v47 }
  0xfa   : > { %4556 = vst [vmem:[#allocation67_spill] sm:$0xff] %v3650_v38 }
  0xfb   : > { %v980_v5 = vpop.f32.mrf.mxu2  ;;  %2564 = vmatmul.msk.f32.gmra.mxu0 %vm439_vm2, %v4560_v24  ;;  %4563 = vst [vmem:[#allocation26_spill] sm:$0xff] %v3680_v34 }
  0xfc   : > { %v1068_v55 = vadd.f32 %v980_v5, %v718_v9  ;;  %v1136_v57 = vpop.f32.mrf.mxu3 }
  0xfd   : > { %v720_v12 = vpop.f32.mrf.mxu1 }
  0xfe   : > { %v1224_v38 = vadd.f32 %v1136_v57, %v1068_v55  ;;  %v721_v52 = vadd.f32 %v720_v12, %v3533_v22  ;;  %v4565_v22 = vld [vmem:[#allocation4_spill] sm:$0xff] }
 0x100   : > { %v3666_v14 = vadd.f32 %v1296_v13, %v1224_v38  ;;  %2463 = vmatmul.msk.f32.gmra.mxu1 %vm439_vm2, %v4553_v0  ;;  %2497 = vmatmul.msk.f32.gmra.mxu2 %vm439_vm2, %v3664_v2  ;;  %v1299_v9 = vpop.f32.mrf.mxu0 }
 0x101   : > { %2531 = vmatmul.msk.f32.gmra.mxu3 %vm439_vm2, %v4562_v43 }
 0x102   : > { %4561 = vst [vmem:[#allocation33_spill] sm:$0xff] %v3666_v14 }
 0x103   : > { %v983_v27 = vpop.f32.mrf.mxu2  ;;  %2565 = vmatmul.msk.f32.gmra.mxu0 %vm439_vm2, %v3303_v16 }
 0x104   : > { %v1069_v55 = vadd.f32 %v983_v27, %v721_v52  ;;  %v1139_v38 = vpop.f32.mrf.mxu3  ;;  %v4566_v52 = vunpack.c.l.bf16 %v3256_v31  ;;  %v4570_v31 = vld [vmem:[#allocation5_spill] sm:$0xff] }
 0x105   : > { %v723_v13 = vpop.f32.mrf.mxu1 }
 0x106   : > { %v1225_v5 = vadd.f32 %v1139_v38, %v1069_v55  ;;  %v860_v27 = vrot.slane %v4566_v52, 2  ;;  %v724_v14 = vadd.f32 %v723_v13, %v3554_v37  ;;  %v863_v13 = vrot.slane %v4570_v31, 2 }
 0x108   : > { %v3682_v57 = vadd.f32 %v1299_v9, %v1225_v5  ;;  %2464 = vmatmul.msk.f32.gmra.mxu1 %vm439_vm2, %v4557_v59  ;;  %2498 = vmatmul.msk.f32.gmra.mxu2 %vm439_vm2, %v3680_v34  ;;  %v1302_v12 = vpop.f32.mrf.mxu0  ;;  %v4567_v9 = vld [vmem:[#allocation8_spill] sm:$0xff]  ;;  %v3696_v5 = vsel %vm801_vm3, %v858_v47, %v860_v27 }
 0x109   : > { %2532 = vmatmul.msk.f32.gmra.mxu3 %vm439_vm2, %v4565_v22  ;;  %4568 = vst [vmem:[#allocation36_spill] sm:$0xff] %v3696_v5 }
 0x10a   : > { %4564 = vst [vmem:[#allocation41_spill] sm:$0xff] %v3682_v57 }
 0x10b   : > { %v986_v3 = vpop.f32.mrf.mxu2  ;;  %2566 = vmatmul.msk.f32.gmra.mxu0 %vm439_vm2, %v4567_v9 }
 0x10c   : > { %v1070_v16 = vadd.f32 %v986_v3, %v724_v14  ;;  %v1142_v55 = vpop.f32.mrf.mxu3  ;;  %v862_v14 = vrot.slane %v4565_v22, 2 }
 0x10d   : > { %v726_v38 = vpop.f32.mrf.mxu1 }
 0x10e   : > { %v1226_v57 = vadd.f32 %v1142_v55, %v1070_v16  ;;  %v727_v47 = vadd.f32 %v726_v38, %v3575_v36  ;;  %v3712_v3 = vsel %vm801_vm3, %v862_v14, %v863_v13  ;;  %v4574_v36 = vld [vmem:[#allocation14_spill] sm:$0xff] }
 0x10f   : > { %4572 = vst [vmem:[#allocation5_spill] sm:$0xff] %v3712_v3 }
 0x110   : > { %v3698_v34 = vadd.f32 %v1302_v12, %v1226_v57  ;;  %2465 = vmatmul.msk.f32.gmra.mxu1 %vm439_vm2, %v4562_v43  ;;  %2499 = vmatmul.msk.f32.gmra.mxu2 %vm439_vm2, %v3696_v5  ;;  %v1305_v37 = vpop.f32.mrf.mxu0  ;;  %v4571_v12 = vld [vmem:[#allocation13_spill] sm:$0xff] }
 0x111   : > { %2533 = vmatmul.msk.f32.gmra.mxu3 %vm439_vm2, %v4570_v31 }
 0x112   : > { %4569 = vst [vmem:[#allocation4_spill] sm:$0xff] %v3698_v34 }
 0x113   : > { %v989_v52 = vpop.f32.mrf.mxu2  ;;  %2567 = vmatmul.msk.f32.gmra.mxu0 %vm439_vm2, %v4571_v12 }
 0x114   : > { %v1071_v16 = vadd.f32 %v989_v52, %v727_v47  ;;  %v1145_v57 = vpop.f32.mrf.mxu3  ;;  %v4575_v47 = vld [vmem:[#allocation6_spill] sm:$0xff] }
 0x115   : > { %v729_v27 = vpop.f32.mrf.mxu1  ;;  %v4576_v52 = vunpack.c.l.bf16 %v4575_v47 }
 0x116   : > { %v1227_v55 = vadd.f32 %v1145_v57, %v1071_v16  ;;  %v730_v9 = vadd.f32 %v729_v27, %v3417_v40  ;;  %v4580_v40 = vld [vmem:[#allocation15_spill] sm:$0xff]  ;;  %v867_v27 = vrot.slane %v4574_v36, 2 }
 0x117   : > { %v865_v12 = vrot.slane %v4576_v52, 2  ;;  %v868_v47 = vrot.slane %v4580_v40, 2 }
 0x118   : > { %v3714_v34 = vadd.f32 %v1305_v37, %v1227_v55  ;;  %2466 = vmatmul.msk.f32.gmra.mxu1 %vm439_vm2, %v4565_v22  ;;  %2500 = vmatmul.msk.f32.gmra.mxu2 %vm439_vm2, %v3712_v3  ;;  %v1308_v38 = vpop.f32.mrf.mxu0  ;;  %v4577_v37 = vld [vmem:[#allocation18_spill] sm:$0xff] }
 0x119   : > { %2534 = vmatmul.msk.f32.gmra.mxu3 %vm439_vm2, %v4574_v36  ;;  %v3728_v55 = vsel %vm801_vm3, %v863_v13, %v865_v12 }
 0x11a   : > { %4573 = vst [vmem:[#allocation68_spill] sm:$0xff] %v3714_v34 }
 0x11b   : > { %v992_v14 = vpop.f32.mrf.mxu2  ;;  %2568 = vmatmul.msk.f32.gmra.mxu0 %vm439_vm2, %v4577_v37  ;;  %4578 = vst [vmem:[#allocation14_spill] sm:$0xff] %v3728_v55 }
 0x11c   : > { %v1072_v5 = vadd.f32 %v992_v14, %v730_v9  ;;  %v1148_v16 = vpop.f32.mrf.mxu3  ;;  %v3744_v14 = vsel %vm801_vm3, %v867_v27, %v868_v47 }
 0x11d   : > { %v732_v57 = vpop.f32.mrf.mxu1  ;;  %4582 = vst [vmem:[#allocation15_spill] sm:$0xff] %v3744_v14 }
 0x11e   : > { %v1228_v34 = vadd.f32 %v1148_v16, %v1072_v5  ;;  %v733_v13 = vadd.f32 %v732_v57, %v3438_v61  ;;  %v4584_v61 = vld [vmem:[#allocation24_spill] sm:$0xff] }
 0x120   : > { %v3730_v3 = vadd.f32 %v1308_v38, %v1228_v34  ;;  %2467 = vmatmul.msk.f32.gmra.mxu1 %vm439_vm2, %v4570_v31  ;;  %2501 = vmatmul.msk.f32.gmra.mxu2 %vm439_vm2, %v3728_v55  ;;  %v1311_v9 = vpop.f32.mrf.mxu0  ;;  %v4581_v38 = vld [vmem:[#allocation23_spill] sm:$0xff] }
 0x121   : > { %2535 = vmatmul.msk.f32.gmra.mxu3 %vm439_vm2, %v4580_v40 }
 0x122   : > { %4579 = vst [vmem:[#allocation6_spill] sm:$0xff] %v3730_v3 }
 0x123   : > { %v995_v12 = vpop.f32.mrf.mxu2  ;;  %2569 = vmatmul.msk.f32.gmra.mxu0 %vm439_vm2, %v4581_v38 }
 0x124   : > { %v1073_v5 = vadd.f32 %v995_v12, %v733_v13  ;;  %v1151_v34 = vpop.f32.mrf.mxu3  ;;  %v4585_v13 = vld [vmem:[#allocation16_spill] sm:$0xff] }
 0x125   : > { %v735_v52 = vpop.f32.mrf.mxu1  ;;  %v4586_v12 = vunpack.c.l.bf16 %v4585_v13 }
 0x126   : > { %v1229_v16 = vadd.f32 %v1151_v34, %v1073_v5  ;;  %v736_v37 = vadd.f32 %v735_v52, %v3459_v54  ;;  %v4590_v54 = vld [vmem:[#allocation25_spill] sm:$0xff]  ;;  %v872_v52 = vrot.slane %v4584_v61, 2 }
 0x127   : > { %v870_v38 = vrot.slane %v4586_v12, 2  ;;  %v873_v13 = vrot.slane %v4590_v54, 2 }
 0x128   : > { %v3746_v3 = vadd.f32 %v1311_v9, %v1229_v16  ;;  %2468 = vmatmul.msk.f32.gmra.mxu1 %vm439_vm2, %v4574_v36  ;;  %2502 = vmatmul.msk.f32.gmra.mxu2 %vm439_vm2, %v3744_v14  ;;  %v1314_v57 = vpop.f32.mrf.mxu0  ;;  %v4587_v9 = vld [vmem:[#allocation30_spill] sm:$0xff] }
 0x129   : > { %2536 = vmatmul.msk.f32.gmra.mxu3 %vm439_vm2, %v4584_v61  ;;  %v3760_v16 = vsel %vm801_vm3, %v868_v47, %v870_v38 }
 0x12a   : > { %4583 = vst [vmem:[#allocation69_spill] sm:$0xff] %v3746_v3 }
 0x12b   : > { %v998_v27 = vpop.f32.mrf.mxu2  ;;  %2570 = vmatmul.msk.f32.gmra.mxu0 %vm439_vm2, %v4587_v9  ;;  %4588 = vst [vmem:[#allocation16_spill] sm:$0xff] %v3760_v16 }
 0x12c   : > { %v1074_v55 = vadd.f32 %v998_v27, %v736_v37  ;;  %v1154_v5 = vpop.f32.mrf.mxu3  ;;  %v3776_v27 = vsel %vm801_vm3, %v872_v52, %v873_v13 }
 0x12d   : > { %v738_v34 = vpop.f32.mrf.mxu1  ;;  %4592 = vst [vmem:[#allocation71_spill] sm:$0xff] %v3776_v27 }
 0x12e   : > { %v1230_v3 = vadd.f32 %v1154_v5, %v1074_v55  ;;  %v739_v47 = vadd.f32 %v738_v34, %v3480_v19  ;;  %v4594_v19 = vld [vmem:[#allocation38_spill] sm:$0xff] }
 0x130   : > { %v3762_v14 = vadd.f32 %v1314_v57, %v1230_v3  ;;  %2469 = vmatmul.msk.f32.gmra.mxu1 %vm439_vm2, %v4580_v40  ;;  %2503 = vmatmul.msk.f32.gmra.mxu2 %vm439_vm2, %v3760_v16  ;;  %v1317_v37 = vpop.f32.mrf.mxu0  ;;  %v4591_v57 = vld [vmem:[#allocation37_spill] sm:$0xff]  ;;  %v3818_v16 = vld [vmem:[%s2941_s5 + $0xc8] sm:$0x1] }
 0x131   : > { %2537 = vmatmul.msk.f32.gmra.mxu3 %vm439_vm2, %v4590_v54 }
 0x132   : > { %4589 = vst [vmem:[#allocation70_spill] sm:$0xff] %v3762_v14 }
 0x133   : > { %v1001_v38 = vpop.f32.mrf.mxu2  ;;  %2571 = vmatmul.msk.f32.gmra.mxu0 %vm439_vm2, %v4591_v57 }
 0x134   : > { %v1075_v55 = vadd.f32 %v1001_v38, %v739_v47  ;;  %v1157_v3 = vpop.f32.mrf.mxu3  ;;  %v4595_v47 = vld [vmem:[#allocation27_spill] sm:$0xff] }
 0x135   : > { %v741_v12 = vpop.f32.mrf.mxu1  ;;  %v4596_v38 = vunpack.c.l.bf16 %v4595_v47  ;;  %v877_v47 = vrot.slane %v4594_v19, 2 }
 0x136   : > { %v1231_v5 = vadd.f32 %v1157_v3, %v1075_v55  ;;  %v742_v52 = vadd.f32 %v741_v12, %v3501_v20  ;;  %v4597_v3 = vld [vmem:[#allocation42_spill] sm:$0xff]  ;;  %v4600_v12 = vld [vmem:[#allocation39_spill] sm:$0xff] }
 0x137   : > { %v875_v57 = vrot.slane %v4596_v38, 2  ;;  %v2789_v20 = vld [vmem:[%s2941_s5 + $0xc0] sm:$0xff]  }
 0x138   : > { %v3778_v14 = vadd.f32 %v1317_v37, %v1231_v5  ;;  %2470 = vmatmul.msk.f32.gmra.mxu1 %vm439_vm2, %v4584_v61  ;;  %2504 = vmatmul.msk.f32.gmra.mxu2 %vm439_vm2, %v3776_v27  ;;  %v1320_v34 = vpop.f32.mrf.mxu0  ;;  %v3808_v38 = vunpack.c.l.bf16 %v2789_v20 }
 0x139   : > { %2538 = vmatmul.msk.f32.gmra.mxu3 %vm439_vm2, %v4594_v19 }
 0x13a   : > { %4593 = vst [vmem:[#allocation72_spill] sm:$0xff] %v3778_v14  ;;  %v3792_v14 = vsel %vm801_vm3, %v873_v13, %v875_v57  ;;  %v878_v13 = vrot.slane %v4600_v12, 2  ;;  %v3805_v57 = vunpack.c.h.bf16 %v2789_v20  ;;  %v4603_v20 = vunpack.c.l.bf16 %v3260_v32 }
 0x13b   : > { %v1004_v9 = vpop.f32.mrf.mxu2  ;;  %2572 = vmatmul.msk.f32.gmra.mxu0 %vm439_vm2, %v4597_v3  ;;  %4598 = vst [vmem:[#allocation38_spill] sm:$0xff] %v3792_v14  ;;  %v1253_v3 = vrot.slane %v3808_v38, 1 }
 0x13c   : > { %v1076_v55 = vadd.f32 %v1004_v9, %v742_v52  ;;  %v1160_v37 = vpop.f32.mrf.mxu3  ;;  %4601 = vst [vmem:[#allocation39_spill] sm:$0xff] %v3808_v38 }
 0x13d   : > { %v744_v5 = vpop.f32.mrf.mxu1 }
 0x13e   : > { %v1232_v27 = vadd.f32 %v1160_v37, %v1076_v55 }
 0x140   : > { %v3794_v61 = vadd.f32 %v1320_v34, %v1232_v27  ;;  %2471 = vmatmul.msk.f32.gmra.mxu1 %vm439_vm2, %v4590_v54  ;;  %2505 = vmatmul.msk.f32.gmra.mxu2 %vm439_vm2, %v3792_v14  ;;  %v1323_v9 = vpop.f32.mrf.mxu0  ;;  %v745_v27 = vadd.f32 %v744_v5, %v3522_v58  ;;  %v1254_v14 = vrot.slane %v3805_v57, 1 }
 0x141   : > { %2539 = vmatmul.msk.f32.gmra.mxu3 %vm439_vm2, %v4600_v12 }
 0x142   : > { %4599 = vst [vmem:[#allocation27_spill] sm:$0xff] %v3794_v61  ;;  %v3813_v61 = vsel %vm801_vm3, %v877_v47, %v878_v13  ;;  %v880_v47 = vrot.slane %v4603_v20, 2 }
 0x143   : > { %v1007_v34 = vpop.f32.mrf.mxu2  ;;  %2573 = vmatmul.msk.f32.gmra.mxu0 %vm439_vm2, %v3306_v51 }
 0x144   : > { %v1077_v52 = vadd.f32 %v1007_v34, %v745_v27  ;;  %v1163_v55 = vpop.f32.mrf.mxu3  ;;  %v3831_v27 = vsel %vm356_vm1, %v1253_v3, %v1254_v14  ;;  %v303_v34 = vunpack.c.l.bf16 %v3818_v16 }
 0x145   : > { %v747_v37 = vpop.f32.mrf.mxu1 }
 0x146   : > { %v1233_v54 = vadd.f32 %v1163_v55, %v1077_v52  ;;  %v1256_v32 = vrot.slane %v303_v34, 1 }
 0x148   : > { %v3820_v58 = vadd.f32 %v1323_v9, %v1233_v54  ;;  %2472 = vmatmul.msk.f32.gmra.mxu1 %vm439_vm2, %v4594_v19  ;;  %2506 = vmatmul.msk.f32.gmra.mxu2 %vm439_vm2, %v3813_v61  ;;  %v1326_v5 = vpop.f32.mrf.mxu0  ;;  %v748_v54 = vadd.f32 %v747_v37, %v3543_v44  ;;  %v3851_v37 = vsel %vm356_vm1, %v1254_v14, %v1256_v32 }
 0x149   : > { %2540 = vmatmul.msk.f32.gmra.mxu3 %vm439_vm2, %v3808_v38  ;;  %v3838_v38 = vsel %vm801_vm3, %v878_v13, %v880_v47 }
 0x14a   : > { %4602 = vst [vmem:[#allocation73_spill] sm:$0xff] %v3820_v58 }
 0x14b   : > { %v1010_v9 = vpop.f32.mrf.mxu2  ;;  %2574 = vmatmul.msk.f32.gmra.mxu0 %vm439_vm2, %v3831_v27 }
 0x14c   : > { %v1078_v52 = vadd.f32 %v1010_v9, %v748_v54  ;;  %v1166_v55 = vpop.f32.mrf.mxu3 }
 0x14d   : > { %v750_v58 = vpop.f32.mrf.mxu1 }
 0x14e   : > { %v1234_v20 = vadd.f32 %v1166_v55, %v1078_v52  ;;  %v751_v13 = vadd.f32 %v750_v58, %v3564_v29 }
 0x150   : > { %v3842_v3 = vadd.f32 %v1326_v5, %v1234_v20  ;;  %2473 = vmatmul.msk.f32.gmra.mxu1 %vm439_vm2, %v4600_v12  ;;  %2507 = vmatmul.msk.f32.gmra.mxu2 %vm439_vm2, %v3838_v38  ;;  %v1329_v44 = vpop.f32.mrf.mxu0 }
 0x151   : > { %2541 = vmatmul.msk.f32.gmra.mxu3 %vm439_vm2, %v3805_v57 }
 0x153   : > { %v1013_v47 = vpop.f32.mrf.mxu2  ;;  %2575 = vmatmul.msk.f32.gmra.mxu0 %vm439_vm2, %v3851_v37 }
 0x154   : > { %v1079_v54 = vadd.f32 %v1013_v47, %v751_v13  ;;  %v1169_v9 = vpop.f32.mrf.mxu3 }
 0x155   : > { %v753_v5 = vpop.f32.mrf.mxu1 }
 0x156   : > { %v1235_v52 = vadd.f32 %v1169_v9, %v1079_v54  ;;  %v754_v14 = vadd.f32 %v753_v5, %v3432_v60 }
 0x158   : > { %v3856_v55 = vadd.f32 %v1329_v44, %v1235_v52  ;;  %2578 = vmatmul.msk.f32.vlgmr.msra.gmra.mxu1 %vm439_vm2, %v3342_v30  ;;  %2612 = vmatmul.msk.f32.vlgmr.msra.gmra.mxu2 %vm439_vm2, %v3142_v25  ;;  %v1332_v29 = vpop.f32.mrf.mxu0 }
 0x159   : > { %2646 = vmatmul.msk.f32.vlgmr.msra.gmra.mxu3 %vm439_vm2, %v3189_v1 }
 0x15b   : > { %v1016_v58 = vpop.f32.mrf.mxu2  ;;  %2680 = vmatmul.msk.f32.vlgmr.msra.gmra.mxu0 %vm439_vm2, %v3368_v50 }
 0x15c   : > { %v1080_v32 = vadd.f32 %v1016_v58, %v754_v14  ;;  %v1172_v20 = vpop.f32.mrf.mxu3 }
 0x15d   : > { %v756_v44 = vpop.f32.mrf.mxu1 }
 0x15e   : > { %v1236_v13 = vadd.f32 %v1172_v20, %v1080_v32  ;;  %v757_v25 = vadd.f32 %v756_v44, %v3453_v23 }
 0x160   : > { %v3867_v47 = vadd.f32 %v1332_v29, %v1236_v13  ;;  %2579 = vmatmul.msk.f32.gmra.mxu1 %vm439_vm2, %v3355_v21  ;;  %2613 = vmatmul.msk.f32.gmra.mxu2 %vm439_vm2, %v3144_v33  ;;  %v1335_v1 = vpop.f32.mrf.mxu0 }
 0x161   : > { %2647 = vmatmul.msk.f32.gmra.mxu3 %vm439_vm2, %v3241_v6 }
 0x163   : > { %v1019_v30 = vpop.f32.mrf.mxu2  ;;  %2681 = vmatmul.msk.f32.gmra.mxu0 %vm439_vm2, %v3381_v15 }
 0x164   : > { %v1081_v60 = vadd.f32 %v1019_v30, %v757_v25  ;;  %v1175_v54 = vpop.f32.mrf.mxu3 }
 0x165   : > { %v759_v9 = vpop.f32.mrf.mxu1 }
 0x166   : > { %v1237_v5 = vadd.f32 %v1175_v54, %v1081_v60  ;;  %v760_v6 = vadd.f32 %v759_v9, %v3474_v41 }
 0x168   : > { %v3878_v52 = vadd.f32 %v1335_v1, %v1237_v5  ;;  %2580 = vmatmul.msk.f32.gmra.mxu1 %vm439_vm2, %v3368_v50  ;;  %2614 = vmatmul.msk.f32.gmra.mxu2 %vm439_vm2, %v3246_v35  ;;  %v1338_v33 = vpop.f32.mrf.mxu0 }
 0x169   : > { %2648 = vmatmul.msk.f32.gmra.mxu3 %vm439_vm2, %v3292_v56 }
 0x16b   : > { %v1022_v21 = vpop.f32.mrf.mxu2  ;;  %2682 = vmatmul.msk.f32.gmra.mxu0 %vm439_vm2, %v3394_v53 }
 0x16c   : > { %v1082_v23 = vadd.f32 %v1022_v21, %v760_v6  ;;  %v1178_v29 = vpop.f32.mrf.mxu3  ;;  %v4607_v21 = vld [vmem:[#allocation46_spill] sm:$0xff] }
 0x16d   : > { %v762_v14 = vpop.f32.mrf.mxu1 }
 0x16e   : > { %v1238_v58 = vadd.f32 %v1178_v29, %v1082_v23  ;;  %v763_v56 = vadd.f32 %v762_v14, %v3495_v7 }
 0x170   : > { %v3889_v32 = vadd.f32 %v1338_v33, %v1238_v58  ;;  %2581 = vmatmul.msk.f32.gmra.mxu1 %vm439_vm2, %v3381_v15  ;;  %2615 = vmatmul.msk.f32.gmra.mxu2 %vm439_vm2, %v3248_v17  ;;  %v1341_v41 = vpop.f32.mrf.mxu0  ;;  %v4609_v58 = vld [vmem:[#allocation17_spill] sm:$0xff] }
 0x171   : > { %2649 = vmatmul.msk.f32.gmra.mxu3 %vm439_vm2, %v3317_v63 }
 0x173   : > { %v1025_v35 = vpop.f32.mrf.mxu2  ;;  %2683 = vmatmul.msk.f32.gmra.mxu0 %vm439_vm2, %v3405_v49 }
 0x174   : > { %v1083_v50 = vadd.f32 %v1025_v35, %v763_v56  ;;  %v1181_v20 = vpop.f32.mrf.mxu3  ;;  %v4610_v56 = vld [vmem:[#allocation58_spill] sm:$0xff] }
 0x175   : > { %v765_v44 = vpop.f32.mrf.mxu1 }
 0x176   : > { %v1239_v13 = vadd.f32 %v1181_v20, %v1083_v50  ;;  %v766_v17 = vadd.f32 %v765_v44, %v3516_v18 }
 0x178   : > { %v3900_v1 = vadd.f32 %v1341_v41, %v1239_v13  ;;  %2582 = vmatmul.msk.f32.gmra.mxu1 %vm439_vm2, %v3394_v53  ;;  %2616 = vmatmul.msk.f32.gmra.mxu2 %vm439_vm2, %v2946_v8  ;;  %v1344_v7 = vpop.f32.mrf.mxu0  ;;  %v4604_v8 = vld [vmem:[#allocation2_spill] sm:$0xff]  ;;  %v4606_v53 = vld [vmem:[#allocation55_spill] sm:$0xff]  ;;  %v4611_v13 = vld [vmem:[#allocation48_spill] sm:$0xff] }
 0x179   : > { %2650 = vmatmul.msk.f32.gmra.mxu3 %vm439_vm2, %v2977_v26  ;;  %v4605_v26 = vld [vmem:[#allocation11_spill] sm:$0xff] }
 0x17b   : > { %v1028_v63 = vpop.f32.mrf.mxu2  ;;  %2684 = vmatmul.msk.f32.gmra.mxu0 %vm439_vm2, %v3420_v28 }
 0x17c   : > { %v1084_v15 = vadd.f32 %v1028_v63, %v766_v17  ;;  %v1184_v25 = vpop.f32.mrf.mxu3 }
 0x17d   : > { %v768_v30 = vpop.f32.mrf.mxu1 }
 0x17e   : > { %v1240_v60 = vadd.f32 %v1184_v25, %v1084_v15  ;;  %v769_v9 = vadd.f32 %v768_v30, %v4606_v53  ;;  %v4613_v15 = vld [vmem:[#allocation21_spill] sm:$0xff]  ;;  %v4615_v53 = vld [vmem:[#allocation50_spill] sm:$0xff] }
 0x17f   : > { %v4614_v30 = vld [vmem:[#allocation61_spill] sm:$0xff] }
 0x180   : > { %v3911_v54 = vadd.f32 %v1344_v7, %v1240_v60  ;;  %2583 = vmatmul.msk.f32.gmra.mxu1 %vm439_vm2, %v3405_v49  ;;  %2617 = vmatmul.msk.f32.gmra.mxu2 %vm439_vm2, %v4604_v8  ;;  %v1347_v18 = vpop.f32.mrf.mxu0  ;;  %v4608_v49 = vld [vmem:[#allocation9_spill] sm:$0xff] }
 0x181   : > { %2651 = vmatmul.msk.f32.gmra.mxu3 %vm439_vm2, %v4605_v26 }
 0x183   : > { %v1031_v5 = vpop.f32.mrf.mxu2  ;;  %2685 = vmatmul.msk.f32.gmra.mxu0 %vm439_vm2, %v4607_v21 }
 0x184   : > { %v1085_v33 = vadd.f32 %v1031_v5, %v769_v9  ;;  %v1187_v6 = vpop.f32.mrf.mxu3 }
 0x185   : > { %v771_v23 = vpop.f32.mrf.mxu1 }
 0x186   : > { %v1241_v29 = vadd.f32 %v1187_v6, %v1085_v33  ;;  %v772_v35 = vadd.f32 %v771_v23, %v4610_v56  ;;  %v4616_v6 = vld [vmem:[#allocation19_spill] sm:$0xff] }
 0x188   : > { %v3922_v14 = vadd.f32 %v1347_v18, %v1241_v29  ;;  %2584 = vmatmul.msk.f32.gmra.mxu1 %vm439_vm2, %v3420_v28  ;;  %2618 = vmatmul.msk.f32.gmra.mxu2 %vm439_vm2, %v4608_v49  ;;  %v1350_v41 = vpop.f32.mrf.mxu0  ;;  %v4612_v28 = vld [vmem:[#allocation10_spill] sm:$0xff]  ;;  %v4618_v29 = vld [vmem:[#allocation45_spill] sm:$0xff] }
 0x189   : > { %2652 = vmatmul.msk.f32.gmra.mxu3 %vm439_vm2, %v4609_v58 }
 0x18b   : > { %v1034_v50 = vpop.f32.mrf.mxu2  ;;  %2686 = vmatmul.msk.f32.gmra.mxu0 %vm439_vm2, %v4611_v13 }
 0x18c   : > { %v1086_v20 = vadd.f32 %v1034_v50, %v772_v35  ;;  %v1190_v44 = vpop.f32.mrf.mxu3  ;;  %v4619_v35 = vld [vmem:[#allocation52_spill] sm:$0xff] }
 0x18d   : > { %v774_v7 = vpop.f32.mrf.mxu1 }
 0x18e   : > { %v1242_v17 = vadd.f32 %v1190_v44, %v1086_v20  ;;  %v775_v60 = vadd.f32 %v774_v7, %v4614_v30  ;;  %v4621_v7 = vld [vmem:[#allocation34_spill] sm:$0xff] }
 0x190   : > { %v3933_v63 = vadd.f32 %v1350_v41, %v1242_v17  ;;  %2585 = vmatmul.msk.f32.gmra.mxu1 %vm439_vm2, %v4607_v21  ;;  %2619 = vmatmul.msk.f32.gmra.mxu2 %vm439_vm2, %v4612_v28  ;;  %v1353_v25 = vpop.f32.mrf.mxu0  ;;  %v4617_v21 = vld [vmem:[#allocation28_spill] sm:$0xff]  ;;  %v4622_v28 = vld [vmem:[#allocation47_spill] sm:$0xff] }
 0x191   : > { %2653 = vmatmul.msk.f32.gmra.mxu3 %vm439_vm2, %v4613_v15 }
 0x193   : > { %v1037_v8 = vpop.f32.mrf.mxu2  ;;  %2687 = vmatmul.msk.f32.gmra.mxu0 %vm439_vm2, %v4615_v53 }
 0x194   : > { %v1087_v26 = vadd.f32 %v1037_v8, %v775_v60  ;;  %v1193_v18 = vpop.f32.mrf.mxu3  ;;  %v4623_v8 = vld [vmem:[#allocation54_spill] sm:$0xff] }
 0x195   : > { %v777_v9 = vpop.f32.mrf.mxu1 }
 0x196   : > { %v1243_v5 = vadd.f32 %v1193_v18, %v1087_v26  ;;  %v778_v49 = vadd.f32 %v777_v9, %v4618_v29 }
 0x198   : > { %v3944_v33 = vadd.f32 %v1353_v25, %v1243_v5  ;;  %2586 = vmatmul.msk.f32.gmra.mxu1 %vm439_vm2, %v4611_v13  ;;  %2620 = vmatmul.msk.f32.gmra.mxu2 %vm439_vm2, %v4616_v6  ;;  %v1356_v23 = vpop.f32.mrf.mxu0  ;;  %v4620_v13 = vld [vmem:[#allocation20_spill] sm:$0xff] }
 0x199   : > { %2654 = vmatmul.msk.f32.gmra.mxu3 %vm439_vm2, %v4617_v21  ;;  %v4625_v5 = vld [vmem:[#allocation40_spill] sm:$0xff]  ;;  %v4626_v21 = vld [vmem:[#allocation49_spill] sm:$0xff] }
 0x19b   : > { %v1040_v58 = vpop.f32.mrf.mxu2  ;;  %2688 = vmatmul.msk.f32.gmra.mxu0 %vm439_vm2, %v4619_v35 }
 0x19c   : > { %v1088_v41 = vadd.f32 %v1040_v58, %v778_v49  ;;  %v1196_v56 = vpop.f32.mrf.mxu3 }
 0x19d   : > { %v780_v50 = vpop.f32.mrf.mxu1 }
 0x19e   : > { %v1244_v20 = vadd.f32 %v1196_v56, %v1088_v41  ;;  %v781_v15 = vadd.f32 %v780_v50, %v4622_v28  ;;  %v4627_v41 = vld [vmem:[#allocation57_spill] sm:$0xff] }
 0x1a0   : > { %v3955_v44 = vadd.f32 %v1356_v23, %v1244_v20  ;;  %2587 = vmatmul.msk.f32.gmra.mxu1 %vm439_vm2, %v4615_v53  ;;  %2621 = vmatmul.msk.f32.gmra.mxu2 %vm439_vm2, %v4620_v13  ;;  %v1359_v17 = vpop.f32.mrf.mxu0  ;;  %v4624_v53 = vld [vmem:[#allocation31_spill] sm:$0xff] }
 0x1a1   : > { %2655 = vmatmul.msk.f32.gmra.mxu3 %vm439_vm2, %v4621_v7  ;;  %v4629_v13 = vld [vmem:[#allocation43_spill] sm:$0xff] }
 0x1a3   : > { %v1043_v25 = vpop.f32.mrf.mxu2  ;;  %2689 = vmatmul.msk.f32.gmra.mxu0 %vm439_vm2, %v4623_v8 }
 0x1a4   : > { %v1089_v30 = vadd.f32 %v1043_v25, %v781_v15  ;;  %v1199_v60 = vpop.f32.mrf.mxu3 }
 0x1a5   : > { %v783_v26 = vpop.f32.mrf.mxu1 }
 0x1a6   : > { %v1245_v18 = vadd.f32 %v1199_v60, %v1089_v30  ;;  %v784_v23 = vadd.f32 %v783_v26, %v4626_v21  ;;  %v4631_v60 = vld [vmem:[#allocation60_spill] sm:$0xff]  ;;  %v4634_v21 = vld [vmem:[#allocation53_spill] sm:$0xff] }
 0x1a8   : > { %v3966_v9 = vadd.f32 %v1359_v17, %v1245_v18  ;;  %2588 = vmatmul.msk.f32.gmra.mxu1 %vm439_vm2, %v4619_v35  ;;  %2622 = vmatmul.msk.f32.gmra.mxu2 %vm439_vm2, %v4624_v53  ;;  %v1362_v6 = vpop.f32.mrf.mxu0  ;;  %v4628_v35 = vld [vmem:[#allocation32_spill] sm:$0xff]  ;;  %v4630_v17 = vld [vmem:[#allocation51_spill] sm:$0xff] }
 0x1a9   : > { %2656 = vmatmul.msk.f32.gmra.mxu3 %vm439_vm2, %v4625_v5  ;;  %v4633_v5 = vld [vmem:[#allocation7_spill] sm:$0xff] }
 0x1ab   : > { %v1046_v29 = vpop.f32.mrf.mxu2  ;;  %2690 = vmatmul.msk.f32.gmra.mxu0 %vm439_vm2, %v4627_v41 }
 0x1ac   : > { %v1090_v49 = vadd.f32 %v1046_v29, %v784_v23  ;;  %v1202_v58 = vpop.f32.mrf.mxu3 }
 0x1ad   : > { %v786_v56 = vpop.f32.mrf.mxu1 }
 0x1ae   : > { %v1246_v50 = vadd.f32 %v1202_v58, %v1090_v49  ;;  %v787_v28 = vadd.f32 %v786_v56, %v4630_v17  ;;  %v4635_v56 = vld [vmem:[#allocation63_spill] sm:$0xff]  ;;  %v4637_v17 = vld [vmem:[#allocation56_spill] sm:$0xff] }
 0x1b0   : > { %v3977_v20 = vadd.f32 %v1362_v6, %v1246_v50  ;;  %2589 = vmatmul.msk.f32.gmra.mxu1 %vm439_vm2, %v4623_v8  ;;  %2623 = vmatmul.msk.f32.gmra.mxu2 %vm439_vm2, %v4628_v35  ;;  %v1365_v7 = vpop.f32.mrf.mxu0  ;;  %v4632_v8 = vld [vmem:[#allocation3_spill] sm:$0xff] }
 0x1b1   : > { %2657 = vmatmul.msk.f32.gmra.mxu3 %vm439_vm2, %v4629_v13 }
 0x1b3   : > { %v1049_v15 = vpop.f32.mrf.mxu2  ;;  %2691 = vmatmul.msk.f32.gmra.mxu0 %vm439_vm2, %v4631_v60 }
 0x1b4   : > { %v1091_v25 = vadd.f32 %v1049_v15, %v787_v28  ;;  %v1205_v30 = vpop.f32.mrf.mxu3 }
 0x1b5   : > { %v789_v26 = vpop.f32.mrf.mxu1 }
 0x1b6   : > { %v1247_v18 = vadd.f32 %v1205_v30, %v1091_v25  ;;  %v790_v23 = vadd.f32 %v789_v26, %v4634_v21 }
 0x1b8   : > { %v3988_v53 = vadd.f32 %v1365_v7, %v1247_v18  ;;  %2590 = vmatmul.msk.f32.gmra.mxu1 %vm439_vm2, %v4627_v41  ;;  %2624 = vmatmul.msk.f32.gmra.mxu2 %vm439_vm2, %v4632_v8  ;;  %v1368_v6 = vpop.f32.mrf.mxu0  ;;  %v4636_v41 = vld [vmem:[#allocation12_spill] sm:$0xff] }
 0x1b9   : > { %2658 = vmatmul.msk.f32.gmra.mxu3 %vm439_vm2, %v4633_v5 }
 0x1bb   : > { %v1052_v29 = vpop.f32.mrf.mxu2  ;;  %2692 = vmatmul.msk.f32.gmra.mxu0 %vm439_vm2, %v4635_v56 }
 0x1bc   : > { %v1092_v49 = vadd.f32 %v1052_v29, %v790_v23  ;;  %v1208_v58 = vpop.f32.mrf.mxu3 }
 0x1bd   : > { %v792_v50 = vpop.f32.mrf.mxu1 }
 0x1be   : > { %v1248_v35 = vadd.f32 %v1208_v58, %v1092_v49  ;;  %v793_v28 = vadd.f32 %v792_v50, %v4637_v17 }
 0x1c0   : > { %v3999_v13 = vadd.f32 %v1368_v6, %v1248_v35  ;;  %2591 = vmatmul.msk.f32.gmra.mxu1 %vm439_vm2, %v4631_v60  ;;  %2625 = vmatmul.msk.f32.gmra.mxu2 %vm439_vm2, %v2952_v11  ;;  %v1371_v7 = vpop.f32.mrf.mxu0  ;;  %v4638_v60 = vld [vmem:[#allocation59_spill] sm:$0xff] }
 0x1c1   : > { %2659 = vmatmul.msk.f32.gmra.mxu3 %vm439_vm2, %v4636_v41 }
 0x1c3   : > { %v1055_v15 = vpop.f32.mrf.mxu2  ;;  %2693 = vmatmul.msk.f32.gmra.mxu0 %vm439_vm2, %v3600_v10 }
 0x1c4   : > { %v1093_v25 = vadd.f32 %v1055_v15, %v793_v28  ;;  %v1211_v30 = vpop.f32.mrf.mxu3 }
 0x1c5   : > { %v795_v26 = vpop.f32.mrf.mxu1 }
 0x1c6   : > { %v1249_v18 = vadd.f32 %v1211_v30, %v1093_v25  ;;  %v796_v5 = vadd.f32 %v795_v26, %v4638_v60 }
 0x1c8   : > { %v4010_v8 = vadd.f32 %v1371_v7, %v1249_v18  ;;  %2592 = vmatmul.msk.f32.gmra.mxu1 %vm439_vm2, %v4635_v56  ;;  %2626 = vmatmul.msk.f32.gmra.mxu2 %vm439_vm2, %v3017_v45  ;;  %v1374_v11 = vpop.f32.mrf.mxu0  ;;  %v4642_v18 = vld [vmem:[#allocation22_spill] sm:$0xff] }
 0x1c9   : > { %2660 = vmatmul.msk.f32.gmra.mxu3 %vm439_vm2, %v3069_v4  ;;  %v4639_v4 = vld [vmem:[#allocation62_spill] sm:$0xff] }
 0x1cb   : > { %v1058_v6 = vpop.f32.mrf.mxu2  ;;  %2694 = vmatmul.msk.f32.gmra.mxu0 %vm439_vm2, %v3616_v62 }
 0x1cc   : > { %v1094_v21 = vadd.f32 %v1058_v6, %v796_v5  ;;  %v1214_v23 = vpop.f32.mrf.mxu3  ;;  %v4051_v5 = vld [vmem:[%s4361_s3] ss:$0 sm:$0xff]  ;;  %v4643_v6 = vld [vmem:[#allocation35_spill] sm:$0xff] }
 0x1cd   : > { %v798_v29 = vpop.f32.mrf.mxu1 }
 0x1ce   : > { %v1250_v49 = vadd.f32 %v1214_v23, %v1094_v21  ;;  %v799_v56 = vadd.f32 %v798_v29, %v4639_v4  ;;  %v4644_v23 = vld [vmem:[#allocation65_spill] sm:$0xff] }
 0x1d0   : > { %v4021_v58 = vadd.f32 %v1374_v11, %v1250_v49  ;;  %2593 = vmatmul.msk.f32.gmra.mxu1 %vm439_vm2, %v3600_v10  ;;  %2627 = vmatmul.msk.f32.gmra.mxu2 %vm439_vm2, %v3025_v48  ;;  %v1377_v45 = vpop.f32.mrf.mxu0  ;;  %v4640_v10 = vld [vmem:[#allocation29_spill] sm:$0xff] }
 0x1d1   : > { %2661 = vmatmul.msk.f32.gmra.mxu3 %vm439_vm2, %v3112_v42  ;;  %v4641_v42 = vld [vmem:[#allocation64_spill] sm:$0xff] }
 0x1d3   : > { %v1061_v50 = vpop.f32.mrf.mxu2  ;;  %2695 = vmatmul.msk.f32.gmra.mxu0 %vm439_vm2, %v3632_v46 }
 0x1d4   : > { %v1095_v35 = vadd.f32 %v1061_v50, %v799_v56  ;;  %v1217_v41 = vpop.f32.mrf.mxu3 }
 0x1d5   : > { %v1443_v7 = vpop.f32.mrf.mxu1 }
 0x1d6   : > { %v1251_v17 = vadd.f32 %v1217_v41, %v1095_v35  ;;  %v1539_v15 = vadd.f32 %v1443_v7, %v4641_v42 }
 0x1d8   : > { %v4032_v28 = vadd.f32 %v1377_v45, %v1251_v17  ;;  %2594 = vmatmul.msk.f32.gmra.mxu1 %vm439_vm2, %v3616_v62  ;;  %2628 = vmatmul.msk.f32.gmra.mxu2 %vm439_vm2, %v3106_v39  ;;  %v1918_v48 = vpop.f32.mrf.mxu0  ;;  %v4046_v62 = vld [vmem:[%s4360_s2] ss:$0 sm:$0xff] }
 0x1d9   : > { %2662 = vmatmul.msk.f32.gmra.mxu3 %vm439_vm2, %v4640_v10  ;;  %v4645_v17 = vld [vmem:[#allocation66_spill] sm:$0xff] }
 0x1db   : > { %v1599_v25 = vpop.f32.mrf.mxu2  ;;  %2696 = vmatmul.msk.f32.gmra.mxu0 %vm439_vm2, %v4642_v18 }
 0x1dc   : > { %v1695_v30 = vadd.f32 %v1599_v25, %v1539_v15  ;;  %v1759_v26 = vpop.f32.mrf.mxu3 }
 0x1dd   : > { %v1446_v11 = vpop.f32.mrf.mxu1 }
 0x1de   : > { %v1855_v60 = vadd.f32 %v1759_v26, %v1695_v30  ;;  %v1540_v29 = vadd.f32 %v1446_v11, %v4644_v23  ;;  %v4646_v26 = vld [vmem:[#allocation26_spill] sm:$0xff] }
 0x1e0   : > { %v2014_v39 = vadd.f32 %v1918_v48, %v1855_v60  ;;  %2595 = vmatmul.msk.f32.gmra.mxu1 %vm439_vm2, %v3632_v46  ;;  %2629 = vmatmul.msk.f32.gmra.mxu2 %vm439_vm2, %v4553_v0  ;;  %v1921_v21 = vpop.f32.mrf.mxu0 }
 0x1e1   : > { %2663 = vmatmul.msk.f32.gmra.mxu3 %vm439_vm2, %v4643_v6 }
 0x1e2   : > { %v2050_v49 = vmul.f32 %v4046_v62, %v2014_v39 }
 0x1e3   : > { %v1602_v45 = vpop.f32.mrf.mxu2  ;;  %2697 = vmatmul.msk.f32.gmra.mxu0 %vm439_vm2, %v3664_v2 }
 0x1e4   : > { %v2086_v4 = vadd.f32 %v4051_v5, %v2050_v49  ;;  %v1696_v56 = vadd.f32 %v1602_v45, %v1540_v29  ;;  %v1762_v50 = vpop.f32.mrf.mxu3  ;;  %v4648_v49 = vld [vmem:[#allocation67_spill] sm:$0xff] }
 0x1e5   : > { %v1449_v46 = vpop.f32.mrf.mxu1 }
 0x1e6   : > { %v2150_v0 = vmul.f32 1.442695, %v2086_v4  ;;  %v1856_v35 = vadd.f32 %v1762_v50, %v1696_v56  ;;  %v1541_v10 = vadd.f32 %v1449_v46, %v4645_v17  ;;  %vm2118_vm4 = vcmp.gt.f32.partialorder %v2086_v4, 0.0 }
 0x1e8   : > { %2804 = vpow2.f32 %v2150_v0  ;;  %v2015_v41 = vadd.f32 %v1921_v21, %v1856_v35  ;;  %2596 = vmatmul.msk.f32.gmra.mxu1 %vm439_vm2, %v4642_v18  ;;  %2630 = vmatmul.msk.f32.gmra.mxu2 %vm439_vm2, %v4557_v59  ;;  %v1924_v7 = vpop.f32.mrf.mxu0  ;;  %v4647_v21 = vld [vmem:[#allocation44_spill] sm:$0xff] }
 0x1e9   : > { %2664 = vmatmul.msk.f32.gmra.mxu3 %vm439_vm2, %v4560_v24  ;;  %v4649_v0 = vld [vmem:[#allocation36_spill] sm:$0xff] }
 0x1ea   : > { %v2051_v48 = vmul.f32 %v4046_v62, %v2015_v41 }
 0x1eb   : > { %v1605_v42 = vpop.f32.mrf.mxu2  ;;  %2698 = vmatmul.msk.f32.gmra.mxu0 %vm439_vm2, %v4646_v26 }
 0x1ec   : > { %v2087_v15 = vadd.f32 %v4051_v5, %v2051_v48  ;;  %v1697_v25 = vadd.f32 %v1605_v42, %v1541_v10  ;;  %v1765_v30 = vpop.f32.mrf.mxu3  ;;  %v4650_v42 = vld [vmem:[#allocation8_spill] sm:$0xff] }
 0x1ed   : > { %v1452_v18 = vpop.f32.mrf.mxu1 }
 0x1ee   : > { %v2805_v11 = vpop.eup %2804  ;;  %v2152_v59 = vmul.f32 1.442695, %v2087_v15  ;;  %v1857_v60 = vadd.f32 %v1765_v30, %v1697_v25  ;;  %v1542_v45 = vadd.f32 %v1452_v18, %v4648_v49  ;;  %vm2119_vm6 = vcmp.gt.f32.partialorder %v2087_v15, 0.0  ;;  %v4651_v18 = vld [vmem:[#allocation33_spill] sm:$0xff] }
 0x1ef   : > { %v2712_v24 = vadd.f32 -1.0, %v2805_v11 }
 0x1f0   : > { %2806 = vpow2.f32 %v2152_v59  ;;  %v2016_v39 = vadd.f32 %v1924_v7, %v1857_v60  ;;  %2597 = vmatmul.msk.f32.gmra.mxu1 %vm439_vm2, %v3664_v2  ;;  %2631 = vmatmul.msk.f32.gmra.mxu2 %vm439_vm2, %v4562_v43  ;;  %v1927_v23 = vpop.f32.mrf.mxu0 }
 0x1f1   : > { %v2246_v6 = vsel %vm2118_vm4, %v2086_v4, %v2712_v24  ;;  %2665 = vmatmul.msk.f32.gmra.mxu3 %vm439_vm2, %v4647_v21 }
 0x1f2   : > { %v2278_v29 = vpack.c.bf16 %v2246_v6, %v2246_v6  ;;  %v2052_v2 = vmul.f32 %v4046_v62, %v2016_v39  ;;  %v4652_v6 = vld [vmem:[#allocation5_spill] sm:$0xff] }
 0x1f3   : > { %v1608_v56 = vpop.f32.mrf.mxu2  ;;  %2699 = vmatmul.msk.f32.gmra.mxu0 %vm439_vm2, %v4649_v0 }
 0x1f4   : > { %2311 = vst.msk [vmem:[%s4083_s23] sm:$0xf] %vm2310_vm5, %v2278_v29  ;;  %v2088_v43 = vadd.f32 %v4051_v5, %v2052_v2  ;;  %v1698_v50 = vadd.f32 %v1608_v56, %v1542_v45  ;;  %v1768_v46 = vpop.f32.mrf.mxu3  ;;  %v4653_v2 = vld [vmem:[#allocation13_spill] sm:$0xff] }
 0x1f5   : > { %v1455_v4 = vpop.f32.mrf.mxu1 }
 0x1f6   : > { %v2807_v35 = vpop.eup %2806  ;;  %v2154_v41 = vmul.f32 1.442695, %v2088_v43  ;;  %v1858_v7 = vadd.f32 %v1768_v46, %v1698_v50  ;;  %v1543_v11 = vadd.f32 %v1455_v4, %v4651_v18  ;;  %vm2120_vm7 = vcmp.gt.f32.partialorder %v2088_v43, 0.0  ;;  %v4654_v46 = vld [vmem:[#allocation41_spill] sm:$0xff] }
 0x1f7   : > { %v2713_v17 = vadd.f32 -1.0, %v2807_v35 }
 0x1f8   : > { %2808 = vpow2.f32 %v2154_v41  ;;  %v2017_v10 = vadd.f32 %v1927_v23, %v1858_v7  ;;  %2598 = vmatmul.msk.f32.gmra.mxu1 %vm439_vm2, %v4646_v26  ;;  %2632 = vmatmul.msk.f32.gmra.mxu2 %vm439_vm2, %v4565_v22  ;;  %v1930_v25 = vpop.f32.mrf.mxu0 }
 0x1f9   : > { %v2247_v48 = vsel %vm2119_vm6, %v2087_v15, %v2713_v17  ;;  %2666 = vmatmul.msk.f32.gmra.mxu3 %vm439_vm2, %v4650_v42 }
 0x1fa   : > { %v2279_v30 = vpack.c.bf16 %v2247_v48, %v2247_v48  ;;  %v2053_v59 = vmul.f32 %v4046_v62, %v2017_v10  ;;  %v4655_v10 = vld [vmem:[#allocation14_spill] sm:$0xff] }
 0x1fb   : > { %v1611_v60 = vpop.f32.mrf.mxu2  ;;  %2700 = vmatmul.msk.f32.gmra.mxu0 %vm439_vm2, %v4652_v6 }
 0x1fc   : > { %2312 = vst.msk [vmem:[%s4083_s23 + $0x4] sm:$0xf] %vm2310_vm5, %v2279_v30  ;;  %v2089_v24 = vadd.f32 %v4051_v5, %v2053_v59  ;;  %v1699_v39 = vadd.f32 %v1611_v60, %v1543_v11  ;;  %v1771_v26 = vpop.f32.mrf.mxu3  ;;  %v4656_v11 = vld [vmem:[#allocation18_spill] sm:$0xff] }
 0x1fd   : > { %v1458_v22 = vpop.f32.mrf.mxu1 }
 0x1fe   : > { %v2809_v15 = vpop.eup %2808  ;;  %v2156_v21 = vmul.f32 1.442695, %v2089_v24  ;;  %v1859_v23 = vadd.f32 %v1771_v26, %v1699_v39  ;;  %v1544_v4 = vadd.f32 %v1458_v22, %v4654_v46  ;;  %vm2121_vm8 = vcmp.gt.f32.partialorder %v2089_v24, 0.0  ;;  %v4657_v39 = vld [vmem:[#allocation4_spill] sm:$0xff]  ;;  %v4659_v46 = vld [vmem:[#allocation23_spill] sm:$0xff] }
 0x1ff   : > { %v2714_v29 = vadd.f32 -1.0, %v2809_v15 }
 0x200   : > { %2810 = vpow2.f32 %v2156_v21  ;;  %v2018_v49 = vadd.f32 %v1930_v25, %v1859_v23  ;;  %2599 = vmatmul.msk.f32.gmra.mxu1 %vm439_vm2, %v4649_v0  ;;  %2633 = vmatmul.msk.f32.gmra.mxu2 %vm439_vm2, %v4570_v31  ;;  %v1933_v56 = vpop.f32.mrf.mxu0 }
 0x201   : > { %v2248_v45 = vsel %vm2120_vm7, %v2088_v43, %v2714_v29  ;;  %2667 = vmatmul.msk.f32.gmra.mxu3 %vm439_vm2, %v4653_v2  ;;  %v4658_v29 = vld [vmem:[#allocation15_spill] sm:$0xff] }
 0x202   : > { %v2280_v50 = vpack.c.bf16 %v2248_v45, %v2248_v45  ;;  %v2054_v35 = vmul.f32 %v4046_v62, %v2018_v49 }
 0x203   : > { %v1614_v41 = vpop.f32.mrf.mxu2  ;;  %2701 = vmatmul.msk.f32.gmra.mxu0 %vm439_vm2, %v4655_v10 }
 0x204   : > { %2313 = vst.msk [vmem:[%s4083_s23 + $0x8] sm:$0xf] %vm2310_vm5, %v2280_v50  ;;  %v2090_v7 = vadd.f32 %v4051_v5, %v2054_v35  ;;  %v1700_v17 = vadd.f32 %v1614_v41, %v1544_v4  ;;  %v1774_v0 = vpop.f32.mrf.mxu3  ;;  %v4660_v41 = vld [vmem:[#allocation68_spill] sm:$0xff] }
 0x205   : > { %v1461_v31 = vpop.f32.mrf.mxu1 }
 0x206   : > { %v2811_v43 = vpop.eup %2810  ;;  %v2158_v48 = vmul.f32 1.442695, %v2090_v7  ;;  %v1860_v42 = vadd.f32 %v1774_v0, %v1700_v17  ;;  %v1545_v26 = vadd.f32 %v1461_v31, %v4657_v39  ;;  %vm2122_vm9 = vcmp.gt.f32.partialorder %v2090_v7, 0.0  ;;  %v4663_v39 = vld [vmem:[#allocation30_spill] sm:$0xff] }
 0x207   : > { %v2715_v25 = vadd.f32 -1.0, %v2811_v43 }
 0x208   : > { %2812 = vpow2.f32 %v2158_v48  ;;  %v2019_v30 = vadd.f32 %v1933_v56, %v1860_v42  ;;  %2600 = vmatmul.msk.f32.gmra.mxu1 %vm439_vm2, %v4652_v6  ;;  %2634 = vmatmul.msk.f32.gmra.mxu2 %vm439_vm2, %v4574_v36  ;;  %v1936_v59 = vpop.f32.mrf.mxu0  ;;  %v4661_v42 = vld [vmem:[#allocation16_spill] sm:$0xff] }
 0x209   : > { %v2249_v18 = vsel %vm2121_vm8, %v2089_v24, %v2715_v25  ;;  %2668 = vmatmul.msk.f32.gmra.mxu3 %vm439_vm2, %v4656_v11 }
 0x20a   : > { %v2281_v60 = vpack.c.bf16 %v2249_v18, %v2249_v18  ;;  %v2055_v22 = vmul.f32 %v4046_v62, %v2019_v30 }
 0x20b   : > { %v1617_v15 = vpop.f32.mrf.mxu2  ;;  %2702 = vmatmul.msk.f32.gmra.mxu0 %vm439_vm2, %v4658_v29 }
 0x20c   : > { %2314 = vst.msk [vmem:[%s4083_s23 + $0xc] sm:$0xf] %vm2310_vm5, %v2281_v60  ;;  %v2091_v21 = vadd.f32 %v4051_v5, %v2055_v22  ;;  %v1701_v23 = vadd.f32 %v1617_v15, %v1545_v26  ;;  %v1777_v6 = vpop.f32.mrf.mxu3  ;;  %v4664_v15 = vld [vmem:[#allocation6_spill] sm:$0xff] }
 0x20d   : > { %v1464_v36 = vpop.f32.mrf.mxu1 }
 0x20e   : > { %v2813_v24 = vpop.eup %2812  ;;  %v2160_v49 = vmul.f32 1.442695, %v2091_v21  ;;  %v1861_v45 = vadd.f32 %v1777_v6, %v1701_v23  ;;  %v1546_v17 = vadd.f32 %v1464_v36, %v4660_v41  ;;  %vm2123_vm10 = vcmp.gt.f32.partialorder %v2091_v21, 0.0 }
 0x20f   : > { %v2716_v2 = vadd.f32 -1.0, %v2813_v24 }
 0x210   : > { %2814 = vpow2.f32 %v2160_v49  ;;  %v2020_v56 = vadd.f32 %v1936_v59, %v1861_v45  ;;  %2601 = vmatmul.msk.f32.gmra.mxu1 %vm439_vm2, %v4655_v10  ;;  %2635 = vmatmul.msk.f32.gmra.mxu2 %vm439_vm2, %v4580_v40  ;;  %v1939_v4 = vpop.f32.mrf.mxu0  ;;  %v4662_v59 = vld [vmem:[#allocation24_spill] sm:$0xff]  ;;  %v4665_v45 = vld [vmem:[#allocation71_spill] sm:$0xff] }
 0x211   : > { %v2250_v50 = vsel %vm2122_vm9, %v2090_v7, %v2716_v2  ;;  %2669 = vmatmul.msk.f32.gmra.mxu3 %vm439_vm2, %v4659_v46 }
 0x212   : > { %v2282_v35 = vpack.c.bf16 %v2250_v50, %v2250_v50  ;;  %v2056_v0 = vmul.f32 %v4046_v62, %v2020_v56 }
 0x213   : > { %v1620_v31 = vpop.f32.mrf.mxu2  ;;  %2703 = vmatmul.msk.f32.gmra.mxu0 %vm439_vm2, %v4661_v42 }
 0x214   : > { %2315 = vst.msk [vmem:[%s4083_s23 + $0x10] sm:$0xf] %vm2310_vm5, %v2282_v35  ;;  %v2092_v43 = vadd.f32 %v4051_v5, %v2056_v0  ;;  %v1702_v48 = vadd.f32 %v1620_v31, %v1546_v17  ;;  %v1780_v10 = vpop.f32.mrf.mxu3  ;;  %v4666_v35 = vld [vmem:[#allocation25_spill] sm:$0xff] }
 0x215   : > { %v1467_v40 = vpop.f32.mrf.mxu1  ;;  %v4667_v17 = vld [vmem:[#allocation37_spill] sm:$0xff] }
 0x216   : > { %v2815_v7 = vpop.eup %2814  ;;  %v2162_v25 = vmul.f32 1.442695, %v2092_v43  ;;  %v1862_v30 = vadd.f32 %v1780_v10, %v1702_v48  ;;  %v1547_v23 = vadd.f32 %v1467_v40, %v4664_v15  ;;  %vm2124_vm11 = vcmp.gt.f32.partialorder %v2092_v43, 0.0  ;;  %v4668_v48 = vld [vmem:[#allocation69_spill] sm:$0xff]  ;;  %v4670_v15 = vld [vmem:[#allocation42_spill] sm:$0xff] }
 0x217   : > { %v2717_v18 = vadd.f32 -1.0, %v2815_v7 }
 0x218   : > { %2816 = vpow2.f32 %v2162_v25  ;;  %v2021_v11 = vadd.f32 %v1939_v4, %v1862_v30  ;;  %2602 = vmatmul.msk.f32.gmra.mxu1 %vm439_vm2, %v4658_v29  ;;  %2636 = vmatmul.msk.f32.gmra.mxu2 %vm439_vm2, %v4662_v59  ;;  %v1942_v26 = vpop.f32.mrf.mxu0 }
 0x219   : > { %v2251_v60 = vsel %vm2123_vm10, %v2091_v21, %v2717_v18  ;;  %2670 = vmatmul.msk.f32.gmra.mxu3 %vm439_vm2, %v4663_v39  ;;  %v4669_v18 = vld [vmem:[#allocation38_spill] sm:$0xff] }
 0x21a   : > { %v2283_v22 = vpack.c.bf16 %v2251_v60, %v2251_v60  ;;  %v2057_v6 = vmul.f32 %v4046_v62, %v2021_v11 }
 0x21b   : > { %v1623_v36 = vpop.f32.mrf.mxu2  ;;  %2704 = vmatmul.msk.f32.gmra.mxu0 %vm439_vm2, %v4665_v45 }
 0x21c   : > { %2316 = vst.msk [vmem:[%s4083_s23 + $0x14] sm:$0xf] %vm2310_vm5, %v2283_v22  ;;  %v2093_v24 = vadd.f32 %v4051_v5, %v2057_v6  ;;  %v1703_v49 = vadd.f32 %v1623_v36, %v1547_v23  ;;  %v1783_v29 = vpop.f32.mrf.mxu3  ;;  %v4671_v36 = vld [vmem:[#allocation70_spill] sm:$0xff] }
 0x21d   : > { %v1470_v21 = vpop.f32.mrf.mxu1 }
 0x21e   : > { %v2817_v2 = vpop.eup %2816  ;;  %v2164_v56 = vmul.f32 1.442695, %v2093_v24  ;;  %v1863_v50 = vadd.f32 %v1783_v29, %v1703_v49  ;;  %v1548_v10 = vadd.f32 %v1470_v21, %v4668_v48  ;;  %vm2125_vm12 = vcmp.gt.f32.partialorder %v2093_v24, 0.0 }
 0x21f   : > { %v2718_v46 = vadd.f32 -1.0, %v2817_v2 }
 0x220   : > { %2818 = vpow2.f32 %v2164_v56  ;;  %v2022_v4 = vadd.f32 %v1942_v26, %v1863_v50  ;;  %2603 = vmatmul.msk.f32.gmra.mxu1 %vm439_vm2, %v4661_v42  ;;  %2637 = vmatmul.msk.f32.gmra.mxu2 %vm439_vm2, %v4666_v35  ;;  %v1945_v0 = vpop.f32.mrf.mxu0 }
 0x221   : > { %v2252_v41 = vsel %vm2124_vm11, %v2092_v43, %v2718_v46  ;;  %2671 = vmatmul.msk.f32.gmra.mxu3 %vm439_vm2, %v4667_v17 }
 0x222   : > { %v2284_v31 = vpack.c.bf16 %v2252_v41, %v2252_v41  ;;  %v2058_v40 = vmul.f32 %v4046_v62, %v2022_v4 }
 0x223   : > { %v1626_v7 = vpop.f32.mrf.mxu2  ;;  %2705 = vmatmul.msk.f32.gmra.mxu0 %vm439_vm2, %v4669_v18 }
 0x224   : > { %2317 = vst.msk [vmem:[%s4083_s23 + $0x18] sm:$0xf] %vm2310_vm5, %v2284_v31  ;;  %v2094_v25 = vadd.f32 %v4051_v5, %v2058_v40  ;;  %v1704_v30 = vadd.f32 %v1626_v7, %v1548_v10  ;;  %v1786_v42 = vpop.f32.mrf.mxu3  ;;  %v4672_v31 = vld [vmem:[#allocation72_spill] sm:$0xff] }
 0x225   : > { %v1473_v43 = vpop.f32.mrf.mxu1 }
 0x226   : > { %v2819_v11 = vpop.eup %2818  ;;  %v2166_v59 = vmul.f32 1.442695, %v2094_v25  ;;  %v1864_v60 = vadd.f32 %v1786_v42, %v1704_v30  ;;  %v1549_v49 = vadd.f32 %v1473_v43, %v4671_v36  ;;  %vm2126_vm13 = vcmp.gt.f32.partialorder %v2094_v25, 0.0 }
 0x227   : > { %v2719_v39 = vadd.f32 -1.0, %v2819_v11 }
 0x228   : > { %2820 = vpow2.f32 %v2166_v59  ;;  %v2023_v26 = vadd.f32 %v1945_v0, %v1864_v60  ;;  %2604 = vmatmul.msk.f32.gmra.mxu1 %vm439_vm2, %v4665_v45  ;;  %2638 = vmatmul.msk.f32.gmra.mxu2 %vm439_vm2, %v4594_v19  ;;  %v1948_v23 = vpop.f32.mrf.mxu0 }
 0x229   : > { %v2253_v22 = vsel %vm2125_vm12, %v2093_v24, %v2719_v39  ;;  %2672 = vmatmul.msk.f32.gmra.mxu3 %vm439_vm2, %v4670_v15 }
 0x22a   : > { %v2285_v6 = vpack.c.bf16 %v2253_v22, %v2253_v22  ;;  %v2059_v29 = vmul.f32 %v4046_v62, %v2023_v26 }
 0x22b   : > { %v1629_v21 = vpop.f32.mrf.mxu2  ;;  %2706 = vmatmul.msk.f32.gmra.mxu0 %vm439_vm2, %v3813_v61 }
 0x22c   : > { %2318 = vst.msk [vmem:[%s4083_s23 + $0x1c] sm:$0xf] %vm2310_vm5, %v2285_v6  ;;  %v2095_v2 = vadd.f32 %v4051_v5, %v2059_v29  ;;  %v1705_v56 = vadd.f32 %v1629_v21, %v1549_v49  ;;  %v1789_v45 = vpop.f32.mrf.mxu3  ;;  %v4674_v6 = vld [vmem:[#allocation27_spill] sm:$0xff] }
 0x22d   : > { %v1476_v19 = vpop.f32.mrf.mxu1  ;;  %v250_v29 = vld [vmem:[%s2941_s5 + $0xcc] sm:$0xff]  }
 0x22e   : > { %v2821_v24 = vpop.eup %2820  ;;  %v2168_v50 = vmul.f32 1.442695, %v2095_v2  ;;  %v1865_v46 = vadd.f32 %v1789_v45, %v1705_v56  ;;  %v1550_v48 = vadd.f32 %v1476_v19, %v4672_v31  ;;  %vm2127_vm14 = vcmp.gt.f32.partialorder %v2095_v2, 0.0 }
 0x22f   : > { %v2720_v4 = vadd.f32 -1.0, %v2821_v24  ;;  %v1415_v19 = vrot.slane %v303_v34, 2 }
 0x230   : > { %2822 = vpow2.f32 %v2168_v50  ;;  %v2024_v35 = vadd.f32 %v1948_v23, %v1865_v46  ;;  %2605 = vmatmul.msk.f32.gmra.mxu1 %vm439_vm2, %v4669_v18  ;;  %2639 = vmatmul.msk.f32.gmra.mxu2 %vm439_vm2, %v4600_v12  ;;  %v1951_v17 = vpop.f32.mrf.mxu0 }
 0x231   : > { %v2254_v41 = vsel %vm2126_vm13, %v2094_v25, %v2720_v4  ;;  %2673 = vmatmul.msk.f32.gmra.mxu3 %vm439_vm2, %v3306_v51  ;;  %v4673_v25 = vld [vmem:[#allocation39_spill] sm:$0xff]  ;;  %v1413_v51 = vrot.slane %v3805_v57, 2  ;;  %v4216_v4 = vunpack.c.h.bf16 %v250_v29 }
 0x232   : > { %v2286_v0 = vpack.c.bf16 %v2254_v41, %v2254_v41  ;;  %v2060_v10 = vmul.f32 %v4046_v62, %v2024_v35  ;;  %v1412_v18 = vrot.slane %v4673_v25, 2 }
 0x233   : > { %v1632_v40 = vpop.f32.mrf.mxu2  ;;  %2707 = vmatmul.msk.f32.gmra.mxu0 %vm439_vm2, %v3838_v38 }
 0x234   : > { %2319 = vst.msk [vmem:[%s4083_s23 + $0x20] sm:$0xf] %vm2310_vm5, %v2286_v0  ;;  %v2096_v7 = vadd.f32 %v4051_v5, %v2060_v10  ;;  %v1706_v30 = vadd.f32 %v1632_v40, %v1550_v48  ;;  %v1792_v42 = vpop.f32.mrf.mxu3  ;;  %v1414_v15 = vsel %vm801_vm3, %v1412_v18, %v1413_v51  ;;  %v1416_v0 = vsel %vm801_vm3, %v1413_v51, %v1415_v19  ;;  %v4675_v48 = vld [vmem:[#allocation73_spill] sm:$0xff] }
 0x235   : > { %v1479_v12 = vpop.f32.mrf.mxu1  ;;  %v1888_v18 = vrot.slane %v4216_v4, 2 }
 0x236   : > { %v2823_v43 = vpop.eup %2822  ;;  %v2170_v11 = vmul.f32 1.442695, %v2096_v7  ;;  %v1866_v59 = vadd.f32 %v1792_v42, %v1706_v30  ;;  %v1551_v36 = vadd.f32 %v1479_v12, %v4674_v6  ;;  %vm2128_vm15 = vcmp.gt.f32.partialorder %v2096_v7, 0.0 }
 0x237   : > { %v2721_v60 = vadd.f32 -1.0, %v2823_v43  ;;  %v1729_v30 = vrot.slane %v4216_v4, 1 }
 0x238   : > { %2824 = vpow2.f32 %v2170_v11  ;;  %v2025_v39 = vadd.f32 %v1951_v17, %v1866_v59  ;;  %2606 = vmatmul.msk.f32.gmra.mxu1 %vm439_vm2, %v3813_v61  ;;  %2640 = vmatmul.msk.f32.gmra.mxu2 %vm439_vm2, %v4673_v25  ;;  %v1954_v22 = vpop.f32.mrf.mxu0 }
 0x239   : > { %v2255_v26 = vsel %vm2127_vm14, %v2095_v2, %v2721_v60  ;;  %2674 = vmatmul.msk.f32.gmra.mxu3 %vm439_vm2, %v3831_v27  ;;  %v304_v27 = vunpack.c.l.bf16 %v250_v29 }
 0x23a   : > { %v2287_v23 = vpack.c.bf16 %v2255_v26, %v2255_v26  ;;  %v2061_v49 = vmul.f32 %v4046_v62, %v2025_v39 }
 0x23b   : > { %v1635_v21 = vpop.f32.mrf.mxu2  ;;  %2708 = vmatmul.msk.f32.gmra.mxu0 %vm439_vm2, %v1414_v15  ;;  %v1728_v34 = vrot.slane %v304_v27, 1  ;;  %v1887_v25 = vrot.slane %v304_v27, 2 }
 0x23c   : > { %2320 = vst.msk [vmem:[%s4083_s23 + $0x24] sm:$0xf] %vm2310_vm5, %v2287_v23  ;;  %v2097_v61 = vadd.f32 %v4051_v5, %v2061_v49  ;;  %v1707_v56 = vadd.f32 %v1635_v21, %v1551_v36  ;;  %v1795_v45 = vpop.f32.mrf.mxu3 }
 0x23d   : > { %v1482_v2 = vpop.f32.mrf.mxu1  ;;  %v1730_v59 = vsel %vm356_vm1, %v1728_v34, %v1729_v30  ;;  %v1889_v6 = vsel %vm801_vm3, %v1887_v25, %v1888_v18 }
 0x23e   : > { %v2825_v24 = vpop.eup %2824  ;;  %v2172_v50 = vmul.f32 1.442695, %v2097_v61  ;;  %v1867_v46 = vadd.f32 %v1795_v45, %v1707_v56  ;;  %v1552_v10 = vadd.f32 %v1482_v2, %v4675_v48  ;;  %vm2129_vm0 = vcmp.gt.f32.partialorder %v2097_v61, 0.0 }
 0x23f   : > { %v2722_v35 = vadd.f32 -1.0, %v2825_v24 }
 0x240   : > { %2826 = vpow2.f32 %v2172_v50  ;;  %v2026_v41 = vadd.f32 %v1954_v22, %v1867_v46  ;;  %2607 = vmatmul.msk.f32.gmra.mxu1 %vm439_vm2, %v3838_v38  ;;  %2641 = vmatmul.msk.f32.gmra.mxu2 %vm439_vm2, %v3805_v57  ;;  %v1957_v16 = vpop.f32.mrf.mxu0  ;;  %v252_v38 = vld [vmem:[%s2941_s5 + $0xd4] sm:$0x1] }
 0x241   : > { %v2256_v17 = vsel %vm2128_vm15, %v2096_v7, %v2722_v35  ;;  %2675 = vmatmul.msk.f32.gmra.mxu3 %vm439_vm2, %v3851_v37  ;;  %v306_v60 = vunpack.c.l.bf16 %v252_v38 }
 0x242   : > { %v2288_v31 = vpack.c.bf16 %v2256_v17, %v2256_v17  ;;  %v2062_v40 = vmul.f32 %v4046_v62, %v2026_v41 }
 0x243   : > { %v1638_v42 = vpop.f32.mrf.mxu2  ;;  %2709 = vmatmul.msk.f32.gmra.mxu0 %vm439_vm2, %v1416_v0  ;;  %v1731_v21 = vrot.slane %v306_v60, 1 }
 0x244   : > { %2321 = vst.msk [vmem:[%s4083_s23 + $0x28] sm:$0xf] %vm2310_vm5, %v2288_v31  ;;  %v2098_v57 = vadd.f32 %v4051_v5, %v2062_v40  ;;  %v1708_v7 = vadd.f32 %v1638_v42, %v1552_v10  ;;  %v1798_v12 = vpop.f32.mrf.mxu3 }
 0x245   : > { %v1485_v37 = vpop.f32.mrf.mxu1 }
 0x246   : > { %v2827_v51 = vpop.eup %2826  ;;  %v2174_v43 = vmul.f32 1.442695, %v2098_v57  ;;  %v1868_v11 = vadd.f32 %v1798_v12, %v1708_v7  ;;  %v1553_v49 = vadd.f32 %v1485_v37, %v3842_v3  ;;  %v1732_v3 = vsel %vm356_vm1, %v1729_v30, %v1731_v21 }
 0x247   : > { %v2723_v39 = vadd.f32 -1.0, %v2827_v51  ;;  %vm2130_vm4 = vcmp.gt.f32.partialorder %v2098_v57, 0.0 }
 0x248   : > { %2828 = vpow2.f32 %v2174_v43  ;;  %v2027_v26 = vadd.f32 %v1957_v16, %v1868_v11  ;;  %2608 = vmatmul.msk.f32.gmra.mxu1 %vm439_vm2, %v1414_v15  ;;  %2642 = vmatmul.msk.f32.gmra.mxu2 %vm439_vm2, %v304_v27  ;;  %v1960_v23 = vpop.f32.mrf.mxu0  ;;  %v1890_v27 = vrot.slane %v306_v60, 2 }
 0x249   : > { %v2257_v22 = vsel %vm2129_vm0, %v2097_v61, %v2723_v39  ;;  %2676 = vmatmul.msk.f32.gmra.mxu3 %vm439_vm2, %v1730_v59 }
 0x24a   : > { %v2289_v36 = vpack.c.bf16 %v2257_v22, %v2257_v22  ;;  %v2063_v29 = vmul.f32 %v4046_v62, %v2027_v26  ;;  %v1891_v16 = vsel %vm801_vm3, %v1888_v18, %v1890_v27 }
 0x24b   : > { %v1641_v56 = vpop.f32.mrf.mxu2  ;;  %2710 = vmatmul.msk.f32.gmra.mxu0 %vm439_vm2, %v1889_v6 }
 0x24c   : > { %2322 = vst.msk [vmem:[%s4083_s23 + $0x2c] sm:$0xf] %vm2310_vm5, %v2289_v36  ;;  %v2099_v45 = vadd.f32 %v4051_v5, %v2063_v29  ;;  %v1709_v15 = vadd.f32 %v1641_v56, %v1553_v49  ;;  %v1801_v2 = vpop.f32.mrf.mxu3 }
 0x24d   : > { %v1488_v61 = vpop.f32.mrf.mxu1 }
 0x24e   : > { %v2829_v19 = vpop.eup %2828  ;;  %v2176_v24 = vmul.f32 1.442695, %v2099_v45  ;;  %v1869_v50 = vadd.f32 %v1801_v2, %v1709_v15  ;;  %v1554_v31 = vadd.f32 %v1488_v61, %v3856_v55  ;;  %vm2131_vm1 = vcmp.gt.f32.partialorder %v2099_v45, 0.0 }
 0x24f   : > { %v2724_v46 = vadd.f32 -1.0, %v2829_v19 }
 0x250   : > { %2830 = vpow2.f32 %v2176_v24  ;;  %v2028_v35 = vadd.f32 %v1960_v23, %v1869_v50  ;;  %2609 = vmatmul.msk.f32.gmra.mxu1 %vm439_vm2, %v1416_v0  ;;  %2643 = vmatmul.msk.f32.gmra.mxu2 %vm439_vm2, %v4216_v4  ;;  %v1963_v17 = vpop.f32.mrf.mxu0 }
 0x251   : > { %v2258_v41 = vsel %vm2130_vm4, %v2098_v57, %v2724_v46  ;;  %2677 = vmatmul.msk.f32.gmra.mxu3 %vm439_vm2, %v1732_v3 }
 0x252   : > { %v2290_v34 = vpack.c.bf16 %v2258_v41, %v2258_v41  ;;  %v2064_v48 = vmul.f32 %v4046_v62, %v2028_v35 }
 0x253   : > { %v1644_v10 = vpop.f32.mrf.mxu2  ;;  %2711 = vmatmul.msk.f32.gmra.mxu0 %vm439_vm2, %v1891_v16 }
 0x254   : > { %2323 = vst.msk [vmem:[%s4083_s23 + $0x30] sm:$0xf] %vm2310_vm5, %v2290_v34  ;;  %v2100_v40 = vadd.f32 %v4051_v5, %v2064_v48  ;;  %v1710_v0 = vadd.f32 %v1644_v10, %v1554_v31  ;;  %v1804_v30 = vpop.f32.mrf.mxu3 }
 0x255   : > { %v1491_v4 = vpop.f32.mrf.mxu1 }
 0x256   : > { %v2831_v42 = vpop.eup %2830  ;;  %v2178_v38 = vmul.f32 1.442695, %v2100_v40  ;;  %v1870_v57 = vadd.f32 %v1804_v30, %v1710_v0  ;;  %v1555_v18 = vadd.f32 %v1491_v4, %v3867_v47  ;;  %vm2132_vm2 = vcmp.gt.f32.partialorder %v2100_v40, 0.0 }
 0x257   : > { %v2725_v7 = vadd.f32 -1.0, %v2831_v42 }
 0x258   : > { %2832 = vpow2.f32 %v2178_v38  ;;  %v2029_v55 = vadd.f32 %v1963_v17, %v1870_v57  ;;  %v1966_v37 = vpop.f32.mrf.mxu0 }
 0x259   : > { %v2259_v12 = vsel %vm2131_vm1, %v2099_v45, %v2725_v7 }
 0x25a   : > { %v2291_v25 = vpack.c.bf16 %v2259_v12, %v2259_v12  ;;  %v2065_v51 = vmul.f32 %v4046_v62, %v2029_v55 }
 0x25b   : > { %v1647_v43 = vpop.f32.mrf.mxu2 }
 0x25c   : > { %2324 = vst.msk [vmem:[%s4083_s23 + $0x34] sm:$0xf] %vm2310_vm5, %v2291_v25  ;;  %v2101_v11 = vadd.f32 %v4051_v5, %v2065_v51  ;;  %v1711_v59 = vadd.f32 %v1647_v43, %v1555_v18  ;;  %v1807_v60 = vpop.f32.mrf.mxu3 }
 0x25d   : > { %v1494_v39 = vpop.f32.mrf.mxu1 }
 0x25e   : > { %v2833_v26 = vpop.eup %2832  ;;  %v2180_v22 = vmul.f32 1.442695, %v2101_v11  ;;  %v1871_v23 = vadd.f32 %v1807_v60, %v1711_v59  ;;  %v1556_v21 = vadd.f32 %v1494_v39, %v3878_v52  ;;  %vm2133_vm3 = vcmp.gt.f32.partialorder %v2101_v11, 0.0 }
 0x25f   : > { %v2726_v6 = vadd.f32 -1.0, %v2833_v26 }
 0x260   : > { %2834 = vpow2.f32 %v2180_v22  ;;  %v2030_v36 = vadd.f32 %v1966_v37, %v1871_v23  ;;  %v1969_v47 = vpop.f32.mrf.mxu0 }
 0x261   : > { %v2260_v49 = vsel %vm2132_vm2, %v2100_v40, %v2726_v6 }
 0x262   : > { %v2292_v29 = vpack.c.bf16 %v2260_v49, %v2260_v49  ;;  %v2066_v56 = vmul.f32 %v4046_v62, %v2030_v36 }
 0x263   : > { %v1650_v45 = vpop.f32.mrf.mxu2 }
 0x264   : > { %2325 = vst.msk [vmem:[%s4083_s23 + $0x38] sm:$0xf] %vm2310_vm5, %v2292_v29  ;;  %v2102_v15 = vadd.f32 %v4051_v5, %v2066_v56  ;;  %v1712_v2 = vadd.f32 %v1650_v45, %v1556_v21  ;;  %v1810_v61 = vpop.f32.mrf.mxu3 }
 0x265   : > { %v1497_v27 = vpop.f32.mrf.mxu1 }
 0x266   : > { %v2835_v19 = vpop.eup %2834  ;;  %v2182_v24 = vmul.f32 1.442695, %v2102_v15  ;;  %v1872_v50 = vadd.f32 %v1810_v61, %v1712_v2  ;;  %v1557_v17 = vadd.f32 %v1497_v27, %v3889_v32  ;;  %vm2134_vm6 = vcmp.gt.f32.partialorder %v2102_v15, 0.0 }
 0x267   : > { %v2727_v3 = vadd.f32 -1.0, %v2835_v19 }
 0x268   : > { %2836 = vpow2.f32 %v2182_v24  ;;  %v2031_v46 = vadd.f32 %v1969_v47, %v1872_v50  ;;  %v1972_v52 = vpop.f32.mrf.mxu0 }
 0x269   : > { %v2261_v35 = vsel %vm2133_vm3, %v2101_v11, %v2727_v3 }
 0x26a   : > { %v2293_v41 = vpack.c.bf16 %v2261_v35, %v2261_v35  ;;  %v2067_v16 = vmul.f32 %v4046_v62, %v2031_v46 }
 0x26b   : > { %v1653_v34 = vpop.f32.mrf.mxu2 }
 0x26c   : > { %2326 = vst.msk [vmem:[%s4083_s23 + $0x3c] sm:$0xf] %vm2310_vm5, %v2293_v41  ;;  %v2103_v31 = vadd.f32 %v4051_v5, %v2067_v16  ;;  %v1713_v48 = vadd.f32 %v1653_v34, %v1557_v17  ;;  %v1813_v10 = vpop.f32.mrf.mxu3 }
 0x26d   : > { %v1500_v40 = vpop.f32.mrf.mxu1 }
 0x26e   : > { %v2837_v0 = vpop.eup %2836  ;;  %v2184_v30 = vmul.f32 1.442695, %v2103_v31  ;;  %v1873_v4 = vadd.f32 %v1813_v10, %v1713_v48  ;;  %v1558_v55 = vadd.f32 %v1500_v40, %v3900_v1  ;;  %vm2135_vm7 = vcmp.gt.f32.partialorder %v2103_v31, 0.0 }
 0x26f   : > { %v2728_v42 = vadd.f32 -1.0, %v2837_v0 }
 0x270   : > { %2838 = vpow2.f32 %v2184_v30  ;;  %v2032_v38 = vadd.f32 %v1972_v52, %v1873_v4  ;;  %v1975_v32 = vpop.f32.mrf.mxu0 }
 0x271   : > { %v2262_v57 = vsel %vm2134_vm6, %v2102_v15, %v2728_v42 }
 0x272   : > { %v2294_v7 = vpack.c.bf16 %v2262_v57, %v2262_v57  ;;  %v2068_v12 = vmul.f32 %v4046_v62, %v2032_v38 }
 0x273   : > { %v1656_v37 = vpop.f32.mrf.mxu2 }
 0x274   : > { %2327 = vst.msk [vmem:[%s4083_s23 + $0x40] sm:$0xf] %vm2310_vm5, %v2294_v7  ;;  %v2104_v25 = vadd.f32 %v4051_v5, %v2068_v12  ;;  %v1714_v18 = vadd.f32 %v1656_v37, %v1558_v55  ;;  %v1816_v51 = vpop.f32.mrf.mxu3 }
 0x275   : > { %v1503_v43 = vpop.f32.mrf.mxu1 }
 0x276   : > { %v2839_v11 = vpop.eup %2838  ;;  %v2186_v59 = vmul.f32 1.442695, %v2104_v25  ;;  %v1874_v60 = vadd.f32 %v1816_v51, %v1714_v18  ;;  %v1559_v6 = vadd.f32 %v1503_v43, %v3911_v54  ;;  %vm2136_vm8 = vcmp.gt.f32.partialorder %v2104_v25, 0.0 }
 0x277   : > { %v2729_v39 = vadd.f32 -1.0, %v2839_v11 }
 0x278   : > { %2840 = vpow2.f32 %v2186_v59  ;;  %v2033_v26 = vadd.f32 %v1975_v32, %v1874_v60  ;;  %v1978_v1 = vpop.f32.mrf.mxu0 }
 0x279   : > { %v2263_v22 = vsel %vm2135_vm7, %v2103_v31, %v2729_v39 }
 0x27a   : > { %v2295_v23 = vpack.c.bf16 %v2263_v22, %v2263_v22  ;;  %v2069_v36 = vmul.f32 %v4046_v62, %v2033_v26 }
 0x27b   : > { %v1659_v49 = vpop.f32.mrf.mxu2 }
 0x27c   : > { %2328 = vst.msk [vmem:[%s4083_s23 + $0x44] sm:$0xf] %vm2310_vm5, %v2295_v23  ;;  %v2105_v47 = vadd.f32 %v4051_v5, %v2069_v36  ;;  %v1715_v29 = vadd.f32 %v1659_v49, %v1559_v6  ;;  %v1819_v21 = vpop.f32.mrf.mxu3 }
 0x27d   : > { %v1506_v56 = vpop.f32.mrf.mxu1 }
 0x27e   : > { %v2841_v45 = vpop.eup %2840  ;;  %v2188_v15 = vmul.f32 1.442695, %v2105_v47  ;;  %v1875_v2 = vadd.f32 %v1819_v21, %v1715_v29  ;;  %v1560_v50 = vadd.f32 %v1506_v56, %v3922_v14  ;;  %vm2137_vm9 = vcmp.gt.f32.partialorder %v2105_v47, 0.0 }
 0x27f   : > { %v2730_v61 = vadd.f32 -1.0, %v2841_v45 }
 0x280   : > { %2842 = vpow2.f32 %v2188_v15  ;;  %v2034_v27 = vadd.f32 %v1978_v1, %v1875_v2  ;;  %v1981_v54 = vpop.f32.mrf.mxu0 }
 0x281   : > { %v2264_v19 = vsel %vm2136_vm8, %v2104_v25, %v2730_v61 }
 0x282   : > { %v2296_v24 = vpack.c.bf16 %v2264_v19, %v2264_v19  ;;  %v2070_v3 = vmul.f32 %v4046_v62, %v2034_v27 }
 0x283   : > { %v1662_v46 = vpop.f32.mrf.mxu2 }
 0x284   : > { %2329 = vst.msk [vmem:[%s4083_s23 + $0x48] sm:$0xf] %vm2310_vm5, %v2296_v24  ;;  %v2106_v35 = vadd.f32 %v4051_v5, %v2070_v3  ;;  %v1716_v52 = vadd.f32 %v1662_v46, %v1560_v50  ;;  %v1822_v41 = vpop.f32.mrf.mxu3 }
 0x285   : > { %v1509_v17 = vpop.f32.mrf.mxu1 }
 0x286   : > { %v2843_v16 = vpop.eup %2842  ;;  %v2190_v34 = vmul.f32 1.442695, %v2106_v35  ;;  %v1876_v31 = vadd.f32 %v1822_v41, %v1716_v52  ;;  %v1561_v30 = vadd.f32 %v1509_v17, %v3933_v63  ;;  %vm2138_vm10 = vcmp.gt.f32.partialorder %v2106_v35, 0.0 }
 0x287   : > { %v2731_v48 = vadd.f32 -1.0, %v2843_v16  ;;  %v4314_v16 = vld [vmem:[%s4361_s3] ss:$0 sm:$0xff] }
 0x288   : > { %2844 = vpow2.f32 %v2190_v34  ;;  %v2035_v10 = vadd.f32 %v1981_v54, %v1876_v31  ;;  %v1984_v14 = vpop.f32.mrf.mxu0 }
 0x289   : > { %v2265_v40 = vsel %vm2137_vm9, %v2105_v47, %v2731_v48 }
 0x28a   : > { %v2297_v0 = vpack.c.bf16 %v2265_v40, %v2265_v40  ;;  %v2071_v4 = vmul.f32 %v4046_v62, %v2035_v10 }
 0x28b   : > { %v1665_v42 = vpop.f32.mrf.mxu2 }
 0x28c   : > { %2330 = vst.msk [vmem:[%s4083_s23 + $0x4c] sm:$0xf] %vm2310_vm5, %v2297_v0  ;;  %v2107_v38 = vadd.f32 %v4051_v5, %v2071_v4  ;;  %v1717_v57 = vadd.f32 %v1665_v42, %v1561_v30  ;;  %v1825_v32 = vpop.f32.mrf.mxu3 }
 0x28d   : > { %v1512_v7 = vpop.f32.mrf.mxu1 }
 0x28e   : > { %v2845_v55 = vpop.eup %2844  ;;  %v2192_v12 = vmul.f32 1.442695, %v2107_v38  ;;  %v1877_v37 = vadd.f32 %v1825_v32, %v1717_v57  ;;  %v1562_v11 = vadd.f32 %v1512_v7, %v3944_v33  ;;  %vm2139_vm11 = vcmp.gt.f32.partialorder %v2107_v38, 0.0 }
 0x28f   : > { %v2732_v25 = vadd.f32 -1.0, %v2845_v55 }
 0x290   : > { %2846 = vpow2.f32 %v2192_v12  ;;  %v2036_v18 = vadd.f32 %v1984_v14, %v1877_v37  ;;  %v1987_v63 = vpop.f32.mrf.mxu0 }
 0x291   : > { %v2266_v51 = vsel %vm2138_vm10, %v2106_v35, %v2732_v25 }
 0x292   : > { %v2298_v43 = vpack.c.bf16 %v2266_v51, %v2266_v51  ;;  %v2072_v59 = vmul.f32 %v4046_v62, %v2036_v18 }
 0x293   : > { %v1668_v60 = vpop.f32.mrf.mxu2 }
 0x294   : > { %2331 = vst.msk [vmem:[%s4083_s23 + $0x50] sm:$0xf] %vm2310_vm5, %v2298_v43  ;;  %v2108_v39 = vadd.f32 %v4051_v5, %v2072_v59  ;;  %v1718_v26 = vadd.f32 %v1668_v60, %v1562_v11  ;;  %v1828_v22 = vpop.f32.mrf.mxu3 }
 0x295   : > { %v1515_v1 = vpop.f32.mrf.mxu1 }
 0x296   : > { %v2847_v23 = vpop.eup %2846  ;;  %v2194_v6 = vmul.f32 1.442695, %v2108_v39  ;;  %v1878_v36 = vadd.f32 %v1828_v22, %v1718_v26  ;;  %v1563_v56 = vadd.f32 %v1515_v1, %v3955_v44  ;;  %vm2140_vm12 = vcmp.gt.f32.partialorder %v2108_v39, 0.0 }
 0x297   : > { %v2733_v49 = vadd.f32 -1.0, %v2847_v23 }
 0x298   : > { %2848 = vpow2.f32 %v2194_v6  ;;  %v2037_v47 = vadd.f32 %v1987_v63, %v1878_v36  ;;  %v1990_v33 = vpop.f32.mrf.mxu0 }
 0x299   : > { %v2267_v29 = vsel %vm2139_vm11, %v2107_v38, %v2733_v49 }
 0x29a   : > { %v2299_v21 = vpack.c.bf16 %v2267_v29, %v2267_v29  ;;  %v2073_v45 = vmul.f32 %v4046_v62, %v2037_v47 }
 0x29b   : > { %v1671_v15 = vpop.f32.mrf.mxu2 }
 0x29c   : > { %2332 = vst.msk [vmem:[%s4083_s23 + $0x54] sm:$0xf] %vm2310_vm5, %v2299_v21  ;;  %v2109_v2 = vadd.f32 %v4051_v5, %v2073_v45  ;;  %v1719_v61 = vadd.f32 %v1671_v15, %v1563_v56  ;;  %v1831_v27 = vpop.f32.mrf.mxu3  ;;  %v4306_v5 = vld [vmem:[%s4360_s2] ss:$0 sm:$0xff] }
 0x29d   : > { %v1518_v19 = vpop.f32.mrf.mxu1 }
 0x29e   : > { %v2849_v54 = vpop.eup %2848  ;;  %v2196_v24 = vmul.f32 1.442695, %v2109_v2  ;;  %v1879_v50 = vadd.f32 %v1831_v27, %v1719_v61  ;;  %v1564_v62 = vadd.f32 %v1518_v19, %v3966_v9  ;;  %vm2141_vm13 = vcmp.gt.f32.partialorder %v2109_v2, 0.0 }
 0x29f   : > { %v2734_v3 = vadd.f32 -1.0, %v2849_v54 }
 0x2a0   : > { %2850 = vpow2.f32 %v2196_v24  ;;  %v2038_v46 = vadd.f32 %v1990_v33, %v1879_v50  ;;  %v1993_v44 = vpop.f32.mrf.mxu0 }
 0x2a1   : > { %v2268_v35 = vsel %vm2140_vm12, %v2108_v39, %v2734_v3 }
 0x2a2   : > { %v2300_v52 = vpack.c.bf16 %v2268_v35, %v2268_v35  ;;  %v2074_v41 = vmul.f32 %v4306_v5, %v2038_v46 }
 0x2a3   : > { %v1674_v17 = vpop.f32.mrf.mxu2 }
 0x2a4   : > { %2333 = vst.msk [vmem:[%s4083_s23 + $0x58] sm:$0xf] %vm2310_vm5, %v2300_v52  ;;  %v2110_v34 = vadd.f32 %v4314_v16, %v2074_v41  ;;  %v1720_v31 = vadd.f32 %v1674_v17, %v1564_v62  ;;  %v1834_v9 = vpop.f32.mrf.mxu3 }
 0x2a5   : > { %v1521_v48 = vpop.f32.mrf.mxu1 }
 0x2a6   : > { %v2851_v10 = vpop.eup %2850  ;;  %v2198_v40 = vmul.f32 1.442695, %v2110_v34  ;;  %v1880_v14 = vadd.f32 %v1834_v9, %v1720_v31  ;;  %v1565_v57 = vadd.f32 %v1521_v48, %v3977_v20  ;;  %vm2142_vm14 = vcmp.gt.f32.partialorder %v2110_v34, 0.0 }
 0x2a7   : > { %v2735_v0 = vadd.f32 -1.0, %v2851_v10 }
 0x2a8   : > { %2852 = vpow2.f32 %v2198_v40  ;;  %v2039_v30 = vadd.f32 %v1993_v44, %v1880_v14  ;;  %v1996_v42 = vpop.f32.mrf.mxu0 }
 0x2a9   : > { %v2269_v4 = vsel %vm2141_vm13, %v2109_v2, %v2735_v0 }
 0x2aa   : > { %v2301_v38 = vpack.c.bf16 %v2269_v4, %v2269_v4  ;;  %v2075_v32 = vmul.f32 %v4306_v5, %v2039_v30 }
 0x2ab   : > { %v1677_v7 = vpop.f32.mrf.mxu2 }
 0x2ac   : > { %2334 = vst.msk [vmem:[%s4083_s23 + $0x5c] sm:$0xf] %vm2310_vm5, %v2301_v38  ;;  %v2111_v55 = vadd.f32 %v4314_v16, %v2075_v32  ;;  %v1721_v12 = vadd.f32 %v1677_v7, %v1565_v57  ;;  %v1837_v37 = vpop.f32.mrf.mxu3 }
 0x2ad   : > { %v1524_v25 = vpop.f32.mrf.mxu1 }
 0x2ae   : > { %v2853_v18 = vpop.eup %2852  ;;  %v2200_v51 = vmul.f32 1.442695, %v2111_v55  ;;  %v1881_v63 = vadd.f32 %v1837_v37, %v1721_v12  ;;  %v1566_v39 = vadd.f32 %v1524_v25, %v3988_v53  ;;  %vm2143_vm15 = vcmp.gt.f32.partialorder %v2111_v55, 0.0 }
 0x2af   : > { %v2736_v43 = vadd.f32 -1.0, %v2853_v18 }
 0x2b0   : > { %2854 = vpow2.f32 %v2200_v51  ;;  %v2040_v11 = vadd.f32 %v1996_v42, %v1881_v63  ;;  %v1999_v20 = vpop.f32.mrf.mxu0 }
 0x2b1   : > { %v2270_v59 = vsel %vm2142_vm14, %v2110_v34, %v2736_v43 }
 0x2b2   : > { %v2302_v60 = vpack.c.bf16 %v2270_v59, %v2270_v59  ;;  %v2076_v26 = vmul.f32 %v4306_v5, %v2040_v11 }
 0x2b3   : > { %v1680_v22 = vpop.f32.mrf.mxu2 }
 0x2b4   : > { %2335 = vst.msk [vmem:[%s4083_s23 + $0x60] sm:$0xf] %vm2310_vm5, %v2302_v60  ;;  %v2112_v1 = vadd.f32 %v4314_v16, %v2076_v26  ;;  %v1722_v23 = vadd.f32 %v1680_v22, %v1566_v39  ;;  %v1840_v6 = vpop.f32.mrf.mxu3 }
 0x2b5   : > { %v1527_v36 = vpop.f32.mrf.mxu1 }
 0x2b6   : > { %v2855_v49 = vpop.eup %2854  ;;  %v2202_v47 = vmul.f32 1.442695, %v2112_v1  ;;  %v1882_v29 = vadd.f32 %v1840_v6, %v1722_v23  ;;  %v1567_v15 = vadd.f32 %v1527_v36, %v3999_v13  ;;  %vm2144_vm0 = vcmp.gt.f32.partialorder %v2112_v1, 0.0 }
 0x2b7   : > { %v2737_v33 = vadd.f32 -1.0, %v2855_v49 }
 0x2b8   : > { %2856 = vpow2.f32 %v2202_v47  ;;  %v2041_v21 = vadd.f32 %v1999_v20, %v1882_v29  ;;  %v2002_v53 = vpop.f32.mrf.mxu0 }
 0x2b9   : > { %v2271_v56 = vsel %vm2143_vm15, %v2111_v55, %v2737_v33 }
 0x2ba   : > { %v2303_v45 = vpack.c.bf16 %v2271_v56, %v2271_v56  ;;  %v2077_v2 = vmul.f32 %v4306_v5, %v2041_v21 }
 0x2bb   : > { %v1683_v61 = vpop.f32.mrf.mxu2 }
 0x2bc   : > { %2336 = vst.msk [vmem:[%s4083_s23 + $0x64] sm:$0xf] %vm2310_vm5, %v2303_v45  ;;  %v2113_v27 = vadd.f32 %v4314_v16, %v2077_v2  ;;  %v1723_v19 = vadd.f32 %v1683_v61, %v1567_v15  ;;  %v1843_v54 = vpop.f32.mrf.mxu3 }
 0x2bd   : > { %v1530_v24 = vpop.f32.mrf.mxu1 }
 0x2be   : > { %v2857_v50 = vpop.eup %2856  ;;  %v2204_v3 = vmul.f32 1.442695, %v2113_v27  ;;  %v1883_v46 = vadd.f32 %v1843_v54, %v1723_v19  ;;  %v1568_v41 = vadd.f32 %v1530_v24, %v4010_v8  ;;  %vm2145_vm4 = vcmp.gt.f32.partialorder %v2113_v27, 0.0 }
 0x2bf   : > { %v2738_v35 = vadd.f32 -1.0, %v2857_v50 }
 0x2c0   : > { %2858 = vpow2.f32 %v2204_v3  ;;  %v2042_v44 = vadd.f32 %v2002_v53, %v1883_v46  ;;  %v2005_v13 = vpop.f32.mrf.mxu0 }
 0x2c1   : > { %v2272_v52 = vsel %vm2144_vm0, %v2112_v1, %v2738_v35 }
 0x2c2   : > { %v2304_v62 = vpack.c.bf16 %v2272_v52, %v2272_v52  ;;  %v2078_v17 = vmul.f32 %v4306_v5, %v2042_v44 }
 0x2c3   : > { %v1686_v34 = vpop.f32.mrf.mxu2 }
 0x2c4   : > { %2337 = vst.msk [vmem:[%s4083_s23 + $0x68] sm:$0xf] %vm2310_vm5, %v2304_v62  ;;  %v2114_v31 = vadd.f32 %v4314_v16, %v2078_v17  ;;  %v1724_v9 = vadd.f32 %v1686_v34, %v1568_v41  ;;  %v1846_v48 = vpop.f32.mrf.mxu3 }
 0x2c5   : > { %v1533_v10 = vpop.f32.mrf.mxu1 }
 0x2c6   : > { %v2859_v40 = vpop.eup %2858  ;;  %v2206_v14 = vmul.f32 1.442695, %v2114_v31  ;;  %v1884_v0 = vadd.f32 %v1846_v48, %v1724_v9  ;;  %v1569_v38 = vadd.f32 %v1533_v10, %v4021_v58  ;;  %vm2146_vm1 = vcmp.gt.f32.partialorder %v2114_v31, 0.0 }
 0x2c7   : > { %v2739_v30 = vadd.f32 -1.0, %v2859_v40 }
 0x2c8   : > { %2860 = vpow2.f32 %v2206_v14  ;;  %v2043_v4 = vadd.f32 %v2005_v13, %v1884_v0  ;;  %v2008_v7 = vpop.f32.mrf.mxu0 }
 0x2c9   : > { %v2273_v42 = vsel %vm2145_vm4, %v2113_v27, %v2739_v30 }
 0x2ca   : > { %v2305_v8 = vpack.c.bf16 %v2273_v42, %v2273_v42  ;;  %v2079_v57 = vmul.f32 %v4306_v5, %v2043_v4 }
 0x2cb   : > { %v1689_v32 = vpop.f32.mrf.mxu2 }
 0x2cc   : > { %2338 = vst.msk [vmem:[%s4083_s23 + $0x6c] sm:$0xf] %vm2310_vm5, %v2305_v8  ;;  %v2115_v55 = vadd.f32 %v4314_v16, %v2079_v57  ;;  %v1725_v12 = vadd.f32 %v1689_v32, %v1569_v38  ;;  %v1849_v37 = vpop.f32.mrf.mxu3 }
 0x2cd   : > { %v1536_v43 = vpop.f32.mrf.mxu1 }
 0x2ce   : > { %v2861_v25 = vpop.eup %2860  ;;  %v2208_v18 = vmul.f32 1.442695, %v2115_v55  ;;  %v1885_v51 = vadd.f32 %v1849_v37, %v1725_v12  ;;  %v1570_v20 = vadd.f32 %v1536_v43, %v4032_v28  ;;  %vm2147_vm2 = vcmp.gt.f32.partialorder %v2115_v55, 0.0 }
 0x2cf   : > { %v2740_v63 = vadd.f32 -1.0, %v2861_v25 }
 0x2d0   : > { %2862 = vpow2.f32 %v2208_v18  ;;  %v2044_v11 = vadd.f32 %v2008_v7, %v1885_v51  ;;  %v2011_v23 = vpop.f32.mrf.mxu0 }
 0x2d1   : > { %v2274_v58 = vsel %vm2146_vm1, %v2114_v31, %v2740_v63 }
 0x2d2   : > { %v2306_v59 = vpack.c.bf16 %v2274_v58, %v2274_v58  ;;  %v2080_v60 = vmul.f32 %v4306_v5, %v2044_v11 }
 0x2d3   : > { %v1692_v39 = vpop.f32.mrf.mxu2 }
 0x2d4   : > { %2339 = vst.msk [vmem:[%s4083_s23 + $0x70] sm:$0xf] %vm2310_vm5, %v2306_v59  ;;  %v2116_v26 = vadd.f32 %v4314_v16, %v2080_v60  ;;  %v1726_v22 = vadd.f32 %v1692_v39, %v1570_v20  ;;  %v1852_v1 = vpop.f32.mrf.mxu3 }
 0x2d6   : > { %v2863_v6 = vpop.eup %2862  ;;  %v2210_v36 = vmul.f32 1.442695, %v2116_v26  ;;  %v1886_v49 = vadd.f32 %v1852_v1, %v1726_v22  ;;  %vm2148_vm3 = vcmp.gt.f32.partialorder %v2116_v26, 0.0 }
 0x2d7   : > { %v2741_v47 = vadd.f32 -1.0, %v2863_v6 }
 0x2d8   : > { %2864 = vpow2.f32 %v2210_v36  ;;  %v2045_v29 = vadd.f32 %v2011_v23, %v1886_v49 }
 0x2d9   : > { %v2275_v28 = vsel %vm2147_vm2, %v2115_v55, %v2741_v47 }
 0x2da   : > { %v2307_v33 = vpack.c.bf16 %v2275_v28, %v2275_v28  ;;  %v2081_v21 = vmul.f32 %v4306_v5, %v2045_v29 }
 0x2dc   : > { %2340 = vst.msk [vmem:[%s4083_s23 + $0x74] sm:$0xf] %vm2310_vm5, %v2307_v33  ;;  %v2117_v56 = vadd.f32 %v4314_v16, %v2081_v21 }
 0x2de   : > { %v2865_v53 = vpop.eup %2864  ;;  %v2212_v45 = vmul.f32 1.442695, %v2117_v56  ;;  %vm2149_vm6 = vcmp.gt.f32.partialorder %v2117_v56, 0.0 }
 0x2df   : > { %v2742_v15 = vadd.f32 -1.0, %v2865_v53 }
 0x2e0   : > { %2866 = vpow2.f32 %v2212_v45 }
 0x2e1   : > { %v2276_v2 = vsel %vm2148_vm3, %v2116_v26, %v2742_v15 }
 0x2e2   : > { %v2308_v61 = vpack.c.bf16 %v2276_v2, %v2276_v2 }
 0x2e4   : > { %2341 = vst.msk [vmem:[%s4083_s23 + $0x78] sm:$0xf] %vm2310_vm5, %v2308_v61 }
 0x2e6   : > { %v2867_v27 = vpop.eup %2866 }
 0x2e7   : > { %v2743_v19 = vadd.f32 -1.0, %v2867_v27 }
 0x2e9   : > { %v2277_v54 = vsel %vm2149_vm6, %v2117_v56, %v2743_v19 }
 0x2ea   : > { %v2309_v24 = vpack.c.bf16 %v2277_v54, %v2277_v54 }
 0x2ec   : > { %2342 = vst.msk [vmem:[%s4083_s23 + $0x7c] sm:$0xf] %vm2310_vm5, %v2309_v24 }
 0x2ed PF: > { %s14_s15 = sadd.s32 1, %s2876_s15  }
 0x2ee   : > { %p11_p5 = scmp.ge.s32.totalorder %s14_s15, 4  }
 0x2f0   :  { %13 = sbr.rel (!%p11_p5) target bundleno = 1 (0x1), region = 74 }

</bundles_post_ra>
